<compile_context>
chip_gen: v6e
topology: v6e:2x2x1
jax: 0.10.0
libtpu: 0.0.40
codegen_flags: <defaults>
</compile_context>

<pallas_src>
import jax
import jax.numpy as jnp
from jax import lax
from jax.experimental import pallas as pl
from jax.experimental.pallas import tpu as pltpu

HIDDEN = 2048  # fixed by the PyTorch module: two Linear(2048, 2048) layers.


def _fused_kernel(x_ref, w1t_ref, b1_ref, w2_ref, b2_ref, o_ref, pooled_ref):
    """One grid step handles one tile j of the hidden dimension:

        h_j   = relu( gap(x) @ W1[:, j] + b1[j] )      (W1 passed transposed)
        out  += h_j @ W2[j, :]                          (f32 accumulate in o_ref)

    Step 0 computes the GAP into a bf16 VMEM scratch; the last step adds b2.
    """
    j = pl.program_id(0)

    @pl.when(j == 0)
    def _init():
        # x is (B, H*W, C) lane-dense: mean over the sublane (spatial) axis.
        pooled_ref[...] = jnp.mean(x_ref[...], axis=1).astype(pooled_ref.dtype)
        o_ref[...] = jnp.zeros_like(o_ref)

    # Linear 1, hidden tile j: pooled (B, K) contracted with W1T tile (th, K)
    # over the last dims -> (B, th), f32 accumulation on the MXU.
    h = lax.dot_general(
        pooled_ref[...], w1t_ref[...],
        dimension_numbers=(((1,), (1,)), ((), ())),
        preferred_element_type=jnp.float32)
    h = jnp.maximum(h + b1_ref[...], 0.0)

    # Linear 2: accumulate this hidden tile's contribution into the resident
    # f32 output block (full lane-dense output width N2).
    o_ref[...] += jnp.dot(h.astype(w2_ref.dtype), w2_ref[...],
                          preferred_element_type=jnp.float32)

    @pl.when(j == pl.num_programs(0) - 1)
    def _finalize():
        o_ref[...] += b2_ref[...]


def reverse_operator_pallas(x_nchw, w1, b1, w2, b2, *, tile_hidden=512):
    """x_nchw: (B, 2048, H, W) f32; w1/w2: (2048, 2048); b1/b2: (2048,)."""
    B, C, H, W = x_nchw.shape
    K1, N1 = w1.shape
    K2, N2 = w2.shape
    assert C == K1 and N1 == K2 and N2 == N1, "module is two Linear(2048, 2048)"
    assert N1 % tile_hidden == 0, "hidden tile must divide the hidden dim"
    nt = N1 // tile_hidden
    th = tile_hidden

    # Lane-dense x: channel axis (2048) on lanes, spatial axis on sublanes.
    x3 = x_nchw.reshape(B, C, H * W).transpose(0, 2, 1)          # (B, H*W, C)
    # W1 pre-transposed -> contiguous (th, K1) row-tile reads from HBM.
    # (In a real deployment store the weights transposed/bf16 so these are no-ops.)
    w1t = w1.T.astype(jnp.bfloat16)                              # (N1, K1)
    w2b = w2.astype(jnp.bfloat16)                                # (K2, N2)
    b1r = b1.reshape(1, N1).astype(jnp.float32)
    b2r = b2.reshape(1, N2).astype(jnp.float32)

    weight_bytes = 2 * (K1 * N1) * 2                      # two bf16 2048x2048
    io_bytes = x3.size * 4 + B * N2 * 4 + 2 * N1 * 4      # x, out, biases
    cost = pl.CostEstimate(
        flops=2 * (2 * B * K1 * N1),                      # two GEMMs
        transcendentals=0,
        bytes_accessed=weight_bytes + io_bytes)

    return pl.pallas_call(
        _fused_kernel,
        out_shape=jax.ShapeDtypeStruct((B, N2), jnp.float32),
        grid_spec=pltpu.PrefetchScalarGridSpec(
            num_scalar_prefetch=0,
            grid=(nt,),  # hidden-dimension tiles; each weight streamed once
            in_specs=[
                # x: VMEM-resident, DMA'd once (constant index map).
                pl.BlockSpec((B, H * W, C), lambda j: (0, 0, 0)),
                # W1T row tile for hidden block j (contiguous HBM read).
                pl.BlockSpec((th, K1), lambda j: (j, 0)),
                # b1 tile for hidden block j.
                pl.BlockSpec((1, th), lambda j: (0, j)),
                # W2 row tile for hidden block j (full output width, lane-dense).
                pl.BlockSpec((th, N2), lambda j: (j, 0)),
                # b2: resident, added once in the final step.
                pl.BlockSpec((1, N2), lambda j: (0, 0)),
            ],
            # Output is a resident f32 accumulator (constant block index),
            # written back to HBM once at the end.
            out_specs=pl.BlockSpec((B, N2), lambda j: (0, 0)),
            # Pooled GAP result, kept in bf16 (MXU LHS dtype) across steps.
            scratch_shapes=[pltpu.VMEM((B, C), jnp.bfloat16)],
        ),
        compiler_params=pltpu.CompilerParams(
            # Single grid axis is a reduction (accumulates into o_ref).
            dimension_semantics=("arbitrary",),
        ),
        cost_estimate=cost,
    )(x3, w1t, b1r, w2b, b2r)


@jax.jit
def reverse_operator(x_nchw, w1, b1, w2, b2):
    return reverse_operator_pallas(x_nchw, w1, b1, w2, b2)


def init_params(key):
    """PyTorch-Linear-like uniform init; weights kept bf16 (kernel is weight-BW bound)."""
    k1, k2, k3, k4 = jax.random.split(key, 4)
    bound = 1.0 / jnp.sqrt(HIDDEN)
    w1 = jax.random.uniform(k1, (HIDDEN, HIDDEN), jnp.float32, -bound, bound)
    b1 = jax.random.uniform(k2, (HIDDEN,), jnp.float32, -bound, bound)
    w2 = jax.random.uniform(k3, (HIDDEN, HIDDEN), jnp.float32, -bound, bound)
    b2 = jax.random.uniform(k4, (HIDDEN,), jnp.float32, -bound, bound)
    return w1.astype(jnp.bfloat16), b1, w2.astype(jnp.bfloat16), b2


if __name__ == "__main__":
    key = jax.random.PRNGKey(0)
    kx, kp = jax.random.split(key)

    # Channel dim is fixed at 2048 by the module; small batch / spatial dims.
    B, C, H, W = 2, HIDDEN, 4, 4
    x = jax.random.normal(kx, (B, C, H, W), dtype=jnp.float32)
    w1, b1, w2, b2 = init_params(kp)

    out = reverse_operator(x, w1, b1, w2, b2)
    jax.block_until_ready(out)

    # Plain-JAX reference with matching numerics (bf16 weights, f32 accumulate).
    pooled = jnp.mean(x.reshape(B, C, -1), axis=-1)
    h_ref = jnp.maximum(
        jnp.dot(pooled.astype(jnp.bfloat16), w1,
                preferred_element_type=jnp.float32) + b1, 0.0)
    ref = jnp.dot(h_ref.astype(jnp.bfloat16), w2,
                  preferred_element_type=jnp.float32) + b2

    assert out.shape == (B, HIDDEN)
    max_err = float(jnp.max(jnp.abs(out - ref)))
    assert jnp.allclose(out, ref, atol=2e-2, rtol=2e-2), f"max abs err {max_err}"

    print("KERNEL_OK")
</pallas_src>

<mosaic_0001>
module attributes {stable_mosaic.version = 11 : i64} {
  func.func @_fused_kernel(%arg0: i32, %arg1: memref<2x16x2048xf32, #tpu.memory_space<vmem>>, %arg2: memref<512x2048xbf16, #tpu.memory_space<vmem>>, %arg3: memref<1x512xf32, #tpu.memory_space<vmem>>, %arg4: memref<512x2048xbf16, #tpu.memory_space<vmem>>, %arg5: memref<1x2048xf32, #tpu.memory_space<vmem>>, %arg6: memref<2x2048xf32, #tpu.memory_space<vmem>>, %arg7: memref<2x2048xbf16, #tpu.memory_space<vmem>>) attributes {dimension_semantics = [#tpu.dimension_semantics<arbitrary>], iteration_bounds = array<i64: 4>, scalar_prefetch = 0 : i64, scratch_operands = 1 : i64, tpu.core_type = #tpu.core_type<tc>, window_params = [{pipeline_mode = #tpu.pipeline_mode<synchronous>, transform_indices = @transform_0, window_bounds = array<i64: 2, 16, 2048>}, {transform_indices = @transform_1, window_bounds = array<i64: 512, 2048>}, {transform_indices = @transform_2, window_bounds = array<i64: 1, 512>}, {transform_indices = @transform_3, window_bounds = array<i64: 512, 2048>}, {pipeline_mode = #tpu.pipeline_mode<synchronous>, transform_indices = @transform_4, window_bounds = array<i64: 1, 2048>}, {pipeline_mode = #tpu.pipeline_mode<synchronous>, transform_indices = @transform_5, window_bounds = array<i64: 2, 2048>}]} {
    %c0_i32 = arith.constant 0 : i32
    %0 = arith.cmpi eq, %arg0, %c0_i32 : i32
    %1 = arith.extui %0 : i1 to i32
    %c0_i32_0 = arith.constant 0 : i32
    %2 = arith.cmpi ne, %1, %c0_i32_0 : i32
    scf.if %2 {
      %c0_15 = arith.constant 0 : index
      %c0_16 = arith.constant 0 : index
      %c0_17 = arith.constant 0 : index
      %20 = vector.load %arg1[%c0_15, %c0_16, %c0_17] : memref<2x16x2048xf32, #tpu.memory_space<vmem>>, vector<2x16x2048xf32>
      %cst_18 = arith.constant dense<0.000000e+00> : vector<2x2048xf32>
      %21 = vector.multi_reduction <add>, %20, %cst_18 [1] : vector<2x16x2048xf32> to vector<2x2048xf32>
      %cst_19 = arith.constant 1.600000e+01 : f32
      %22 = vector.broadcast %cst_19 : f32 to vector<2x2048xf32>
      %23 = arith.divf %21, %22 : vector<2x2048xf32>
      %24 = arith.truncf %23 : vector<2x2048xf32> to vector<2x2048xbf16>
      %c0_20 = arith.constant 0 : index
      %c0_21 = arith.constant 0 : index
      %25 = vector.load %arg7[%c0_20, %c0_21] : memref<2x2048xbf16, #tpu.memory_space<vmem>>, vector<2x2048xbf16>
      tpu.vector_store %arg7[%c0_20, %c0_21], %24 {strides = array<i32>} : memref<2x2048xbf16, #tpu.memory_space<vmem>>, vector<2x2048xbf16>,
      %cst_22 = arith.constant 0.000000e+00 : f32
      %26 = vector.broadcast %cst_22 : f32 to vector<2x2048xf32>
      %c0_23 = arith.constant 0 : index
      %c0_24 = arith.constant 0 : index
      %27 = vector.load %arg6[%c0_23, %c0_24] : memref<2x2048xf32, #tpu.memory_space<vmem>>, vector<2x2048xf32>
      tpu.vector_store %arg6[%c0_23, %c0_24], %26 {strides = array<i32>} : memref<2x2048xf32, #tpu.memory_space<vmem>>, vector<2x2048xf32>,
    } else {
    }
    %c0 = arith.constant 0 : index
    %c0_1 = arith.constant 0 : index
    %3 = vector.load %arg7[%c0, %c0_1] : memref<2x2048xbf16, #tpu.memory_space<vmem>>, vector<2x2048xbf16>
    %c0_2 = arith.constant 0 : index
    %c0_3 = arith.constant 0 : index
    %4 = vector.load %arg2[%c0_2, %c0_3] : memref<512x2048xbf16, #tpu.memory_space<vmem>>, vector<512x2048xbf16>
    %cst = arith.constant dense<0.000000e+00> : vector<2x512xf32>
    %5 = tpu.matmul %3, %4, %cst {dimension_numbers = #tpu.dot_dimension_numbers<[1], [1], [0], [0], [0, 0, 1, 0], [], []>} : vector<2x2048xbf16>, vector<512x2048xbf16>, vector<2x512xf32> -> vector<2x512xf32>
    %c0_4 = arith.constant 0 : index
    %c0_5 = arith.constant 0 : index
    %6 = vector.load %arg3[%c0_4, %c0_5] : memref<1x512xf32, #tpu.memory_space<vmem>>, vector<1x512xf32>
    %7 = vector.broadcast %6 : vector<1x512xf32> to vector<2x512xf32>
    %8 = arith.addf %5, %7 : vector<2x512xf32>
    %cst_6 = arith.constant 0.000000e+00 : f32
    %9 = vector.broadcast %cst_6 : f32 to vector<2x512xf32>
    %10 = arith.maximumf %8, %9 : vector<2x512xf32>
    %c0_7 = arith.constant 0 : index
    %c0_8 = arith.constant 0 : index
    %11 = vector.load %arg6[%c0_7, %c0_8] : memref<2x2048xf32, #tpu.memory_space<vmem>>, vector<2x2048xf32>
    %12 = arith.truncf %10 : vector<2x512xf32> to vector<2x512xbf16>
    %c0_9 = arith.constant 0 : index
    %c0_10 = arith.constant 0 : index
    %13 = vector.load %arg4[%c0_9, %c0_10] : memref<512x2048xbf16, #tpu.memory_space<vmem>>, vector<512x2048xbf16>
    %cst_11 = arith.constant dense<0.000000e+00> : vector<2x2048xf32>
    %14 = tpu.matmul %12, %13, %cst_11 {dimension_numbers = #tpu.dot_dimension_numbers<[1], [0], [0], [1], [0, 0, 1, 1], [], []>} : vector<2x512xbf16>, vector<512x2048xbf16>, vector<2x2048xf32> -> vector<2x2048xf32>
    %15 = arith.addf %11, %14 : vector<2x2048xf32>
    %c0_12 = arith.constant 0 : index
    %c0_13 = arith.constant 0 : index
    %16 = vector.load %arg6[%c0_12, %c0_13] : memref<2x2048xf32, #tpu.memory_space<vmem>>, vector<2x2048xf32>
    tpu.vector_store %arg6[%c0_12, %c0_13], %15 {strides = array<i32>} : memref<2x2048xf32, #tpu.memory_space<vmem>>, vector<2x2048xf32>,
    %c3_i32 = arith.constant 3 : i32
    %17 = arith.cmpi eq, %arg0, %c3_i32 : i32
    %18 = arith.extui %17 : i1 to i32
    %c0_i32_14 = arith.constant 0 : i32
    %19 = arith.cmpi ne, %18, %c0_i32_14 : i32
    scf.if %19 {
      %c0_15 = arith.constant 0 : index
      %c0_16 = arith.constant 0 : index
      %20 = vector.load %arg6[%c0_15, %c0_16] : memref<2x2048xf32, #tpu.memory_space<vmem>>, vector<2x2048xf32>
      %c0_17 = arith.constant 0 : index
      %c0_18 = arith.constant 0 : index
      %21 = vector.load %arg5[%c0_17, %c0_18] : memref<1x2048xf32, #tpu.memory_space<vmem>>, vector<1x2048xf32>
      %22 = vector.broadcast %21 : vector<1x2048xf32> to vector<2x2048xf32>
      %23 = arith.addf %20, %22 : vector<2x2048xf32>
      %c0_19 = arith.constant 0 : index
      %c0_20 = arith.constant 0 : index
      %24 = vector.load %arg6[%c0_19, %c0_20] : memref<2x2048xf32, #tpu.memory_space<vmem>>, vector<2x2048xf32>
      tpu.vector_store %arg6[%c0_19, %c0_20], %23 {strides = array<i32>} : memref<2x2048xf32, #tpu.memory_space<vmem>>, vector<2x2048xf32>,
    } else {
    }
    return
  }
  func.func @transform_0(%arg0: i32) -> (i32, i32, i32) {
    %c0_i32 = arith.constant 0 : i32
    %c0_i32_0 = arith.constant 0 : i32
    %c0_i32_1 = arith.constant 0 : i32
    %c0_i32_2 = arith.constant 0 : i32
    return %c0_i32, %c0_i32_0, %c0_i32_1 : i32, i32, i32
  }
  func.func @transform_1(%arg0: i32) -> (i32, i32) {
    %c0_i32 = arith.constant 0 : i32
    %c0_i32_0 = arith.constant 0 : i32
    return %arg0, %c0_i32 : i32, i32
  }
  func.func @transform_2(%arg0: i32) -> (i32, i32) {
    %c0_i32 = arith.constant 0 : i32
    %c0_i32_0 = arith.constant 0 : i32
    return %c0_i32, %arg0 : i32, i32
  }
  func.func @transform_3(%arg0: i32) -> (i32, i32) {
    %c0_i32 = arith.constant 0 : i32
    %c0_i32_0 = arith.constant 0 : i32
    return %arg0, %c0_i32 : i32, i32
  }
  func.func @transform_4(%arg0: i32) -> (i32, i32) {
    %c0_i32 = arith.constant 0 : i32
    %c0_i32_0 = arith.constant 0 : i32
    %c0_i32_1 = arith.constant 0 : i32
    return %c0_i32, %c0_i32_0 : i32, i32
  }
  func.func @transform_5(%arg0: i32) -> (i32, i32) {
    %c0_i32 = arith.constant 0 : i32
    %c0_i32_0 = arith.constant 0 : i32
    %c0_i32_1 = arith.constant 0 : i32
    return %c0_i32, %c0_i32_0 : i32, i32
  }
}

</mosaic_0001>

<bundles_post_ra>
// kernel: reverse_operator.1
= control target key start
LH: loop header
LB: loop body
LE: loop exit
PB: predicated region body
PF: predicated region fallthrough
CT: control target
= control target key end

     0   :  { %10 = vsyncpa [#allocation4], 0  ;;  %s10281_s18 = smov 0   ;;  %s12054_s0 = inlined_call_operand.vmem [shape: f32[2,16,2048], index: 0, kind: input, shape index: {}]   ;;  %s12055_s1 = inlined_call_operand.vmem [shape: bf16[2048,2048], index: 1, kind: input, shape index: {}]   ;;  %s12056_s2 = inlined_call_operand.vmem [shape: f32[1,2048], index: 2, kind: input, shape index: {}]   ;;  %s12057_s3 = inlined_call_operand.vmem [shape: bf16[2048,2048], index: 3, kind: input, shape index: {}]   ;;  %s12058_s4 = inlined_call_operand.vmem [shape: f32[1,2048], index: 4, kind: input, shape index: {}]   ;;  %s12059_s5 = inlined_call_operand.hbm [shape: f32[2,2048], index: 5, kind: output, shape index: {}]  }
   0x1 LB: > { %s10287_s19 = sadd.s32 4294967295, %s10243_s18   ;;  %p9126_p0 = scmp.ge.s32.totalorder %s10243_s18, 1  ;;  %s10243_s18 = sphi %s10281_s18, %s16_s18  }
   0x2   : > { %p207_p1 = scmp.lt.s32.totalorder %s10243_s18, 5 }
   0x4   : > { %p208_p2 = pnand %p9126_p0, %p207_p1 }
   0x5   : > { %s9127_s20 = sshll.u32 (!%p208_p2), %s10287_s19, 6  ;;  %s9130_s21 = sshll.u32 (!%p208_p2), %s10287_s19, 2 }
   0x6   : > { %211 = sbr.rel (%p208_p2) target bundleno = 2058 (0x80a), region = 40  ;;  %p242_p3 = scmp.lt.s32.totalorder (!%p208_p2), %s9127_s20, 255 }
   0x7   : > { %p249_p4 = scmp.lt.s32.totalorder (!%p208_p2), %s9130_s21, 15  ;;  %p9134_p5 = scmp.ne.s32.totalorder (!%p208_p2), %s10287_s19, 0 }
   0xb   : > { %s12061_s20 = smov (!%p242_p3, %s9127_s20), 255  ;;  %s12063_s21 = smov (!%p249_p4, %s9130_s21), 15 }
   0xc   : > { %s10184_s22 = sshll.u32 %s12061_s20, 6  ;;  %s10301_s28 = scalar_lea.vmem %s12056_s2, %s12063_s21 }
   0xd   : > { %s10296_s25 = scalar_lea.vmem %s12055_s1, %s10184_s22  ;;  %s10306_s6 = scalar_lea.vmem %s12057_s3, %s10184_s22 }
   0xe   : > { %263 = sbr.rel (%p9134_p5) target bundleno = 139 (0x8b), region = 44 }
  0x13   : > { %v656_v0 = vlaneseq  ;;  %v10245_v1 = vmov 1966171168   ;;  %v264_v3 = vld [vmem:[%s12054_s0] sm:$0xff]  ;;  %v10246_v5 = vmov 1935823168   ;;  %v10247_v7 = vmov 0.0  }
  0x14   : > { %v654_v2 = vunpack.c.l.s4 %v10245_v1  ;;  %v847_v6 = vunpack.c.l.s4 %v10246_v5  ;;  %1192 = vst [vmem:[#allocation3] sm:$0xff] %v10247_v7  ;;  %1193 = vst [vmem:[#allocation3 + $0x8] sm:$0xff] %v10247_v7  ;;  %v265_v8 = vld [vmem:[%s12054_s0 + $0x8] sm:$0xff]  ;;  %v266_v9 = vld [vmem:[%s12054_s0 + $0x10] sm:$0xff]  ;;  %vm1058_vm0 = vcmask 1041409  }
  0x15   : > { %v657_v4 = vshrl.u32 %v656_v0, 7  ;;  %1194 = vst [vmem:[#allocation3 + $0x10] sm:$0xff] %v10247_v7  ;;  %1195 = vst [vmem:[#allocation3 + $0x18] sm:$0xff] %v10247_v7  ;;  %v267_v10 = vld [vmem:[%s12054_s0 + $0x18] sm:$0xff]  ;;  %v268_v12 = vld [vmem:[%s12054_s0 + $0x20] sm:$0xff] }
  0x16   : > { %v655_v11 = vunpack.c.0.s8 %v654_v2  ;;  %v269_v13 = vld [vmem:[%s12054_s0 + $0x28] sm:$0xff]  ;;  %v270_v14 = vld [vmem:[%s12054_s0 + $0x30] sm:$0xff]  ;;  %v848_v15 = vunpack.c.0.s8 %v847_v6  ;;  %v271_v16 = vld [vmem:[%s12054_s0 + $0x38] sm:$0xff] }
  0x17   : > { %v280_v17 = vld [vmem:[%s12054_s0 + $0x80] sm:$0xff]  ;;  %v281_v18 = vld [vmem:[%s12054_s0 + $0x88] sm:$0xff]  ;;  %v282_v19 = vld [vmem:[%s12054_s0 + $0x90] sm:$0xff] }
  0x18   : > { %v283_v20 = vld [vmem:[%s12054_s0 + $0x98] sm:$0xff]  ;;  %v284_v21 = vld [vmem:[%s12054_s0 + $0xa0] sm:$0xff]  ;;  %v328_v22 = vadd.f32 %v280_v17, %v264_v3  ;;  %v335_v23 = vadd.f32 %v281_v18, %v265_v8  ;;  %v10348_v24 = vsub.s32 %v655_v11, %v657_v4  ;;  %v285_v25 = vld [vmem:[%s12054_s0 + $0xa8] sm:$0xff]  ;;  %v342_v28 = vadd.f32 %v282_v19, %v266_v9 }
  0x19   : > { %v286_v26 = vld [vmem:[%s12054_s0 + $0xb0] sm:$0xff]  ;;  %v287_v27 = vld [vmem:[%s12054_s0 + $0xb8] sm:$0xff]  ;;  %v349_v29 = vadd.f32 %v283_v20, %v267_v10  ;;  %v356_v30 = vadd.f32 %v284_v21, %v268_v12  ;;  %v10359_v31 = vsub.s32 %v848_v15, %v657_v4  ;;  %v363_v34 = vadd.f32 %v285_v25, %v269_v13  ;;  %v272_v60 = vld [vmem:[%s12054_s0 + $0x40] sm:$0xff] }
  0x1a   : > { %v329_v32 = vrot.slane %v328_v22, 4  ;;  %v336_v33 = vrot.slane %v335_v23, 4  ;;  %v370_v35 = vadd.f32 %v286_v26, %v270_v14  ;;  %v343_v36 = vrot.slane %v342_v28, 4  ;;  %v273_v61 = vld [vmem:[%s12054_s0 + $0x48] sm:$0xff]  ;;  %v274_v2 = vld [vmem:[%s12054_s0 + $0x50] sm:$0xff]  ;;  %v275_v3 = vld [vmem:[%s12054_s0 + $0x58] sm:$0xff] }
  0x1b   : > { %v350_v37 = vrot.slane %v349_v29, 4  ;;  %v357_v38 = vrot.slane %v356_v30, 4  ;;  %v377_v39 = vadd.f32 %v287_v27, %v271_v16  ;;  %v364_v42 = vrot.slane %v363_v34, 4  ;;  %v276_v4 = vld [vmem:[%s12054_s0 + $0x60] sm:$0xff]  ;;  %v277_v9 = vld [vmem:[%s12054_s0 + $0x68] sm:$0xff]  ;;  %v290_v16 = vld [vmem:[%s12054_s0 + $0xd0] sm:$0xff] }
  0x1c   : > { %v330_v40 = vadd.f32 %v329_v32, %v328_v22  ;;  %v337_v41 = vadd.f32 %v336_v33, %v335_v23  ;;  %v371_v43 = vrot.slane %v370_v35, 4  ;;  %v344_v44 = vadd.f32 %v343_v36, %v342_v28  ;;  %v288_v10 = vld [vmem:[%s12054_s0 + $0xc0] sm:$0xff]  ;;  %v289_v11 = vld [vmem:[%s12054_s0 + $0xc8] sm:$0xff]  ;;  %v291_v17 = vld [vmem:[%s12054_s0 + $0xd8] sm:$0xff] }
  0x1d   : > { %v351_v45 = vadd.f32 %v350_v37, %v349_v29  ;;  %v358_v46 = vadd.f32 %v357_v38, %v356_v30  ;;  %v378_v47 = vrot.slane %v377_v39, 4  ;;  %v365_v50 = vadd.f32 %v364_v42, %v363_v34  ;;  %v292_v18 = vld [vmem:[%s12054_s0 + $0xe0] sm:$0xff]  ;;  %v278_v23 = vld [vmem:[%s12054_s0 + $0x70] sm:$0xff]  ;;  %v293_v25 = vld [vmem:[%s12054_s0 + $0xe8] sm:$0xff] }
  0x1e   : > { %v331_v48 = vrot.slane %v330_v40, 2  ;;  %v338_v49 = vrot.slane %v337_v41, 2  ;;  %v372_v51 = vadd.f32 %v371_v43, %v370_v35  ;;  %v345_v52 = vrot.slane %v344_v44, 2  ;;  %v294_v26 = vld [vmem:[%s12054_s0 + $0xf0] sm:$0xff]  ;;  %v279_v32 = vld [vmem:[%s12054_s0 + $0x78] sm:$0xff] }
  0x1f   : > { %v352_v53 = vrot.slane %v351_v45, 2  ;;  %v359_v54 = vrot.slane %v358_v46, 2  ;;  %v379_v55 = vadd.f32 %v378_v47, %v377_v39  ;;  %v366_v58 = vrot.slane %v365_v50, 2  ;;  %v295_v33 = vld [vmem:[%s12054_s0 + $0xf8] sm:$0xff] }
  0x20   : > { %v332_v56 = vadd.f32 %v331_v48, %v330_v40  ;;  %v339_v57 = vadd.f32 %v338_v49, %v337_v41  ;;  %v373_v59 = vrot.slane %v372_v51, 2  ;;  %v346_v62 = vadd.f32 %v345_v52, %v344_v44 }
  0x21   : > { %v353_v63 = vadd.f32 %v352_v53, %v351_v45  ;;  %v360_v0 = vadd.f32 %v359_v54, %v358_v46  ;;  %v380_v1 = vrot.slane %v379_v55, 2  ;;  %v367_v7 = vadd.f32 %v366_v58, %v365_v50 }
  0x22   : > { %v333_v5 = vrot.slane %v332_v56, 1  ;;  %v340_v6 = vrot.slane %v339_v57, 1  ;;  %v374_v8 = vadd.f32 %v373_v59, %v372_v51  ;;  %v347_v12 = vrot.slane %v346_v62, 1 }
  0x23   : > { %v354_v13 = vrot.slane %v353_v63, 1  ;;  %v361_v14 = vrot.slane %v360_v0, 1  ;;  %v381_v15 = vadd.f32 %v380_v1, %v379_v55  ;;  %v368_v21 = vrot.slane %v367_v7, 1 }
  0x24   : > { %v10394_v19 = vadd.f32 %v333_v5, %v332_v56  ;;  %v10396_v20 = vadd.f32 %v340_v6, %v339_v57  ;;  %v375_v22 = vrot.slane %v374_v8, 1  ;;  %v10407_v27 = vadd.f32 %v347_v12, %v346_v62  ;;  %v296_v6 = vld [vmem:[%s12054_s0 + $0x100] sm:$0xff]  ;;  %v298_v12 = vld [vmem:[%s12054_s0 + $0x110] sm:$0xff] }
  0x25   : > { %v10409_v28 = vadd.f32 %v354_v13, %v353_v63  ;;  %v10411_v29 = vadd.f32 %v361_v14, %v360_v0  ;;  %v382_v30 = vrot.slane %v381_v15, 1  ;;  %v10419_v34 = vadd.f32 %v368_v21, %v367_v7  ;;  %v297_v7 = vld [vmem:[%s12054_s0 + $0x108] sm:$0xff]  ;;  %v299_v13 = vld [vmem:[%s12054_s0 + $0x118] sm:$0xff]  ;;  %v300_v14 = vld [vmem:[%s12054_s0 + $0x120] sm:$0xff] }
  0x26   : > { %v10421_v35 = vadd.f32 %v375_v22, %v374_v8  ;;  %v384_v36 = vadd.f32 %v288_v10, %v272_v60  ;;  %v391_v37 = vadd.f32 %v289_v11, %v273_v61  ;;  %v398_v39 = vadd.f32 %v290_v16, %v274_v2  ;;  %v301_v21 = vld [vmem:[%s12054_s0 + $0x128] sm:$0xff]  ;;  %v312_v22 = vld [vmem:[%s12054_s0 + $0x180] sm:$0xff] }
  0x27   : > { %v10423_v38 = vadd.f32 %v382_v30, %v381_v15  ;;  %v405_v40 = vadd.f32 %v291_v17, %v275_v3  ;;  %v412_v41 = vadd.f32 %v292_v18, %v276_v4  ;;  %v419_v44 = vadd.f32 %v293_v25, %v277_v9 }
  0x28   : > { %v385_v42 = vrot.slane %v384_v36, 4  ;;  %v392_v43 = vrot.slane %v391_v37, 4  ;;  %v426_v45 = vadd.f32 %v294_v26, %v278_v23  ;;  %v399_v46 = vrot.slane %v398_v39, 4  ;;  %v313_v23 = vld [vmem:[%s12054_s0 + $0x188] sm:$0xff] }
  0x29   : > { %v406_v47 = vrot.slane %v405_v40, 4  ;;  %v413_v48 = vrot.slane %v412_v41, 4  ;;  %v433_v49 = vadd.f32 %v295_v33, %v279_v32  ;;  %v420_v52 = vrot.slane %v419_v44, 4  ;;  %v314_v33 = vld [vmem:[%s12054_s0 + $0x190] sm:$0xff] }
  0x2a   : > { %v386_v50 = vadd.f32 %v385_v42, %v384_v36  ;;  %v393_v51 = vadd.f32 %v392_v43, %v391_v37  ;;  %v427_v53 = vrot.slane %v426_v45, 4  ;;  %v400_v54 = vadd.f32 %v399_v46, %v398_v39  ;;  %v315_v36 = vld [vmem:[%s12054_s0 + $0x198] sm:$0xff]  ;;  %v316_v37 = vld [vmem:[%s12054_s0 + $0x1a0] sm:$0xff]  ;;  %v302_v43 = vld [vmem:[%s12054_s0 + $0x130] sm:$0xff] }
  0x2b   : > { %v407_v55 = vadd.f32 %v406_v47, %v405_v40  ;;  %v414_v56 = vadd.f32 %v413_v48, %v412_v41  ;;  %v434_v57 = vrot.slane %v433_v49, 4  ;;  %v421_v60 = vadd.f32 %v420_v52, %v419_v44  ;;  %v317_v44 = vld [vmem:[%s12054_s0 + $0x1a8] sm:$0xff] }
  0x2c   : > { %v387_v58 = vrot.slane %v386_v50, 2  ;;  %v394_v59 = vrot.slane %v393_v51, 2  ;;  %v428_v61 = vadd.f32 %v427_v53, %v426_v45  ;;  %v401_v62 = vrot.slane %v400_v54, 2  ;;  %v318_v45 = vld [vmem:[%s12054_s0 + $0x1b0] sm:$0xff] }
  0x2d   : > { %v408_v63 = vrot.slane %v407_v55, 2  ;;  %v415_v0 = vrot.slane %v414_v56, 2  ;;  %v435_v1 = vadd.f32 %v434_v57, %v433_v49  ;;  %v422_v4 = vrot.slane %v421_v60, 2 }
  0x2e   : > { %v388_v2 = vadd.f32 %v387_v58, %v386_v50  ;;  %v395_v3 = vadd.f32 %v394_v59, %v393_v51  ;;  %v429_v5 = vrot.slane %v428_v61, 2  ;;  %v402_v8 = vadd.f32 %v401_v62, %v400_v54  ;;  %v303_v50 = vld [vmem:[%s12054_s0 + $0x138] sm:$0xff] }
  0x2f   : > { %v409_v9 = vadd.f32 %v408_v63, %v407_v55  ;;  %v416_v10 = vadd.f32 %v415_v0, %v414_v56  ;;  %v436_v11 = vrot.slane %v435_v1, 2  ;;  %v423_v17 = vadd.f32 %v422_v4, %v421_v60  ;;  %v319_v51 = vld [vmem:[%s12054_s0 + $0x1b8] sm:$0xff] }
  0x30   : > { %v389_v15 = vrot.slane %v388_v2, 1  ;;  %v396_v16 = vrot.slane %v395_v3, 1  ;;  %v430_v18 = vadd.f32 %v429_v5, %v428_v61  ;;  %v403_v25 = vrot.slane %v402_v8, 1 }
  0x31   : > { %v410_v26 = vrot.slane %v409_v9, 1  ;;  %v417_v30 = vrot.slane %v416_v10, 1  ;;  %v437_v32 = vadd.f32 %v436_v11, %v435_v1  ;;  %v424_v41 = vrot.slane %v423_v17, 1 }
  0x32   : > { %v10458_v39 = vadd.f32 %v389_v15, %v388_v2  ;;  %v10460_v40 = vadd.f32 %v396_v16, %v395_v3  ;;  %v431_v42 = vrot.slane %v430_v18, 1  ;;  %v10471_v46 = vadd.f32 %v403_v25, %v402_v8 }
  0x33   : > { %v10473_v47 = vadd.f32 %v410_v26, %v409_v9  ;;  %v10475_v48 = vadd.f32 %v417_v30, %v416_v10  ;;  %v438_v49 = vrot.slane %v437_v32, 1  ;;  %v10483_v52 = vadd.f32 %v424_v41, %v423_v17  ;;  %v304_v30 = vld [vmem:[%s12054_s0 + $0x140] sm:$0xff] }
  0x34   : > { %v10485_v53 = vadd.f32 %v431_v42, %v430_v18  ;;  %v440_v54 = vadd.f32 %v312_v22, %v296_v6  ;;  %v447_v55 = vadd.f32 %v313_v23, %v297_v7  ;;  %v454_v57 = vadd.f32 %v314_v33, %v298_v12  ;;  %v306_v42 = vld [vmem:[%s12054_s0 + $0x150] sm:$0xff] }
  0x35   : > { %v10487_v56 = vadd.f32 %v438_v49, %v437_v32  ;;  %v461_v58 = vadd.f32 %v315_v36, %v299_v13  ;;  %v468_v59 = vadd.f32 %v316_v37, %v300_v14  ;;  %v475_v62 = vadd.f32 %v317_v44, %v301_v21  ;;  %v305_v32 = vld [vmem:[%s12054_s0 + $0x148] sm:$0xff]  ;;  %v308_v44 = vld [vmem:[%s12054_s0 + $0x160] sm:$0xff] }
  0x36   : > { %v441_v60 = vrot.slane %v440_v54, 4  ;;  %v448_v61 = vrot.slane %v447_v55, 4  ;;  %v482_v63 = vadd.f32 %v318_v45, %v302_v43  ;;  %v455_v0 = vrot.slane %v454_v57, 4  ;;  %v307_v43 = vld [vmem:[%s12054_s0 + $0x158] sm:$0xff] }
  0x37   : > { %v462_v1 = vrot.slane %v461_v58, 4  ;;  %v469_v2 = vrot.slane %v468_v59, 4  ;;  %v489_v3 = vadd.f32 %v319_v51, %v303_v50  ;;  %v476_v8 = vrot.slane %v475_v62, 4 }
  0x38   : > { %v442_v4 = vadd.f32 %v441_v60, %v440_v54  ;;  %v449_v5 = vadd.f32 %v448_v61, %v447_v55  ;;  %v483_v9 = vrot.slane %v482_v63, 4  ;;  %v456_v10 = vadd.f32 %v455_v0, %v454_v57  ;;  %v309_v54 = vld [vmem:[%s12054_s0 + $0x168] sm:$0xff]  ;;  %v320_v55 = vld [vmem:[%s12054_s0 + $0x1c0] sm:$0xff] }
  0x39   : > { %v463_v6 = vadd.f32 %v462_v1, %v461_v58  ;;  %v470_v7 = vadd.f32 %v469_v2, %v468_v59  ;;  %v490_v11 = vrot.slane %v489_v3, 4  ;;  %v477_v13 = vadd.f32 %v476_v8, %v475_v62  ;;  %v321_v57 = vld [vmem:[%s12054_s0 + $0x1c8] sm:$0xff]  ;;  %v322_v62 = vld [vmem:[%s12054_s0 + $0x1d0] sm:$0xff]  ;;  %v324_v0 = vld [vmem:[%s12054_s0 + $0x1e0] sm:$0xff] }
  0x3a   : > { %v443_v15 = vrot.slane %v442_v4, 2  ;;  %v450_v12 = vrot.slane %v449_v5, 2  ;;  %v484_v14 = vadd.f32 %v483_v9, %v482_v63  ;;  %v457_v16 = vrot.slane %v456_v10, 2  ;;  %v323_v63 = vld [vmem:[%s12054_s0 + $0x1d8] sm:$0xff]  ;;  %v325_v8 = vld [vmem:[%s12054_s0 + $0x1e8] sm:$0xff]  ;;  %v326_v9 = vld [vmem:[%s12054_s0 + $0x1f0] sm:$0xff] }
  0x3b   : > { %v464_v17 = vrot.slane %v463_v6, 2  ;;  %v471_v18 = vrot.slane %v470_v7, 2  ;;  %v491_v21 = vadd.f32 %v490_v11, %v489_v3  ;;  %v478_v25 = vrot.slane %v477_v13, 2 }
  0x3c   : > { %v444_v22 = vadd.f32 %v443_v15, %v442_v4  ;;  %v451_v23 = vadd.f32 %v450_v12, %v449_v5  ;;  %v485_v26 = vrot.slane %v484_v14, 2  ;;  %v458_v33 = vadd.f32 %v457_v16, %v456_v10  ;;  %v310_v5 = vld [vmem:[%s12054_s0 + $0x170] sm:$0xff]  ;;  %v311_v15 = vld [vmem:[%s12054_s0 + $0x178] sm:$0xff] }
  0x3d   : > { %v465_v36 = vadd.f32 %v464_v17, %v463_v6  ;;  %v472_v37 = vadd.f32 %v471_v18, %v470_v7  ;;  %v492_v41 = vrot.slane %v491_v21, 2  ;;  %v479_v50 = vadd.f32 %v478_v25, %v477_v13  ;;  %v327_v12 = vld [vmem:[%s12054_s0 + $0x1f8] sm:$0xff] }
  0x3e   : > { %v445_v45 = vrot.slane %v444_v22, 1  ;;  %v452_v49 = vrot.slane %v451_v23, 1  ;;  %v486_v51 = vadd.f32 %v485_v26, %v484_v14  ;;  %v459_v58 = vrot.slane %v458_v33, 1 }
  0x3f   : > { %v466_v59 = vrot.slane %v465_v36, 1  ;;  %v473_v60 = vrot.slane %v472_v37, 1  ;;  %v493_v61 = vadd.f32 %v492_v41, %v491_v21  ;;  %v480_v3 = vrot.slane %v479_v50, 1 }
  0x40   : > { %v10522_v1 = vadd.f32 %v445_v45, %v444_v22  ;;  %v10524_v2 = vadd.f32 %v452_v49, %v451_v23  ;;  %v487_v4 = vrot.slane %v486_v51, 1  ;;  %v10535_v10 = vadd.f32 %v459_v58, %v458_v33 }
  0x41   : > { %v10537_v6 = vadd.f32 %v466_v59, %v465_v36  ;;  %v10539_v7 = vadd.f32 %v473_v60, %v472_v37  ;;  %v494_v11 = vrot.slane %v493_v61, 1  ;;  %v10547_v13 = vadd.f32 %v480_v3, %v479_v50 }
  0x42   : > { %v10549_v14 = vadd.f32 %v487_v4, %v486_v51  ;;  %v496_v16 = vadd.f32 %v320_v55, %v304_v30  ;;  %v503_v17 = vadd.f32 %v321_v57, %v305_v32  ;;  %v510_v21 = vadd.f32 %v322_v62, %v306_v42 }
  0x43   : > { %v10551_v18 = vadd.f32 %v494_v11, %v493_v61  ;;  %v517_v22 = vadd.f32 %v323_v63, %v307_v43  ;;  %v524_v23 = vadd.f32 %v324_v0, %v308_v44  ;;  %v531_v33 = vadd.f32 %v325_v8, %v309_v54 }
  0x44   : > { %v497_v25 = vrot.slane %v496_v16, 4  ;;  %v504_v26 = vrot.slane %v503_v17, 4  ;;  %v538_v36 = vadd.f32 %v326_v9, %v310_v5  ;;  %v511_v37 = vrot.slane %v510_v21, 4 }
  0x45   : > { %v518_v41 = vrot.slane %v517_v22, 4  ;;  %v525_v45 = vrot.slane %v524_v23, 4  ;;  %v545_v49 = vadd.f32 %v327_v12, %v311_v15  ;;  %v532_v59 = vrot.slane %v531_v33, 4 }
  0x46   : > { %v498_v58 = vadd.f32 %v497_v25, %v496_v16  ;;  %v505_v50 = vadd.f32 %v504_v26, %v503_v17  ;;  %v539_v51 = vrot.slane %v538_v36, 4  ;;  %v512_v60 = vadd.f32 %v511_v37, %v510_v21 }
  0x47   : > { %v519_v30 = vadd.f32 %v518_v41, %v517_v22  ;;  %v526_v32 = vadd.f32 %v525_v45, %v524_v23  ;;  %v546_v55 = vrot.slane %v545_v49, 4  ;;  %v533_v43 = vadd.f32 %v532_v59, %v531_v33 }
  0x48   : > { %v499_v57 = vrot.slane %v498_v58, 2  ;;  %v506_v42 = vrot.slane %v505_v50, 2  ;;  %v540_v44 = vadd.f32 %v539_v51, %v538_v36  ;;  %v513_v61 = vrot.slane %v512_v60, 2 }
  0x49   : > { %v520_v62 = vrot.slane %v519_v30, 2  ;;  %v527_v54 = vrot.slane %v526_v32, 2  ;;  %v547_v63 = vadd.f32 %v546_v55, %v545_v49  ;;  %v534_v4 = vrot.slane %v533_v43, 2 }
  0x4a   : > { %v500_v0 = vadd.f32 %v499_v57, %v498_v58  ;;  %v507_v3 = vadd.f32 %v506_v42, %v505_v50  ;;  %v541_v5 = vrot.slane %v540_v44, 2  ;;  %v514_v8 = vadd.f32 %v513_v61, %v512_v60 }
  0x4b   : > { %v521_v9 = vadd.f32 %v520_v62, %v519_v30  ;;  %v528_v11 = vadd.f32 %v527_v54, %v526_v32  ;;  %v548_v15 = vrot.slane %v547_v63, 2  ;;  %v535_v17 = vadd.f32 %v534_v4, %v533_v43 }
  0x4c   : > { %v501_v12 = vrot.slane %v500_v0, 1  ;;  %v508_v16 = vrot.slane %v507_v3, 1  ;;  %v542_v21 = vadd.f32 %v541_v5, %v540_v44  ;;  %v515_v22 = vrot.slane %v514_v8, 1 }
  0x4d   : > { %v522_v23 = vrot.slane %v521_v9, 1  ;;  %v529_v25 = vrot.slane %v528_v11, 1  ;;  %v549_v26 = vadd.f32 %v548_v15, %v547_v63  ;;  %v536_v37 = vrot.slane %v535_v17, 1 }
  0x4e   : > { %v502_v33 = vadd.f32 %v501_v12, %v500_v0  ;;  %v509_v36 = vadd.f32 %v508_v16, %v507_v3  ;;  %v543_v41 = vrot.slane %v542_v21, 1  ;;  %v516_v45 = vadd.f32 %v515_v22, %v514_v8 }
  0x4f   : > { %v523_v49 = vadd.f32 %v522_v23, %v521_v9  ;;  %v530_v58 = vadd.f32 %v529_v25, %v528_v11  ;;  %v550_v50 = vrot.slane %v549_v26, 1  ;;  %v537_v59 = vadd.f32 %v536_v37, %v535_v17 }
  0x50   : > { %v544_v51 = vadd.f32 %v543_v41, %v542_v21  ;;  %v553_v60 = vmul.f32 0.0625, %v10394_v19  ;;  %v554_v30 = vmul.f32 0.0625, %v10396_v20  ;;  %v555_v55 = vmul.f32 0.0625, %v10407_v27 }
  0x51   : > { %v551_v32 = vadd.f32 %v550_v50, %v549_v26  ;;  %v556_v57 = vmul.f32 0.0625, %v10409_v28  ;;  %v557_v42 = vmul.f32 0.0625, %v10411_v29  ;;  %v558_v43 = vmul.f32 0.0625, %v10419_v34 }
  0x52   : > { %v559_v44 = vmul.f32 0.0625, %v10421_v35  ;;  %v560_v61 = vmul.f32 0.0625, %v10423_v38  ;;  %v561_v62 = vmul.f32 0.0625, %v10458_v39  ;;  %v562_v54 = vmul.f32 0.0625, %v10460_v40 }
  0x53   : > { %v563_v19 = vmul.f32 0.0625, %v10471_v46  ;;  %v564_v20 = vmul.f32 0.0625, %v10473_v47  ;;  %v565_v27 = vmul.f32 0.0625, %v10475_v48  ;;  %v566_v28 = vmul.f32 0.0625, %v10483_v52 }
  0x54   : > { %v567_v29 = vmul.f32 0.0625, %v10485_v53  ;;  %v568_v34 = vmul.f32 0.0625, %v10487_v56  ;;  %v569_v35 = vmul.f32 0.0625, %v10522_v1  ;;  %v570_v38 = vmul.f32 0.0625, %v10524_v2 }
  0x55   : > { %v571_v39 = vmul.f32 0.0625, %v10535_v10  ;;  %v572_v40 = vmul.f32 0.0625, %v10537_v6  ;;  %v573_v46 = vmul.f32 0.0625, %v10539_v7  ;;  %v574_v47 = vmul.f32 0.0625, %v10547_v13 }
  0x56   : > { %v575_v48 = vmul.f32 0.0625, %v10549_v14  ;;  %v576_v52 = vmul.f32 0.0625, %v10551_v18  ;;  %v577_v63 = vmul.f32 0.0625, %v502_v33  ;;  %v578_v53 = vmul.f32 0.0625, %v509_v36 }
  0x57   : > { %v579_v0 = vmul.f32 0.0625, %v516_v45  ;;  %v580_v56 = vmul.f32 0.0625, %v523_v49  ;;  %v581_v3 = vmul.f32 0.0625, %v530_v58  ;;  %v582_v1 = vmul.f32 0.0625, %v537_v59 }
  0x58   : > { %v583_v4 = vmul.f32 0.0625, %v544_v51  ;;  %v584_v2 = vmul.f32 0.0625, %v551_v32  ;;  %v9135_v5 = vpack.c.bf16 %v554_v30, %v553_v60  ;;  %v9136_v10 = vpack.c.bf16 %v556_v57, %v555_v55 }
  0x59   : > { %v9137_v8 = vpack.c.bf16 %v558_v43, %v557_v42  ;;  %v9138_v6 = vpack.c.bf16 %v560_v61, %v559_v44  ;;  %v9139_v9 = vpack.c.bf16 %v562_v54, %v561_v62  ;;  %v9140_v13 = vpack.c.bf16 %v564_v20, %v563_v19 }
  0x5a   : > { %v659_v7 = vrot.slane %v9135_v5, %v10348_v24  ;;  %v9141_v11 = vpack.c.bf16 %v566_v28, %v565_v27  ;;  %v9142_v14 = vpack.c.bf16 %v568_v34, %v567_v29  ;;  %v666_v18 = vrot.slane %v9136_v10, %v10348_v24 }
  0x5b   : > { %v673_v15 = vrot.slane %v9137_v8, %v10348_v24  ;;  %v680_v12 = vrot.slane %v9138_v6, %v10348_v24  ;;  %v708_v16 = vrot.slane %v9139_v9, %v10348_v24  ;;  %v715_v17 = vrot.slane %v9140_v13, %v10348_v24 }
  0x5c   : > { %v722_v21 = vrot.slane %v9141_v11, %v10348_v24  ;;  %v729_v22 = vrot.slane %v9142_v14, %v10348_v24  ;;  %v9143_v23 = vpack.c.bf16 %v570_v38, %v569_v35  ;;  %v681_v25 = vcombine.low %v659_v7, %v666_v18 }
  0x5d   : > { %v682_v26 = vcombine.low %v673_v15, %v680_v12  ;;  %v9144_v33 = vpack.c.bf16 %v572_v40, %v571_v39  ;;  %v9145_v36 = vpack.c.bf16 %v574_v47, %v573_v46  ;;  %v730_v37 = vcombine.low %v708_v16, %v715_v17 }
  0x5e   : > { %v731_v41 = vcombine.low %v722_v21, %v729_v22  ;;  %v9146_v45 = vpack.c.bf16 %v576_v52, %v575_v48  ;;  %v757_v49 = vrot.slane %v9143_v23, %v10348_v24  ;;  %v689_v58 = vrot.slane %v681_v25, %v10348_v24 }
  0x5f   : > { %v696_v50 = vrot.slane %v682_v26, %v10348_v24  ;;  %v764_v59 = vrot.slane %v9144_v33, %v10348_v24  ;;  %v771_v51 = vrot.slane %v9145_v36, %v10348_v24  ;;  %v738_v60 = vrot.slane %v730_v37, %v10348_v24 }
  0x60   : > { %v745_v30 = vrot.slane %v731_v41, %v10348_v24  ;;  %v778_v32 = vrot.slane %v9146_v45, %v10348_v24  ;;  %v9147_v55 = vpack.c.bf16 %v578_v53, %v577_v63  ;;  %v9148_v43 = vpack.c.bf16 %v580_v56, %v579_v0 }
  0x61   : > { %v697_v57 = vcombine.low %v689_v58, %v696_v50  ;;  %v779_v42 = vcombine.low %v757_v49, %v764_v59  ;;  %v9149_v44 = vpack.c.bf16 %v582_v1, %v581_v3  ;;  %v9150_v54 = vpack.c.bf16 %v584_v2, %v583_v4 }
  0x62   : > { %v746_v61 = vcombine.low %v738_v60, %v745_v30  ;;  %v780_v62 = vcombine.low %v771_v51, %v778_v32  ;;  %v806_v19 = vrot.slane %v9147_v55, %v10348_v24  ;;  %v813_v27 = vrot.slane %v9148_v43, %v10348_v24 }
  0x63   : > { %v787_v20 = vrot.slane %v779_v42, %v10348_v24  ;;  %v820_v28 = vrot.slane %v9149_v44, %v10348_v24  ;;  %v9151_v29 = vcombine.low %v696_v50, %v696_v50  ;;  %v827_v35 = vrot.slane %v9150_v54, %v10348_v24 }
  0x64   : > { %v794_v34 = vrot.slane %v780_v62, %v10348_v24  ;;  %v852_v38 = vrot.slane %v697_v57, %v10359_v31  ;;  %v9152_v39 = vcombine.low %v745_v30, %v745_v30  ;;  %v828_v40 = vcombine.low %v806_v19, %v813_v27 }
  0x65   : > { %v859_v46 = vrot.slane %v9151_v29, %v10359_v31  ;;  %v897_v47 = vrot.slane %v746_v61, %v10359_v31  ;;  %v829_v52 = vcombine.low %v820_v28, %v827_v35 }
  0x66   : > { %v795_v48 = vcombine.low %v787_v20, %v794_v34  ;;  %v860_v63 = vcombine.high %v852_v38, %v852_v38  ;;  %v10603_v53 = vrot.slane %v852_v38, %v10359_v31  ;;  %v836_v0 = vrot.slane %v828_v40, %v10348_v24 }
  0x67   : > { %v861_v56 = vcombine.high %v859_v46, %v859_v46  ;;  %v10607_v3 = vrot.slane %v859_v46, %v10359_v31  ;;  %v904_v1 = vrot.slane %v9152_v39, %v10359_v31  ;;  %v843_v4 = vrot.slane %v829_v52, %v10348_v24 }
  0x68   : > { %v10612_v2 = vrot.slane %v860_v63, %v10359_v31  ;;  %v905_v5 = vcombine.high %v897_v47, %v897_v47  ;;  %v10615_v10 = vrot.slane %v897_v47, %v10359_v31  ;;  %v9153_v7 = vcombine.low %v794_v34, %v794_v34 }
  0x69   : > { %v10618_v8 = vrot.slane %v861_v56, %v10359_v31  ;;  %v906_v6 = vcombine.high %v904_v1, %v904_v1  ;;  %v10621_v9 = vrot.slane %v904_v1, %v10359_v31  ;;  %v844_v13 = vcombine.low %v836_v0, %v843_v4 }
  0x6a   : > { %v10624_v11 = vrot.slane %v905_v5, %v10359_v31  ;;  %v942_v14 = vrot.slane %v795_v48, %v10359_v31  ;;  %v9154_v18 = vcombine.low %v843_v4, %v843_v4  ;;  %v949_v12 = vrot.slane %v9153_v7, %v10359_v31 }
  0x6b   : > { %v10628_v15 = vrot.slane %v906_v6, %v10359_v31  ;;  %v1025_v16 = vunpack.c.l.b16 %v10603_v53  ;;  %v1026_v17 = vunpack.c.h.b16 %v10603_v53  ;;  %v987_v23 = vrot.slane %v844_v13, %v10359_v31 }
  0x6c   : > { %v950_v21 = vcombine.high %v942_v14, %v942_v14  ;;  %v958_v22 = vrot.slane %v942_v14, %v10359_v31  ;;  %v994_v25 = vrot.slane %v9154_v18, %v10359_v31  ;;  %v951_v26 = vcombine.high %v949_v12, %v949_v12 }
  0x6d   : > { %v972_v33 = vrot.slane %v949_v12, %v10359_v31  ;;  %v1027_v36 = vunpack.c.l.b16 %v10612_v2  ;;  %v1028_v37 = vunpack.c.h.b16 %v10612_v2  ;;  %v995_v45 = vcombine.high %v987_v23, %v987_v23 }
  0x6e   : > { %v965_v41 = vrot.slane %v950_v21, %v10359_v31  ;;  %v996_v49 = vcombine.high %v994_v25, %v994_v25  ;;  %v1003_v58 = vrot.slane %v987_v23, %v10359_v31  ;;  %v979_v50 = vrot.slane %v951_v26, %v10359_v31 }
  0x6f   : > { %v1017_v59 = vrot.slane %v994_v25, %v10359_v31  ;;  %v1029_v51 = vunpack.c.l.b16 %v10607_v3  ;;  %v1030_v60 = vunpack.c.h.b16 %v10607_v3  ;;  %v1010_v30 = vrot.slane %v995_v45, %v10359_v31 }
  0x70   : > { %v1024_v32 = vrot.slane %v996_v49, %v10359_v31  ;;  %v1031_v55 = vunpack.c.l.b16 %v10618_v8  ;;  %v1032_v57 = vunpack.c.h.b16 %v10618_v8  ;;  %v1033_v42 = vunpack.c.l.b16 %v10615_v10 }
  0x71   : > { %v1034_v43 = vunpack.c.h.b16 %v10615_v10  ;;  %v1035_v44 = vunpack.c.l.b16 %v10624_v11  ;;  %v1036_v61 = vunpack.c.h.b16 %v10624_v11  ;;  %v1037_v62 = vunpack.c.l.b16 %v10621_v9 }
  0x72   : > { %v1038_v54 = vunpack.c.h.b16 %v10621_v9  ;;  %v1039_v19 = vunpack.c.l.b16 %v10628_v15  ;;  %v1040_v31 = vunpack.c.h.b16 %v10628_v15  ;;  %v1041_v20 = vunpack.c.l.b16 %v958_v22 }
  0x73   : > { %v1042_v27 = vunpack.c.h.b16 %v958_v22  ;;  %v1043_v28 = vunpack.c.l.b16 %v965_v41  ;;  %v1044_v29 = vunpack.c.h.b16 %v965_v41  ;;  %v1045_v34 = vunpack.c.l.b16 %v972_v33 }
  0x74   : > { %v1046_v35 = vunpack.c.h.b16 %v972_v33  ;;  %v1047_v38 = vunpack.c.l.b16 %v979_v50  ;;  %v1048_v39 = vunpack.c.h.b16 %v979_v50  ;;  %v1049_v40 = vunpack.c.l.b16 %v1003_v58 }
  0x75   : > { %v1050_v46 = vunpack.c.h.b16 %v1003_v58  ;;  %v1051_v47 = vunpack.c.l.b16 %v1010_v30  ;;  %v1052_v48 = vunpack.c.h.b16 %v1010_v30  ;;  %v1053_v52 = vunpack.c.l.b16 %v1017_v59 }
  0x76   : > { %v1054_v63 = vunpack.c.h.b16 %v1017_v59  ;;  %v1055_v53 = vunpack.c.l.b16 %v1024_v32  ;;  %v1056_v0 = vunpack.c.h.b16 %v1024_v32  ;;  %v1057_v56 = vrot.slane %v1041_v20, 7 }
  0x77   : > { %v1060_v3 = vrot.slane %v1042_v27, 7  ;;  %v1062_v1 = vrot.slane %v1043_v28, 7  ;;  %v1064_v4 = vrot.slane %v1044_v29, 7  ;;  %v1066_v2 = vrot.slane %v1045_v34, 7 }
  0x78   : > { %v1068_v5 = vrot.slane %v1046_v35, 7  ;;  %v1070_v10 = vrot.slane %v1047_v38, 7  ;;  %v1072_v8 = vrot.slane %v1048_v39, 7  ;;  %v1059_v6 = vsel %vm1058_vm0, %v1057_v56, %v1025_v16 }
  0x79   : > { %v1061_v9 = vsel %vm1058_vm0, %v1060_v3, %v1026_v17  ;;  %v1063_v7 = vsel %vm1058_vm0, %v1062_v1, %v1027_v36  ;;  %v1065_v13 = vsel %vm1058_vm0, %v1064_v4, %v1028_v37  ;;  %v1067_v11 = vsel %vm1058_vm0, %v1066_v2, %v1029_v51 }
  0x7a   : > { %v1069_v14 = vsel %vm1058_vm0, %v1068_v5, %v1030_v60  ;;  %v1071_v18 = vsel %vm1058_vm0, %v1070_v10, %v1031_v55  ;;  %v1073_v15 = vsel %vm1058_vm0, %v1072_v8, %v1032_v57  ;;  %v1074_v12 = vrot.slane %v1049_v40, 7 }
  0x7b   : > { %v1076_v21 = vrot.slane %v1050_v46, 7  ;;  %v1078_v22 = vrot.slane %v1051_v47, 7  ;;  %v1080_v23 = vrot.slane %v1052_v48, 7  ;;  %v1082_v25 = vrot.slane %v1053_v52, 7 }
  0x7c   : > { %v1084_v16 = vrot.slane %v1054_v63, 7  ;;  %v1086_v26 = vrot.slane %v1055_v53, 7  ;;  %v1088_v17 = vrot.slane %v1056_v0, 7  ;;  %v1075_v33 = vsel %vm1058_vm0, %v1074_v12, %v1033_v42 }
  0x7d   : > { %v1077_v36 = vsel %vm1058_vm0, %v1076_v21, %v1034_v43  ;;  %v1079_v37 = vsel %vm1058_vm0, %v1078_v22, %v1035_v44  ;;  %v1081_v41 = vsel %vm1058_vm0, %v1080_v23, %v1036_v61  ;;  %v1083_v45 = vsel %vm1058_vm0, %v1082_v25, %v1037_v62 }
  0x7e   : > { %v1085_v49 = vsel %vm1058_vm0, %v1084_v16, %v1038_v54  ;;  %v1087_v58 = vsel %vm1058_vm0, %v1086_v26, %v1039_v19  ;;  %v1089_v50 = vsel %vm1058_vm0, %v1088_v17, %v1040_v31  ;;  %v1090_v59 = vpack.c.b16 %v1061_v9, %v1059_v6 }
  0x7f   : > { %v1091_v51 = vpack.c.b16 %v1065_v13, %v1063_v7  ;;  %v1092_v60 = vpack.c.b16 %v1069_v14, %v1067_v11  ;;  %v1093_v30 = vpack.c.b16 %v1073_v15, %v1071_v18  ;;  %v1094_v32 = vpack.c.b16 %v1077_v36, %v1075_v33 }
  0x80   : > { %v1095_v55 = vpack.c.b16 %v1081_v41, %v1079_v37  ;;  %v1096_v57 = vpack.c.b16 %v1085_v49, %v1083_v45  ;;  %v1097_v42 = vpack.c.b16 %v1089_v50, %v1087_v58  ;;  %v1104_v43 = vrot.slane %v1090_v59, %v10348_v24 }
  0x81   : > { %v1111_v44 = vrot.slane %v1091_v51, %v10348_v24  ;;  %v1118_v61 = vrot.slane %v1092_v60, %v10348_v24  ;;  %v1125_v62 = vrot.slane %v1093_v30, %v10348_v24  ;;  %v1149_v54 = vrot.slane %v1094_v32, %v10348_v24 }
  0x82   : > { %v1156_v19 = vrot.slane %v1095_v55, %v10348_v24  ;;  %v1163_v31 = vrot.slane %v1096_v57, %v10348_v24  ;;  %v1170_v20 = vrot.slane %v1097_v42, %v10348_v24 }
  0x83   : > { %v1126_v27 = vcombine.low %v1104_v43, %v1111_v44  ;;  %v1127_v28 = vcombine.low %v1118_v61, %v1125_v62 }
  0x84   : > { %v1171_v29 = vcombine.low %v1149_v54, %v1156_v19  ;;  %v1172_v34 = vcombine.low %v1163_v31, %v1170_v20 }
  0x85   : > { %v1134_v35 = vrot.slane %v1126_v27, %v10348_v24  ;;  %v1141_v38 = vrot.slane %v1127_v28, %v10348_v24 }
  0x86   : > { %v1179_v39 = vrot.slane %v1171_v29, %v10348_v24  ;;  %v1186_v40 = vrot.slane %v1172_v34, %v10348_v24 }
  0x87   : > { %v1142_v46 = vcombine.low %v1134_v35, %v1141_v38 }
  0x88   : > { %v1187_v47 = vcombine.low %v1179_v39, %v1186_v40 }
  0x89   : > { %1190 = vst [vmem:[#allocation2] sm:$0xff] %v1142_v46 }
  0x8a   : > { %1191 = vst [vmem:[#allocation2 + $0x8] sm:$0xff] %v1187_v47 }
  0x8b PF: > { %v1310_v48 = vld [vmem:[%s10296_s25 + $0x380] sm:$0xff]  ;;  %v1311_v63 = vld [vmem:[%s10296_s25 + $0x388] sm:$0xff]  ;;  %v1712_v12 = vlaneseq  ;;  %v10248_v21 = vmov 1966171168   ;;  %p10179_p6 = scmp.ne.s32.totalorder %s10287_s19, 3 }
  0x8c   : > { %v1318_v52 = vld [vmem:[%s10296_s25 + $0x3c0] sm:$0xff]  ;;  %v1319_v0 = vld [vmem:[%s10296_s25 + $0x3c8] sm:$0xff]  ;;  %v1736_v22 = vunpack.c.l.s4 %v10248_v21 }
  0x8d   : > { %v9268_v53 = vcombine.high %v1310_v48, %v1318_v52  ;;  %v9267_v24 = vcombine.low %v1310_v48, %v1318_v52  ;;  %v1294_v56 = vld [vmem:[%s10296_s25 + $0x300] sm:$0xff]  ;;  %v9270_v1 = vcombine.high %v1311_v63, %v1319_v0  ;;  %v9269_v4 = vcombine.low %v1311_v63, %v1319_v0  ;;  %v1295_v5 = vld [vmem:[%s10296_s25 + $0x308] sm:$0xff] }
  0x8e   : > { %v1302_v3 = vld [vmem:[%s10296_s25 + $0x340] sm:$0xff]  ;;  %v1303_v10 = vld [vmem:[%s10296_s25 + $0x348] sm:$0xff]  ;;  %v10699_v16 = vshrl.u32 %v1712_v12, 7  ;;  %v1737_v26 = vunpack.c.0.s8 %v1736_v22 }
  0x8f   : > { %v9252_v2 = vcombine.high %v1294_v56, %v1302_v3  ;;  %4408 = vmatprep.subr.bf16.mxu0 %v9268_v53  ;;  %v9254_v8 = vcombine.high %v1295_v5, %v1303_v10  ;;  %4449 = vmatprep.subr.bf16.mxu1 %v9270_v1  ;;  %v1278_v6 = vld [vmem:[%s10296_s25 + $0x280] sm:$0xff]  ;;  %v1279_v7 = vld [vmem:[%s10296_s25 + $0x288] sm:$0xff]  ;;  %v9251_v11 = vcombine.low %v1294_v56, %v1302_v3 }
  0x90   : > { %4409 = vmatpush1.bf16.xpose.msra.mxu0 %v9267_v24  ;;  %4450 = vmatpush1.bf16.xpose.msra.mxu1 %v9269_v4  ;;  %v1286_v9 = vld [vmem:[%s10296_s25 + $0x2c0] sm:$0xff]  ;;  %v1287_v13 = vld [vmem:[%s10296_s25 + $0x2c8] sm:$0xff]  ;;  %v9253_v14 = vcombine.low %v1295_v5, %v1303_v10  ;;  %v10704_v49 = vsub.s32 %v1737_v26, %v10699_v16 }
  0x91   : > { %4410 = vmatprep.subr.bf16.mxu0 %v9252_v2  ;;  %4451 = vmatprep.subr.bf16.mxu1 %v9254_v8  ;;  %v9236_v18 = vcombine.high %v1278_v6, %v1286_v9  ;;  %v9238_v15 = vcombine.high %v1279_v7, %v1287_v13  ;;  %v1262_v23 = vld [vmem:[%s10296_s25 + $0x200] sm:$0xff]  ;;  %v1263_v17 = vld [vmem:[%s10296_s25 + $0x208] sm:$0xff]  ;;  %v9235_v36 = vcombine.low %v1278_v6, %v1286_v9 }
  0x92   : > { %v1270_v25 = vld [vmem:[%s10296_s25 + $0x240] sm:$0xff]  ;;  %v1271_v33 = vld [vmem:[%s10296_s25 + $0x248] sm:$0xff]  ;;  %v9237_v37 = vcombine.low %v1279_v7, %v1287_v13 }
  0x93   : > { %v9220_v41 = vcombine.high %v1262_v23, %v1270_v25  ;;  %v9222_v45 = vcombine.high %v1263_v17, %v1271_v33  ;;  %v10706_v58 = vld [vmem:[#allocation2] sm:$0xff]  ;;  %v1247_v60 = vld [vmem:[%s10296_s25 + $0x188] sm:$0xff]  ;;  %v9219_v32 = vcombine.low %v1262_v23, %v1270_v25  ;;  %v9221_v57 = vcombine.low %v1263_v17, %v1271_v33 }
  0x94   : > { %v1246_v50 = vld [vmem:[%s10296_s25 + $0x180] sm:$0xff]  ;;  %v10712_v51 = vrot.slane %v10706_v58, %v10704_v49  ;;  %v1255_v30 = vld [vmem:[%s10296_s25 + $0x1c8] sm:$0xff] }
  0x95   : > { %v1254_v59 = vld [vmem:[%s10296_s25 + $0x1c0] sm:$0xff]  ;;  %v9206_v43 = vcombine.high %v1247_v60, %v1255_v30  ;;  %v1231_v19 = vld [vmem:[%s10296_s25 + $0x108] sm:$0xff]  ;;  %v9205_v27 = vcombine.low %v1247_v60, %v1255_v30 }
  0x96   : > { %v1749_v55 = vcombine.high %v10712_v51, %v10712_v51  ;;  %v9204_v42 = vcombine.high %v1246_v50, %v1254_v59  ;;  %v1230_v62 = vld [vmem:[%s10296_s25 + $0x100] sm:$0xff]  ;;  %v1239_v31 = vld [vmem:[%s10296_s25 + $0x148] sm:$0xff]  ;;  %v9203_v20 = vcombine.low %v1246_v50, %v1254_v59 }
  0x97   : > { %v1238_v54 = vld [vmem:[%s10296_s25 + $0x140] sm:$0xff]  ;;  %v9190_v29 = vcombine.high %v1231_v19, %v1239_v31  ;;  %v1215_v38 = vld [vmem:[%s10296_s25 + $0x88] sm:$0xff]  ;;  %v9189_v46 = vcombine.low %v1231_v19, %v1239_v31 }
  0x98   : > { %4411 = vmatpush1.bf16.xpose.msra.mxu0 %v9251_v11  ;;  %4452 = vmatpush1.bf16.xpose.msra.mxu1 %v9253_v14  ;;  %v10719_v44 = vrot.slane %v1749_v55, %v10704_v49  ;;  %v9188_v28 = vcombine.high %v1230_v62, %v1238_v54  ;;  %v1214_v34 = vld [vmem:[%s10296_s25 + $0x80] sm:$0xff]  ;;  %v1223_v39 = vld [vmem:[%s10296_s25 + $0xc8] sm:$0xff]  ;;  %v9187_v40 = vcombine.low %v1230_v62, %v1238_v54 }
  0x99   : > { %4412 = vmatprep.subr.bf16.mxu0 %v9236_v18  ;;  %4453 = vmatprep.subr.bf16.mxu1 %v9238_v15  ;;  %v1222_v35 = vld [vmem:[%s10296_s25 + $0xc0] sm:$0xff]  ;;  %v9174_v48 = vcombine.high %v1215_v38, %v1223_v39  ;;  %v1199_v53 = vld [vmem:[%s10296_s25 + $0x8] sm:$0xff]  ;;  %v9173_v56 = vcombine.low %v1215_v38, %v1223_v39 }
  0x9a   : > { %4440 = vmatprep.mubr.bf16.mxu0 %v10719_v44  ;;  %v10724_v61 = vcombine.high %v10719_v44, %v10719_v44  ;;  %v9172_v47 = vcombine.high %v1214_v34, %v1222_v35  ;;  %v1198_v52 = vld [vmem:[%s10296_s25] sm:$0xff]  ;;  %v1207_v0 = vld [vmem:[%s10296_s25 + $0x48] sm:$0xff]  ;;  %v9171_v24 = vcombine.low %v1214_v34, %v1222_v35 }
  0x9b   : > { %v1206_v63 = vld [vmem:[%s10296_s25 + $0x40] sm:$0xff]  ;;  %v9158_v1 = vcombine.high %v1199_v53, %v1207_v0  ;;  %v1439_v5 = vld [vmem:[%s10296_s25 + $0x788] sm:$0xff]  ;;  %v9157_v6 = vcombine.low %v1199_v53, %v1207_v0 }
  0x9c   : > { %4481 = vmatprep.mubr.bf16.mxu1 %v10724_v61  ;;  %v9156_v3 = vcombine.high %v1198_v52, %v1206_v63  ;;  %v1438_v4 = vld [vmem:[%s10296_s25 + $0x780] sm:$0xff]  ;;  %v1447_v10 = vld [vmem:[%s10296_s25 + $0x7c8] sm:$0xff]  ;;  %v9155_v8 = vcombine.low %v1198_v52, %v1206_v63 }
  0x9d   : > { %v1446_v2 = vld [vmem:[%s10296_s25 + $0x7c0] sm:$0xff]  ;;  %v9398_v7 = vcombine.high %v1439_v5, %v1447_v10  ;;  %v1423_v14 = vld [vmem:[%s10296_s25 + $0x708] sm:$0xff]  ;;  %v9397_v12 = vcombine.low %v1439_v5, %v1447_v10 }
  0x9e   : > { %v9396_v9 = vcombine.high %v1438_v4, %v1446_v2  ;;  %v1422_v13 = vld [vmem:[%s10296_s25 + $0x700] sm:$0xff]  ;;  %v1431_v18 = vld [vmem:[%s10296_s25 + $0x748] sm:$0xff]  ;;  %v9395_v15 = vcombine.low %v1438_v4, %v1446_v2 }
  0x9f   : > { %v1430_v11 = vld [vmem:[%s10296_s25 + $0x740] sm:$0xff]  ;;  %v9382_v22 = vcombine.high %v1423_v14, %v1431_v18  ;;  %v1407_v26 = vld [vmem:[%s10296_s25 + $0x688] sm:$0xff] }
  0xa0   : > { %4413 = vmatpush1.bf16.xpose.msra.mxu0 %v9235_v36  ;;  %4454 = vmatpush1.bf16.xpose.msra.mxu1 %v9237_v37  ;;  %v9380_v21 = vcombine.high %v1422_v13, %v1430_v11  ;;  %v1406_v23 = vld [vmem:[%s10296_s25 + $0x680] sm:$0xff]  ;;  %v1415_v17 = vld [vmem:[%s10296_s25 + $0x6c8] sm:$0xff]  ;;  %v9379_v33 = vcombine.low %v1422_v13, %v1430_v11  ;;  %v9381_v36 = vcombine.low %v1423_v14, %v1431_v18  ;;  %v1313_v13 = vld [vmem:[%s10296_s25 + $0x398] sm:$0xff] }
  0xa1   : > { %4414 = vmatprep.subr.bf16.mxu0 %v9220_v41  ;;  %4455 = vmatprep.subr.bf16.mxu1 %v9222_v45  ;;  %v1414_v25 = vld [vmem:[%s10296_s25 + $0x6c0] sm:$0xff]  ;;  %v9366_v41 = vcombine.high %v1407_v26, %v1415_v17  ;;  %v1391_v59 = vld [vmem:[%s10296_s25 + $0x608] sm:$0xff]  ;;  %v1321_v11 = vld [vmem:[%s10296_s25 + $0x3d8] sm:$0xff] }
  0xa2   : > { %v9364_v37 = vcombine.high %v1406_v23, %v1414_v25  ;;  %v1390_v45 = vld [vmem:[%s10296_s25 + $0x600] sm:$0xff]  ;;  %v1399_v60 = vld [vmem:[%s10296_s25 + $0x648] sm:$0xff]  ;;  %v9363_v30 = vcombine.low %v1406_v23, %v1414_v25  ;;  %v10782_v23 = vrot.slane %v10712_v51, %v10704_v49 }
  0xa3   : > { %v1398_v50 = vld [vmem:[%s10296_s25 + $0x640] sm:$0xff]  ;;  %v1375_v62 = vld [vmem:[%s10296_s25 + $0x588] sm:$0xff]  ;;  %v9349_v31 = vcombine.low %v1391_v59, %v1399_v60 }
  0xa4   : > { %v9348_v55 = vcombine.high %v1390_v45, %v1398_v50  ;;  %v1383_v54 = vld [vmem:[%s10296_s25 + $0x5c8] sm:$0xff]  ;;  %v9347_v19 = vcombine.low %v1390_v45, %v1398_v50  ;;  %v10795_v51 = vcombine.high %v10782_v23, %v10782_v23 }
  0xa5   : > { %v1359_v34 = vld [vmem:[%s10296_s25 + $0x508] sm:$0xff]  ;;  %v9333_v39 = vcombine.low %v1375_v62, %v1383_v54 }
  0xa6   : > { %v1367_v35 = vld [vmem:[%s10296_s25 + $0x548] sm:$0xff] }
  0xa7   : > { %v1343_v52 = vld [vmem:[%s10296_s25 + $0x488] sm:$0xff]  ;;  %v9317_v0 = vcombine.low %v1359_v34, %v1367_v35 }
  0xa8   : > { %4415 = vmatpush1.bf16.xpose.msra.mxu0 %v9219_v32  ;;  %4456 = vmatpush1.bf16.xpose.msra.mxu1 %v9221_v57  ;;  %v9365_v32 = vcombine.low %v1407_v26, %v1415_v17  ;;  %v9350_v57 = vcombine.high %v1391_v59, %v1399_v60  ;;  %v1351_v63 = vld [vmem:[%s10296_s25 + $0x4c8] sm:$0xff]  ;;  %v1296_v26 = vld [vmem:[%s10296_s25 + $0x310] sm:$0xff] }
  0xa9   : > { %4416 = vmatprep.subr.bf16.mxu0 %v9204_v42  ;;  %4457 = vmatprep.subr.bf16.mxu1 %v9206_v43  ;;  %v1374_v42 = vld [vmem:[%s10296_s25 + $0x580] sm:$0xff]  ;;  %v1327_v4 = vld [vmem:[%s10296_s25 + $0x408] sm:$0xff]  ;;  %v9301_v10 = vcombine.low %v1343_v52, %v1351_v63  ;;  %v1304_v17 = vld [vmem:[%s10296_s25 + $0x350] sm:$0xff] }
  0xaa   : > { %v1382_v43 = vld [vmem:[%s10296_s25 + $0x5c0] sm:$0xff]  ;;  %v1335_v2 = vld [vmem:[%s10296_s25 + $0x448] sm:$0xff]  ;;  %v9256_v45 = vcombine.high %v1296_v26, %v1304_v17  ;;  %v1280_v60 = vld [vmem:[%s10296_s25 + $0x290] sm:$0xff] }
  0xab   : > { %v9331_v38 = vcombine.low %v1374_v42, %v1382_v43  ;;  %v9285_v18 = vcombine.low %v1327_v4, %v1335_v2 }
  0xb0   : > { %4417 = vmatpush1.bf16.xpose.msra.mxu0 %v9203_v20  ;;  %4458 = vmatpush1.bf16.xpose.msra.mxu1 %v9205_v27  ;;  %v9332_v20 = vcombine.high %v1374_v42, %v1382_v43  ;;  %v9334_v27 = vcombine.high %v1375_v62, %v1383_v54  ;;  %v1264_v54 = vld [vmem:[%s10296_s25 + $0x210] sm:$0xff] }
  0xb1   : > { %4418 = vmatprep.subr.bf16.mxu0 %v9188_v28  ;;  %4459 = vmatprep.subr.bf16.mxu1 %v9190_v29  ;;  %v1358_v28 = vld [vmem:[%s10296_s25 + $0x500] sm:$0xff] }
  0xb2   : > { %v1366_v29 = vld [vmem:[%s10296_s25 + $0x540] sm:$0xff] }
  0xb3   : > { %v9315_v53 = vcombine.low %v1358_v28, %v1366_v29 }
  0xb8   : > { %4419 = vmatpush1.bf16.xpose.msra.mxu0 %v9187_v40  ;;  %4460 = vmatpush1.bf16.xpose.msra.mxu1 %v9189_v46  ;;  %v9316_v40 = vcombine.high %v1358_v28, %v1366_v29  ;;  %v9318_v46 = vcombine.high %v1359_v34, %v1367_v35  ;;  %v1248_v35 = vld [vmem:[%s10296_s25 + $0x190] sm:$0xff] }
  0xb9   : > { %4420 = vmatprep.subr.bf16.mxu0 %v9172_v47  ;;  %4461 = vmatprep.subr.bf16.mxu1 %v9174_v48  ;;  %v1342_v47 = vld [vmem:[%s10296_s25 + $0x480] sm:$0xff] }
  0xba   : > { %v1350_v48 = vld [vmem:[%s10296_s25 + $0x4c0] sm:$0xff] }
  0xbb   : > { %v9299_v5 = vcombine.low %v1342_v47, %v1350_v48 }
  0xc0   : > { %4421 = vmatpush1.bf16.xpose.msra.mxu0 %v9171_v24  ;;  %4462 = vmatpush1.bf16.xpose.msra.mxu1 %v9173_v56  ;;  %v9300_v24 = vcombine.high %v1342_v47, %v1350_v48  ;;  %v9302_v56 = vcombine.high %v1343_v52, %v1351_v63  ;;  %v1232_v63 = vld [vmem:[%s10296_s25 + $0x110] sm:$0xff] }
  0xc1   : > { %4422 = vmatprep.subr.bf16.mxu0 %v9156_v3  ;;  %4463 = vmatprep.subr.bf16.mxu1 %v9158_v1  ;;  %v1326_v3 = vld [vmem:[%s10296_s25 + $0x400] sm:$0xff] }
  0xc2   : > { %v1334_v1 = vld [vmem:[%s10296_s25 + $0x440] sm:$0xff] }
  0xc3   : > { %v9283_v14 = vcombine.low %v1326_v3, %v1334_v1 }
  0xc8   : > { %4423 = vmatpush1.bf16.xpose.msra.mxu0 %v9155_v8  ;;  %4464 = vmatpush1.bf16.xpose.msra.mxu1 %v9157_v6  ;;  %v9284_v8 = vcombine.high %v1326_v3, %v1334_v1  ;;  %v9286_v6 = vcombine.high %v1327_v4, %v1335_v2  ;;  %v1216_v2 = vld [vmem:[%s10296_s25 + $0x90] sm:$0xff] }
  0xc9   : > { %4424 = vmatprep.subr.bf16.mxu0 %v9396_v9  ;;  %4465 = vmatprep.subr.bf16.mxu1 %v9398_v7  ;;  %v1312_v9 = vld [vmem:[%s10296_s25 + $0x390] sm:$0xff] }
  0xca   : > { %v1320_v7 = vld [vmem:[%s10296_s25 + $0x3d0] sm:$0xff] }
  0xd0   : > { %4425 = vmatpush2.bf16.xpose.msra.mxu0 %v9395_v15  ;;  %4466 = vmatpush2.bf16.xpose.msra.mxu1 %v9397_v12  ;;  %v9272_v15 = vcombine.high %v1312_v9, %v1320_v7  ;;  %v1734_v12 = vcombine.high %v10706_v58, %v10706_v58  ;;  %v1305_v58 = vld [vmem:[%s10296_s25 + $0x358] sm:$0xff] }
  0xd1   : > { %4426 = vmatprep.subr.bf16.mxu0 %v9380_v21  ;;  %4467 = vmatprep.subr.bf16.mxu1 %v9382_v22  ;;  %v9274_v21 = vcombine.high %v1313_v13, %v1321_v11 }
  0xd2   : > { %v10778_v22 = vrot.slane %v1734_v12, %v10704_v49 }
  0xd4   : > { %v1750_v25 = vcombine.high %v10778_v22, %v10778_v22 }
  0xd8   : > { %4427 = vmatpush2.bf16.xpose.msra.mxu0 %v9379_v33  ;;  %4468 = vmatpush2.bf16.xpose.msra.mxu1 %v9381_v36  ;;  %v1297_v33 = vld [vmem:[%s10296_s25 + $0x318] sm:$0xff]  ;;  %v10791_v36 = vrot.slane %v1750_v25, %v10704_v49 }
  0xd9   : > { %4428 = vmatprep.subr.bf16.mxu0 %v9364_v37  ;;  %4469 = vmatprep.subr.bf16.mxu1 %v9366_v41  ;;  %v9271_v37 = vcombine.low %v1312_v9, %v1320_v7  ;;  %v9273_v41 = vcombine.low %v1313_v13, %v1321_v11  ;;  %v9258_v50 = vcombine.high %v1297_v33, %v1305_v58  ;;  %v1200_v11 = vld [vmem:[%s10296_s25 + $0x10] sm:$0xff] }
  0xda   : > { %v10800_v59 = vcombine.high %v10791_v36, %v10791_v36  ;;  %v9257_v42 = vcombine.low %v1297_v33, %v1305_v58  ;;  %v1448_v33 = vld [vmem:[%s10296_s25 + $0x7d0] sm:$0xff]  ;;  %v1441_v58 = vld [vmem:[%s10296_s25 + $0x798] sm:$0xff] }
  0xe0   : > { %4429 = vmatpush2.bf16.xpose.msra.mxu0 %v9363_v30  ;;  %4470 = vmatpush2.bf16.xpose.msra.mxu1 %v9365_v32  ;;  %v1288_v30 = vld [vmem:[%s10296_s25 + $0x2d0] sm:$0xff]  ;;  %v1281_v32 = vld [vmem:[%s10296_s25 + $0x298] sm:$0xff] }
  0xe1   : > { %4430 = vmatprep.subr.bf16.mxu0 %v9348_v55  ;;  %4471 = vmatprep.subr.bf16.mxu1 %v9350_v57  ;;  %v1289_v55 = vld [vmem:[%s10296_s25 + $0x2d8] sm:$0xff]  ;;  %v9255_v57 = vcombine.low %v1296_v26, %v1304_v17  ;;  %v9240_v43 = vcombine.high %v1280_v60, %v1288_v30  ;;  %v1440_v17 = vld [vmem:[%s10296_s25 + $0x790] sm:$0xff] }
  0xe2   : > { %v9242_v62 = vcombine.high %v1281_v32, %v1289_v55  ;;  %v9241_v28 = vcombine.low %v1281_v32, %v1289_v55  ;;  %v1432_v32 = vld [vmem:[%s10296_s25 + $0x750] sm:$0xff]  ;;  %v1425_v55 = vld [vmem:[%s10296_s25 + $0x718] sm:$0xff] }
  0xe8   : > { %4431 = vmatpush2.bf16.xpose.msra.mxu0 %v9347_v19  ;;  %4472 = vmatpush2.bf16.xpose.msra.mxu1 %v9349_v31  ;;  %v1272_v19 = vld [vmem:[%s10296_s25 + $0x250] sm:$0xff]  ;;  %v1265_v31 = vld [vmem:[%s10296_s25 + $0x218] sm:$0xff] }
  0xe9   : > { %4432 = vmatprep.subr.bf16.mxu0 %v9332_v20  ;;  %4473 = vmatprep.subr.bf16.mxu1 %v9334_v27  ;;  %v1273_v20 = vld [vmem:[%s10296_s25 + $0x258] sm:$0xff]  ;;  %v9239_v27 = vcombine.low %v1280_v60, %v1288_v30  ;;  %v9224_v29 = vcombine.high %v1264_v54, %v1272_v19  ;;  %v1424_v30 = vld [vmem:[%s10296_s25 + $0x710] sm:$0xff] }
  0xea   : > { %v9226_v34 = vcombine.high %v1265_v31, %v1273_v20  ;;  %v9225_v47 = vcombine.low %v1265_v31, %v1273_v20  ;;  %v1416_v31 = vld [vmem:[%s10296_s25 + $0x6d0] sm:$0xff]  ;;  %v1409_v20 = vld [vmem:[%s10296_s25 + $0x698] sm:$0xff] }
  0xf0   : > { %4433 = vmatpush2.bf16.xpose.msra.mxu0 %v9331_v38  ;;  %4474 = vmatpush2.bf16.xpose.msra.mxu1 %v9333_v39  ;;  %v1256_v38 = vld [vmem:[%s10296_s25 + $0x1d0] sm:$0xff]  ;;  %v1249_v39 = vld [vmem:[%s10296_s25 + $0x198] sm:$0xff] }
  0xf1   : > { %4434 = vmatprep.subr.bf16.mxu0 %v9316_v40  ;;  %4475 = vmatprep.subr.bf16.mxu1 %v9318_v46  ;;  %v1257_v40 = vld [vmem:[%s10296_s25 + $0x1d8] sm:$0xff]  ;;  %v9223_v46 = vcombine.low %v1264_v54, %v1272_v19  ;;  %v9208_v48 = vcombine.high %v1248_v35, %v1256_v38  ;;  %v1408_v19 = vld [vmem:[%s10296_s25 + $0x690] sm:$0xff] }
  0xf2   : > { %v9210_v52 = vcombine.high %v1249_v39, %v1257_v40  ;;  %v9209_v3 = vcombine.low %v1249_v39, %v1257_v40  ;;  %v1400_v39 = vld [vmem:[%s10296_s25 + $0x650] sm:$0xff]  ;;  %v1393_v40 = vld [vmem:[%s10296_s25 + $0x618] sm:$0xff] }
  0xf8   : > { %4435 = vmatpush2.bf16.xpose.msra.mxu0 %v9315_v53  ;;  %4476 = vmatpush2.bf16.xpose.msra.mxu1 %v9317_v0  ;;  %v1240_v53 = vld [vmem:[%s10296_s25 + $0x150] sm:$0xff]  ;;  %v1233_v0 = vld [vmem:[%s10296_s25 + $0x118] sm:$0xff] }
  0xf9   : > { %4436 = vmatprep.subr.bf16.mxu0 %v9300_v24  ;;  %4477 = vmatprep.subr.bf16.mxu1 %v9302_v56  ;;  %v1241_v24 = vld [vmem:[%s10296_s25 + $0x158] sm:$0xff]  ;;  %v9207_v56 = vcombine.low %v1248_v35, %v1256_v38  ;;  %v9192_v1 = vcombine.high %v1232_v63, %v1240_v53  ;;  %v1392_v38 = vld [vmem:[%s10296_s25 + $0x610] sm:$0xff] }
  0xfa   : > { %v9194_v4 = vcombine.high %v1233_v0, %v1241_v24  ;;  %v9193_v9 = vcombine.low %v1233_v0, %v1241_v24  ;;  %v1384_v0 = vld [vmem:[%s10296_s25 + $0x5d0] sm:$0xff]  ;;  %v1377_v24 = vld [vmem:[%s10296_s25 + $0x598] sm:$0xff] }
 0x100   : > { %4437 = vmatpush2.bf16.xpose.msra.mxu0 %v9299_v5  ;;  %4478 = vmatpush2.bf16.xpose.msra.mxu1 %v9301_v10  ;;  %v1224_v5 = vld [vmem:[%s10296_s25 + $0xd0] sm:$0xff]  ;;  %v1217_v10 = vld [vmem:[%s10296_s25 + $0x98] sm:$0xff] }
 0x101   : > { %4438 = vmatprep.subr.bf16.mxu0 %v9284_v8  ;;  %4479 = vmatprep.subr.bf16.mxu1 %v9286_v6  ;;  %v1225_v8 = vld [vmem:[%s10296_s25 + $0xd8] sm:$0xff]  ;;  %v9191_v6 = vcombine.low %v1232_v63, %v1240_v53  ;;  %v9176_v7 = vcombine.high %v1216_v2, %v1224_v5  ;;  %v9175_v12 = vcombine.low %v1216_v2, %v1224_v5  ;;  %v1376_v53 = vld [vmem:[%s10296_s25 + $0x590] sm:$0xff] }
 0x102   : > { %v9178_v13 = vcombine.high %v1217_v10, %v1225_v8  ;;  %v1360_v5 = vld [vmem:[%s10296_s25 + $0x510] sm:$0xff] }
 0x108   : > { %4439 = vmatpush2.bf16.xpose.msra.mxu0 %v9283_v14  ;;  %4480 = vmatpush2.bf16.xpose.msra.mxu1 %v9285_v18  ;;  %v1208_v14 = vld [vmem:[%s10296_s25 + $0x50] sm:$0xff]  ;;  %v1201_v18 = vld [vmem:[%s10296_s25 + $0x18] sm:$0xff] }
 0x109   : > { %4490 = vmatprep.subr.bf16.mxu0 %v9272_v15  ;;  %4531 = vmatprep.subr.bf16.mxu1 %v9274_v21  ;;  %v1209_v15 = vld [vmem:[%s10296_s25 + $0x58] sm:$0xff]  ;;  %v9177_v21 = vcombine.low %v1217_v10, %v1225_v8  ;;  %v9160_v25 = vcombine.high %v1200_v11, %v1208_v14  ;;  %v1368_v10 = vld [vmem:[%s10296_s25 + $0x550] sm:$0xff] }
 0x10a   : > { %v9162_v26 = vcombine.high %v1201_v18, %v1209_v15  ;;  %v1361_v8 = vld [vmem:[%s10296_s25 + $0x518] sm:$0xff] }
 0x10f   : > { %4441 = vmatmul.mubr.bf16.vlgmr.msra.gmra.mxu0 %v10782_v23  ;;  %4482 = vmatmul.mubr.bf16.vlgmr.msra.gmra.mxu1 %v10795_v51 }
 0x110   : > { %4491 = vmatpush1.bf16.xpose.msra.mxu0 %v9271_v37  ;;  %4532 = vmatpush1.bf16.xpose.msra.mxu1 %v9273_v41  ;;  %v1449_v37 = vld [vmem:[%s10296_s25 + $0x7d8] sm:$0xff]  ;;  %v9159_v41 = vcombine.low %v1200_v11, %v1208_v14  ;;  %v1344_v14 = vld [vmem:[%s10296_s25 + $0x490] sm:$0xff] }
 0x111   : > { %4492 = vmatprep.subr.bf16.mxu0 %v9256_v45  ;;  %4533 = vmatprep.subr.bf16.mxu1 %v9258_v50  ;;  %v9161_v45 = vcombine.low %v1201_v18, %v1209_v15  ;;  %v9400_v50 = vcombine.high %v1440_v17, %v1448_v33  ;;  %v9402_v60 = vcombine.high %v1441_v58, %v1449_v37  ;;  %v1352_v18 = vld [vmem:[%s10296_s25 + $0x4d0] sm:$0xff]  ;;  %v1345_v15 = vld [vmem:[%s10296_s25 + $0x498] sm:$0xff] }
 0x112   : > { %4522 = vmatprep.mubr.bf16.mxu0 %v10791_v36  ;;  %4563 = vmatprep.mubr.bf16.mxu1 %v10800_v59 }
 0x118   : > { %4493 = vmatpush1.bf16.xpose.msra.mxu0 %v9255_v57  ;;  %4534 = vmatpush1.bf16.xpose.msra.mxu1 %v9257_v42  ;;  %v1433_v57 = vld [vmem:[%s10296_s25 + $0x758] sm:$0xff]  ;;  %v9399_v42 = vcombine.low %v1440_v17, %v1448_v33  ;;  %v1328_v33 = vld [vmem:[%s10296_s25 + $0x410] sm:$0xff] }
 0x119   : > { %4494 = vmatprep.subr.bf16.mxu0 %v9240_v43  ;;  %4535 = vmatprep.subr.bf16.mxu1 %v9242_v62  ;;  %v9401_v43 = vcombine.low %v1441_v58, %v1449_v37  ;;  %v9384_v62 = vcombine.high %v1424_v30, %v1432_v32  ;;  %v9386_v54 = vcombine.high %v1425_v55, %v1433_v57  ;;  %v1336_v58 = vld [vmem:[%s10296_s25 + $0x450] sm:$0xff]  ;;  %v1329_v37 = vld [vmem:[%s10296_s25 + $0x418] sm:$0xff] }
 0x120   : > { %4495 = vmatpush1.bf16.xpose.msra.mxu0 %v9239_v27  ;;  %4536 = vmatpush1.bf16.xpose.msra.mxu1 %v9241_v28  ;;  %v1417_v27 = vld [vmem:[%s10296_s25 + $0x6d8] sm:$0xff]  ;;  %v9383_v28 = vcombine.low %v1424_v30, %v1432_v32  ;;  %v1314_v32 = vld [vmem:[%s10296_s25 + $0x3a0] sm:$0xff] }
 0x121   : > { %4496 = vmatprep.subr.bf16.mxu0 %v9224_v29  ;;  %4537 = vmatprep.subr.bf16.mxu1 %v9226_v34  ;;  %v9385_v29 = vcombine.low %v1425_v55, %v1433_v57  ;;  %v9368_v34 = vcombine.high %v1408_v19, %v1416_v31  ;;  %v9370_v35 = vcombine.high %v1409_v20, %v1417_v27  ;;  %v1322_v55 = vld [vmem:[%s10296_s25 + $0x3e0] sm:$0xff]  ;;  %v1315_v57 = vld [vmem:[%s10296_s25 + $0x3a8] sm:$0xff] }
 0x128   : > { %4497 = vmatpush1.bf16.xpose.msra.mxu0 %v9223_v46  ;;  %4538 = vmatpush1.bf16.xpose.msra.mxu1 %v9225_v47  ;;  %v1401_v46 = vld [vmem:[%s10296_s25 + $0x658] sm:$0xff]  ;;  %v9367_v47 = vcombine.low %v1408_v19, %v1416_v31  ;;  %v10865_v31 = vld [vmem:[#allocation2 + $0x8] sm:$0xff] }
 0x129   : > { %4498 = vmatprep.subr.bf16.mxu0 %v9208_v48  ;;  %4539 = vmatprep.subr.bf16.mxu1 %v9210_v52  ;;  %v9369_v48 = vcombine.low %v1409_v20, %v1417_v27  ;;  %v9352_v52 = vcombine.high %v1392_v38, %v1400_v39  ;;  %v9354_v63 = vcombine.high %v1393_v40, %v1401_v46 }
 0x12a   : > { %v10869_v20 = vrot.slane %v10865_v31, %v10704_v49  ;;  %v10873_v27 = vrot.slane %v10778_v22, %v10704_v49 }
 0x12c   : > { %v10886_v22 = vcombine.high %v10873_v27, %v10873_v27 }
 0x130   : > { %4499 = vmatpush1.bf16.xpose.msra.mxu0 %v9207_v56  ;;  %4540 = vmatpush1.bf16.xpose.msra.mxu1 %v9209_v3  ;;  %v1385_v56 = vld [vmem:[%s10296_s25 + $0x5d8] sm:$0xff]  ;;  %v9351_v3 = vcombine.low %v1392_v38, %v1400_v39  ;;  %v1307_v38 = vld [vmem:[%s10296_s25 + $0x368] sm:$0xff] }
 0x131   : > { %4500 = vmatprep.subr.bf16.mxu0 %v9192_v1  ;;  %4541 = vmatprep.subr.bf16.mxu1 %v9194_v4  ;;  %v9353_v1 = vcombine.low %v1393_v40, %v1401_v46  ;;  %v9336_v4 = vcombine.high %v1376_v53, %v1384_v0  ;;  %v9338_v2 = vcombine.high %v1377_v24, %v1385_v56 }
 0x132   : > { %v9275_v40 = vcombine.low %v1314_v32, %v1322_v55 }
 0x138   : > { %4501 = vmatpush1.bf16.xpose.msra.mxu0 %v9191_v6  ;;  %4542 = vmatpush1.bf16.xpose.msra.mxu1 %v9193_v9  ;;  %v1369_v6 = vld [vmem:[%s10296_s25 + $0x558] sm:$0xff]  ;;  %v9335_v9 = vcombine.low %v1376_v53, %v1384_v0  ;;  %v1290_v53 = vld [vmem:[%s10296_s25 + $0x2e0] sm:$0xff]  ;;  %v1283_v0 = vld [vmem:[%s10296_s25 + $0x2a8] sm:$0xff] }
 0x139   : > { %4502 = vmatprep.subr.bf16.mxu0 %v9176_v7  ;;  %4543 = vmatprep.subr.bf16.mxu1 %v9178_v13  ;;  %v9337_v7 = vcombine.low %v1377_v24, %v1385_v56  ;;  %v9320_v13 = vcombine.high %v1360_v5, %v1368_v10  ;;  %v9322_v11 = vcombine.high %v1361_v8, %v1369_v6  ;;  %v1291_v24 = vld [vmem:[%s10296_s25 + $0x2e8] sm:$0xff] }
 0x140   : > { %4503 = vmatpush1.bf16.xpose.msra.mxu0 %v9175_v12  ;;  %4544 = vmatpush1.bf16.xpose.msra.mxu1 %v9177_v21  ;;  %v1353_v12 = vld [vmem:[%s10296_s25 + $0x4d8] sm:$0xff]  ;;  %v9319_v21 = vcombine.low %v1360_v5, %v1368_v10  ;;  %v1274_v5 = vld [vmem:[%s10296_s25 + $0x260] sm:$0xff]  ;;  %v1267_v10 = vld [vmem:[%s10296_s25 + $0x228] sm:$0xff] }
 0x141   : > { %4504 = vmatprep.subr.bf16.mxu0 %v9160_v25  ;;  %4545 = vmatprep.subr.bf16.mxu1 %v9162_v26  ;;  %v9321_v25 = vcombine.low %v1361_v8, %v1369_v6  ;;  %v9304_v26 = vcombine.high %v1344_v14, %v1352_v18  ;;  %v9306_v17 = vcombine.high %v1345_v15, %v1353_v12  ;;  %v1275_v8 = vld [vmem:[%s10296_s25 + $0x268] sm:$0xff] }
 0x148   : > { %4505 = vmatpush1.bf16.xpose.msra.mxu0 %v9159_v41  ;;  %4546 = vmatpush1.bf16.xpose.msra.mxu1 %v9161_v45  ;;  %v1337_v41 = vld [vmem:[%s10296_s25 + $0x458] sm:$0xff]  ;;  %v9303_v45 = vcombine.low %v1344_v14, %v1352_v18  ;;  %v1258_v14 = vld [vmem:[%s10296_s25 + $0x1e0] sm:$0xff]  ;;  %v1251_v18 = vld [vmem:[%s10296_s25 + $0x1a8] sm:$0xff] }
 0x149   : > { %4506 = vmatprep.subr.bf16.mxu0 %v9400_v50  ;;  %4547 = vmatprep.subr.bf16.mxu1 %v9402_v60  ;;  %v9305_v50 = vcombine.low %v1345_v15, %v1353_v12  ;;  %v9288_v60 = vcombine.high %v1328_v33, %v1336_v58  ;;  %v9290_v30 = vcombine.high %v1329_v37, %v1337_v41  ;;  %v1259_v15 = vld [vmem:[%s10296_s25 + $0x1e8] sm:$0xff] }
 0x150   : > { %4507 = vmatpush2.bf16.xpose.msra.mxu0 %v9399_v42  ;;  %4548 = vmatpush2.bf16.xpose.msra.mxu1 %v9401_v43  ;;  %v1323_v42 = vld [vmem:[%s10296_s25 + $0x3e8] sm:$0xff]  ;;  %v9287_v43 = vcombine.low %v1328_v33, %v1336_v58  ;;  %v1242_v33 = vld [vmem:[%s10296_s25 + $0x160] sm:$0xff] }
 0x151   : > { %4508 = vmatprep.subr.bf16.mxu0 %v9384_v62  ;;  %4549 = vmatprep.subr.bf16.mxu1 %v9386_v54  ;;  %v9289_v62 = vcombine.low %v1329_v37, %v1337_v41  ;;  %v9276_v54 = vcombine.high %v1314_v32, %v1322_v55  ;;  %v9278_v19 = vcombine.high %v1315_v57, %v1323_v42  ;;  %v1235_v58 = vld [vmem:[%s10296_s25 + $0x128] sm:$0xff]  ;;  %v1226_v32 = vld [vmem:[%s10296_s25 + $0xe0] sm:$0xff] }
 0x152   : > { %v9277_v46 = vcombine.low %v1315_v57, %v1323_v42  ;;  %v1243_v37 = vld [vmem:[%s10296_s25 + $0x168] sm:$0xff] }
 0x153   : > { %v1219_v55 = vld [vmem:[%s10296_s25 + $0xa8] sm:$0xff] }
 0x154   : > { %v1227_v57 = vld [vmem:[%s10296_s25 + $0xe8] sm:$0xff] }
 0x158   : > { %4509 = vmatpush2.bf16.xpose.msra.mxu0 %v9383_v28  ;;  %4550 = vmatpush2.bf16.xpose.msra.mxu1 %v9385_v29  ;;  %v1798_v28 = vcombine.high %v10869_v20, %v10869_v20  ;;  %v1298_v29 = vld [vmem:[%s10296_s25 + $0x320] sm:$0xff] }
 0x159   : > { %4510 = vmatprep.subr.bf16.mxu0 %v9368_v34  ;;  %4551 = vmatprep.subr.bf16.mxu1 %v9370_v35  ;;  %v1306_v34 = vld [vmem:[%s10296_s25 + $0x360] sm:$0xff]  ;;  %v1299_v35 = vld [vmem:[%s10296_s25 + $0x328] sm:$0xff] }
 0x15a   : > { %v10882_v39 = vrot.slane %v1798_v28, %v10704_v49  ;;  %v9259_v56 = vcombine.low %v1298_v29, %v1306_v34  ;;  %v1210_v28 = vld [vmem:[%s10296_s25 + $0x60] sm:$0xff] }
 0x160   : > { %4511 = vmatpush2.bf16.xpose.msra.mxu0 %v9367_v47  ;;  %4552 = vmatpush2.bf16.xpose.msra.mxu1 %v9369_v48  ;;  %v9260_v47 = vcombine.high %v1298_v29, %v1306_v34  ;;  %v9262_v48 = vcombine.high %v1299_v35, %v1307_v38  ;;  %v1203_v29 = vld [vmem:[%s10296_s25 + $0x28] sm:$0xff] }
 0x161   : > { %4512 = vmatprep.subr.bf16.mxu0 %v9352_v52  ;;  %4553 = vmatprep.subr.bf16.mxu1 %v9354_v63  ;;  %v10891_v52 = vcombine.high %v10882_v39, %v10882_v39  ;;  %v1282_v63 = vld [vmem:[%s10296_s25 + $0x2a0] sm:$0xff]  ;;  %v1211_v34 = vld [vmem:[%s10296_s25 + $0x68] sm:$0xff] }
 0x162   : > { %v9243_v6 = vcombine.low %v1282_v63, %v1290_v53 }
 0x168   : > { %4513 = vmatpush2.bf16.xpose.msra.mxu0 %v9351_v3  ;;  %4554 = vmatpush2.bf16.xpose.msra.mxu1 %v9353_v1  ;;  %v9261_v3 = vcombine.low %v1299_v35, %v1307_v38  ;;  %v9244_v1 = vcombine.high %v1282_v63, %v1290_v53  ;;  %v9181_v38 = vcombine.low %v1219_v55, %v1227_v57  ;;  %v1443_v63 = vld [vmem:[%s10296_s25 + $0x7a8] sm:$0xff] }
 0x169   : > { %4514 = vmatprep.subr.bf16.mxu0 %v9336_v4  ;;  %4555 = vmatprep.subr.bf16.mxu1 %v9338_v2  ;;  %v9246_v4 = vcombine.high %v1283_v0, %v1291_v24  ;;  %v1266_v2 = vld [vmem:[%s10296_s25 + $0x220] sm:$0xff]  ;;  %v1451_v53 = vld [vmem:[%s10296_s25 + $0x7e8] sm:$0xff] }
 0x16a   : > { %v9227_v12 = vcombine.low %v1266_v2, %v1274_v5 }
 0x170   : > { %4515 = vmatpush2.bf16.xpose.msra.mxu0 %v9335_v9  ;;  %4556 = vmatpush2.bf16.xpose.msra.mxu1 %v9337_v7  ;;  %v9245_v9 = vcombine.low %v1283_v0, %v1291_v24  ;;  %v9228_v7 = vcombine.high %v1266_v2, %v1274_v5  ;;  %v9165_v24 = vcombine.low %v1203_v29, %v1211_v34  ;;  %v10929_v2 = vsub.s32 1, %v10699_v16  ;;  %v1426_v5 = vld [vmem:[%s10296_s25 + $0x720] sm:$0xff] }
 0x171   : > { %4516 = vmatprep.subr.bf16.mxu0 %v9320_v13  ;;  %4557 = vmatprep.subr.bf16.mxu1 %v9322_v11  ;;  %v9230_v13 = vcombine.high %v1267_v10, %v1275_v8  ;;  %v1250_v11 = vld [vmem:[%s10296_s25 + $0x1a0] sm:$0xff] }
 0x172   : > { %v9211_v41 = vcombine.low %v1250_v11, %v1258_v14 }
 0x178   : > { %4517 = vmatpush2.bf16.xpose.msra.mxu0 %v9319_v21  ;;  %4558 = vmatpush2.bf16.xpose.msra.mxu1 %v9321_v25  ;;  %v9229_v21 = vcombine.low %v1267_v10, %v1275_v8  ;;  %v9212_v25 = vcombine.high %v1250_v11, %v1258_v14  ;;  %v1434_v10 = vld [vmem:[%s10296_s25 + $0x760] sm:$0xff]  ;;  %v1427_v8 = vld [vmem:[%s10296_s25 + $0x728] sm:$0xff] }
 0x179   : > { %4518 = vmatprep.subr.bf16.mxu0 %v9304_v26  ;;  %4559 = vmatprep.subr.bf16.mxu1 %v9306_v17  ;;  %v9214_v26 = vcombine.high %v1251_v18, %v1259_v15  ;;  %v1234_v17 = vld [vmem:[%s10296_s25 + $0x120] sm:$0xff]  ;;  %v9388_v11 = vcombine.high %v1426_v5, %v1434_v10 }
 0x17a   : > { %v9195_v42 = vcombine.low %v1234_v17, %v1242_v33 }
 0x180   : > { %4519 = vmatpush2.bf16.xpose.msra.mxu0 %v9303_v45  ;;  %4560 = vmatpush2.bf16.xpose.msra.mxu1 %v9305_v50  ;;  %v9213_v45 = vcombine.low %v1251_v18, %v1259_v15  ;;  %v9196_v50 = vcombine.high %v1234_v17, %v1242_v33 }
 0x181   : > { %4520 = vmatprep.subr.bf16.mxu0 %v9288_v60  ;;  %4561 = vmatprep.subr.bf16.mxu1 %v9290_v30  ;;  %v9198_v60 = vcombine.high %v1235_v58, %v1243_v37  ;;  %v1218_v30 = vld [vmem:[%s10296_s25 + $0xa0] sm:$0xff] }
 0x182   : > { %v9179_v35 = vcombine.low %v1218_v30, %v1226_v32 }
 0x188   : > { %4521 = vmatpush2.bf16.xpose.msra.mxu0 %v9287_v43  ;;  %4562 = vmatpush2.bf16.xpose.msra.mxu1 %v9289_v62  ;;  %v9197_v43 = vcombine.low %v1235_v58, %v1243_v37  ;;  %v9180_v62 = vcombine.high %v1218_v30, %v1226_v32  ;;  %v1410_v58 = vld [vmem:[%s10296_s25 + $0x6a0] sm:$0xff]  ;;  %v9387_v32 = vcombine.low %v1426_v5, %v1434_v10  ;;  %v1363_v5 = vld [vmem:[%s10296_s25 + $0x528] sm:$0xff] }
 0x189   : > { %4572 = vmatprep.subr.bf16.mxu0 %v9276_v54  ;;  %4613 = vmatprep.subr.bf16.mxu1 %v9278_v19  ;;  %v9182_v54 = vcombine.high %v1219_v55, %v1227_v57  ;;  %v1202_v19 = vld [vmem:[%s10296_s25 + $0x20] sm:$0xff]  ;;  %v1371_v10 = vld [vmem:[%s10296_s25 + $0x568] sm:$0xff] }
 0x18a   : > { %v9163_v0 = vcombine.low %v1202_v19, %v1210_v28  ;;  %v1418_v37 = vld [vmem:[%s10296_s25 + $0x6e0] sm:$0xff] }
 0x18f   : > { %4523 = vmatmul.mubr.bf16.vlgmr.msra.gmra.mxu0 %v10873_v27  ;;  %4564 = vmatmul.mubr.bf16.vlgmr.msra.gmra.mxu1 %v10886_v22 }
 0x190   : > { %4573 = vmatpush1.bf16.xpose.msra.mxu0 %v9275_v40  ;;  %4614 = vmatpush1.bf16.xpose.msra.mxu1 %v9277_v46  ;;  %v9164_v40 = vcombine.high %v1202_v19, %v1210_v28  ;;  %v9166_v46 = vcombine.high %v1203_v29, %v1211_v34  ;;  %v1402_v19 = vld [vmem:[%s10296_s25 + $0x660] sm:$0xff]  ;;  %v1395_v28 = vld [vmem:[%s10296_s25 + $0x628] sm:$0xff]  ;;  %v9371_v34 = vcombine.low %v1410_v58, %v1418_v37 }
 0x191   : > { %4574 = vmatprep.subr.bf16.mxu0 %v9260_v47  ;;  %4615 = vmatprep.subr.bf16.mxu1 %v9262_v48  ;;  %v1442_v47 = vld [vmem:[%s10296_s25 + $0x7a0] sm:$0xff]  ;;  %v1403_v29 = vld [vmem:[%s10296_s25 + $0x668] sm:$0xff] }
 0x192   : > { %4604 = vmatprep.mubr.bf16.mxu0 %v10882_v39  ;;  %4645 = vmatprep.mubr.bf16.mxu1 %v10891_v52  ;;  %v1450_v48 = vld [vmem:[%s10296_s25 + $0x7e0] sm:$0xff] }
 0x198   : > { %4575 = vmatpush1.bf16.xpose.msra.mxu0 %v9259_v56  ;;  %4616 = vmatpush1.bf16.xpose.msra.mxu1 %v9261_v3  ;;  %v9404_v56 = vcombine.high %v1442_v47, %v1450_v48  ;;  %v9406_v3 = vcombine.high %v1443_v63, %v1451_v53 }
 0x199   : > { %4576 = vmatprep.subr.bf16.mxu0 %v9244_v1  ;;  %4617 = vmatprep.subr.bf16.mxu1 %v9246_v4  ;;  %v10925_v1 = vsub.s32 0, %v10699_v16  ;;  %v1710_v4 = vld [vmem:[%s10301_s28] sm:$0xf] }
 0x19a   : > { %v1719_v14 = vrot.slane %v1710_v4, %v10929_v2 }
 0x1a0   : > { %4577 = vmatpush1.bf16.xpose.msra.mxu0 %v9243_v6  ;;  %4618 = vmatpush1.bf16.xpose.msra.mxu1 %v9245_v9  ;;  %v1435_v6 = vld [vmem:[%s10296_s25 + $0x768] sm:$0xff]  ;;  %v1715_v9 = vrot.slane %v1710_v4, %v10925_v1  ;;  %v1370_v4 = vld [vmem:[%s10296_s25 + $0x560] sm:$0xff] }
 0x1a1   : > { %4578 = vmatprep.subr.bf16.mxu0 %v9228_v7  ;;  %4619 = vmatprep.subr.bf16.mxu1 %v9230_v13  ;;  %v9403_v7 = vcombine.low %v1442_v47, %v1450_v48  ;;  %v9405_v13 = vcombine.low %v1443_v63, %v1451_v53  ;;  %v9390_v18 = vcombine.high %v1427_v8, %v1435_v6  ;;  %v1386_v47 = vld [vmem:[%s10296_s25 + $0x5e0] sm:$0xff]  ;;  %v1379_v48 = vld [vmem:[%s10296_s25 + $0x5a8] sm:$0xff] }
 0x1a2   : > { %v9389_v57 = vcombine.low %v1427_v8, %v1435_v6  ;;  %v1387_v63 = vld [vmem:[%s10296_s25 + $0x5e8] sm:$0xff] }
 0x1a3   : > { %v9341_v6 = vcombine.low %v1379_v48, %v1387_v63 }
 0x1a8   : > { %4579 = vmatpush1.bf16.xpose.msra.mxu0 %v9227_v12  ;;  %4620 = vmatpush1.bf16.xpose.msra.mxu1 %v9229_v21 }
 0x1a9   : > { %4580 = vmatprep.subr.bf16.mxu0 %v9212_v25  ;;  %4621 = vmatprep.subr.bf16.mxu1 %v9214_v26 }
 0x1b0   : > { %4581 = vmatpush1.bf16.xpose.msra.mxu0 %v9211_v41  ;;  %4622 = vmatpush1.bf16.xpose.msra.mxu1 %v9213_v45  ;;  %v1411_v45 = vld [vmem:[%s10296_s25 + $0x6a8] sm:$0xff] }
 0x1b1   : > { %4582 = vmatprep.subr.bf16.mxu0 %v9196_v50  ;;  %4623 = vmatprep.subr.bf16.mxu1 %v9198_v60  ;;  %v1419_v50 = vld [vmem:[%s10296_s25 + $0x6e8] sm:$0xff] }
 0x1b8   : > { %4583 = vmatpush1.bf16.xpose.msra.mxu0 %v9195_v42  ;;  %4624 = vmatpush1.bf16.xpose.msra.mxu1 %v9197_v43  ;;  %v9372_v42 = vcombine.high %v1410_v58, %v1418_v37  ;;  %v1331_v58 = vld [vmem:[%s10296_s25 + $0x428] sm:$0xff] }
 0x1b9   : > { %4584 = vmatprep.subr.bf16.mxu0 %v9180_v62  ;;  %4625 = vmatprep.subr.bf16.mxu1 %v9182_v54  ;;  %v9374_v62 = vcombine.high %v1411_v45, %v1419_v50  ;;  %v1394_v54 = vld [vmem:[%s10296_s25 + $0x620] sm:$0xff]  ;;  %v1339_v37 = vld [vmem:[%s10296_s25 + $0x468] sm:$0xff] }
 0x1ba   : > { %v9355_v53 = vcombine.low %v1394_v54, %v1402_v19 }
 0x1c0   : > { %4585 = vmatpush1.bf16.xpose.msra.mxu0 %v9179_v35  ;;  %4626 = vmatpush1.bf16.xpose.msra.mxu1 %v9181_v38  ;;  %v9373_v35 = vcombine.low %v1411_v45, %v1419_v50  ;;  %v9356_v38 = vcombine.high %v1394_v54, %v1402_v19  ;;  %v1783_v19 = vcombine.high %v10865_v31, %v10865_v31  ;;  %v1309_v31 = vld [vmem:[%s10296_s25 + $0x378] sm:$0xff] }
 0x1c1   : > { %4586 = vmatprep.subr.bf16.mxu0 %v9164_v40  ;;  %4627 = vmatprep.subr.bf16.mxu1 %v9166_v46  ;;  %v9358_v40 = vcombine.high %v1395_v28, %v1403_v29  ;;  %v1378_v46 = vld [vmem:[%s10296_s25 + $0x5a0] sm:$0xff] }
 0x1c2   : > { %v9339_v8 = vcombine.low %v1378_v46, %v1386_v47 }
 0x1c8   : > { %4587 = vmatpush1.bf16.xpose.msra.mxu0 %v9163_v0  ;;  %4628 = vmatpush1.bf16.xpose.msra.mxu1 %v9165_v24  ;;  %v9357_v0 = vcombine.low %v1395_v28, %v1403_v29  ;;  %v9340_v24 = vcombine.high %v1378_v46, %v1386_v47  ;;  %v10972_v29 = vrot.slane %v1783_v19, %v10704_v49  ;;  %v1301_v46 = vld [vmem:[%s10296_s25 + $0x338] sm:$0xff]  ;;  %v1220_v19 = vld [vmem:[%s10296_s25 + $0xb0] sm:$0xff] }
 0x1c9   : > { %4588 = vmatprep.subr.bf16.mxu0 %v9404_v56  ;;  %4629 = vmatprep.subr.bf16.mxu1 %v9406_v3  ;;  %v9342_v56 = vcombine.high %v1379_v48, %v1387_v63  ;;  %v1362_v3 = vld [vmem:[%s10296_s25 + $0x520] sm:$0xff] }
 0x1cf   : > { %v4442_v15 = vpop.f32.mrf.mxu0  ;;  %v4483_v21 = vpop.f32.mrf.mxu1 }
 0x1d0   : > { %v4443_v12 = vadd.f32 %v4442_v15, %v1715_v9  ;;  %4589 = vmatpush2.bf16.xpose.msra.mxu0 %v9403_v7  ;;  %4630 = vmatpush2.bf16.xpose.msra.mxu1 %v9405_v13  ;;  %v9324_v9 = vcombine.high %v1362_v3, %v1370_v4  ;;  %v9326_v7 = vcombine.high %v1363_v5, %v1371_v10  ;;  %v1346_v13 = vld [vmem:[%s10296_s25 + $0x4a0] sm:$0xff] }
 0x1d1   : > { %v4444_v25 = vpop.f32.mrf.mxu0  ;;  %4590 = vmatprep.subr.bf16.mxu0 %v9388_v11  ;;  %v4485_v33 = vpop.f32.mrf.mxu1  ;;  %4631 = vmatprep.subr.bf16.mxu1 %v9390_v18  ;;  %v1354_v11 = vld [vmem:[%s10296_s25 + $0x4e0] sm:$0xff]  ;;  %v1355_v18 = vld [vmem:[%s10296_s25 + $0x4e8] sm:$0xff]  ;;  %v9323_v15 = vcombine.low %v1362_v3, %v1370_v4  ;;  %v1292_v3 = vld [vmem:[%s10296_s25 + $0x2f0] sm:$0xff] }
 0x1d2   : > { %v10937_v26 = vadd.f32 %v4483_v21, %v4443_v12  ;;  %v4445_v17 = vadd.f32 %v4444_v25, %v1719_v14  ;;  %v1347_v14 = vld [vmem:[%s10296_s25 + $0x4a8] sm:$0xff]  ;;  %v9325_v12 = vcombine.low %v1363_v5, %v1371_v10  ;;  %v9308_v21 = vcombine.high %v1346_v13, %v1354_v11  ;;  %v1285_v4 = vld [vmem:[%s10296_s25 + $0x2b8] sm:$0xff] }
 0x1d3   : > { %v4446_v41 = vpop.f32.mrf.mxu0  ;;  %v4487_v30 = vpop.f32.mrf.mxu1  ;;  %v9310_v25 = vcombine.high %v1347_v14, %v1355_v18  ;;  %v9309_v45 = vcombine.low %v1347_v14, %v1355_v18  ;;  %v1293_v5 = vld [vmem:[%s10296_s25 + $0x2f8] sm:$0xff] }
 0x1d4   : > { %v10943_v60 = vadd.f32 %v4485_v33, %v4445_v17  ;;  %v1330_v17 = vld [vmem:[%s10296_s25 + $0x420] sm:$0xff]  ;;  %v9307_v41 = vcombine.low %v1346_v13, %v1354_v11  ;;  %v9294_v30 = vcombine.high %v1331_v58, %v1339_v37  ;;  %v1276_v13 = vld [vmem:[%s10296_s25 + $0x270] sm:$0xff]  ;;  %v1269_v11 = vld [vmem:[%s10296_s25 + $0x238] sm:$0xff] }
 0x1d5   : > { %v4447_v55 = vpop.f32.mrf.mxu0  ;;  %v4488_v43 = vpop.f32.mrf.mxu1  ;;  %v1338_v33 = vld [vmem:[%s10296_s25 + $0x460] sm:$0xff]  ;;  %v1277_v14 = vld [vmem:[%s10296_s25 + $0x278] sm:$0xff] }
 0x1d6   : > { %v9292_v50 = vcombine.high %v1330_v17, %v1338_v33  ;;  %v1324_v55 = vld [vmem:[%s10296_s25 + $0x3f0] sm:$0xff]  ;;  %v9291_v43 = vcombine.low %v1330_v17, %v1338_v33  ;;  %v1253_v33 = vld [vmem:[%s10296_s25 + $0x1b8] sm:$0xff] }
 0x1d7   : > { %v1260_v17 = vld [vmem:[%s10296_s25 + $0x1f0] sm:$0xff] }
 0x1d8   : > { %4591 = vmatpush2.bf16.xpose.msra.mxu0 %v9387_v32  ;;  %4632 = vmatpush2.bf16.xpose.msra.mxu1 %v9389_v57  ;;  %v1316_v32 = vld [vmem:[%s10296_s25 + $0x3b0] sm:$0xff]  ;;  %v1317_v57 = vld [vmem:[%s10296_s25 + $0x3b8] sm:$0xff] }
 0x1d9   : > { %4592 = vmatprep.subr.bf16.mxu0 %v9372_v42  ;;  %4633 = vmatprep.subr.bf16.mxu1 %v9374_v62  ;;  %v1325_v42 = vld [vmem:[%s10296_s25 + $0x3f8] sm:$0xff]  ;;  %v9293_v62 = vcombine.low %v1331_v58, %v1339_v37  ;;  %v9280_v54 = vcombine.high %v1316_v32, %v1324_v55  ;;  %v9279_v48 = vcombine.low %v1316_v32, %v1324_v55  ;;  %v1244_v32 = vld [vmem:[%s10296_s25 + $0x170] sm:$0xff] }
 0x1da   : > { %v9282_v28 = vcombine.high %v1317_v57, %v1325_v42  ;;  %v9281_v63 = vcombine.low %v1317_v57, %v1325_v42  ;;  %v1261_v58 = vld [vmem:[%s10296_s25 + $0x1f8] sm:$0xff] }
 0x1db   : > { %v1237_v55 = vld [vmem:[%s10296_s25 + $0x138] sm:$0xff] }
 0x1dc   : > { %v1245_v57 = vld [vmem:[%s10296_s25 + $0x178] sm:$0xff] }
 0x1e0   : > { %4593 = vmatpush2.bf16.xpose.msra.mxu0 %v9371_v34  ;;  %4634 = vmatpush2.bf16.xpose.msra.mxu1 %v9373_v35  ;;  %v10976_v34 = vrot.slane %v10869_v20, %v10704_v49  ;;  %v1799_v35 = vcombine.high %v10972_v29, %v10972_v29 }
 0x1e1   : > { %4594 = vmatprep.subr.bf16.mxu0 %v9356_v38  ;;  %4635 = vmatprep.subr.bf16.mxu1 %v9358_v40  ;;  %v1300_v38 = vld [vmem:[%s10296_s25 + $0x330] sm:$0xff] }
 0x1e2   : > { %v1308_v40 = vld [vmem:[%s10296_s25 + $0x370] sm:$0xff]  ;;  %v10985_v47 = vrot.slane %v1799_v35, %v10704_v49  ;;  %v10989_v20 = vcombine.high %v10976_v34, %v10976_v34  ;;  %v1221_v35 = vld [vmem:[%s10296_s25 + $0xb8] sm:$0xff] }
 0x1e3   : > { %v9263_v10 = vcombine.low %v1300_v38, %v1308_v40 }
 0x1e8   : > { %4595 = vmatpush2.bf16.xpose.msra.mxu0 %v9355_v53  ;;  %4636 = vmatpush2.bf16.xpose.msra.mxu1 %v9357_v0  ;;  %v9264_v53 = vcombine.high %v1300_v38, %v1308_v40  ;;  %v9266_v0 = vcombine.high %v1301_v46, %v1309_v31  ;;  %v1229_v38 = vld [vmem:[%s10296_s25 + $0xf8] sm:$0xff] }
 0x1e9   : > { %4596 = vmatprep.subr.bf16.mxu0 %v9340_v24  ;;  %4637 = vmatprep.subr.bf16.mxu1 %v9342_v56  ;;  %v10994_v24 = vcombine.high %v10985_v47, %v10985_v47  ;;  %v1284_v56 = vld [vmem:[%s10296_s25 + $0x2b0] sm:$0xff] }
 0x1ea   : > { %v9247_v18 = vcombine.low %v1284_v56, %v1292_v3 }
 0x1f0   : > { %4597 = vmatpush2.bf16.xpose.msra.mxu0 %v9339_v8  ;;  %4638 = vmatpush2.bf16.xpose.msra.mxu1 %v9341_v6  ;;  %v9265_v8 = vcombine.low %v1301_v46, %v1309_v31  ;;  %v9248_v6 = vcombine.high %v1284_v56, %v1292_v3  ;;  %v9201_v46 = vcombine.low %v1237_v55, %v1245_v57  ;;  %v1213_v56 = vld [vmem:[%s10296_s25 + $0x78] sm:$0xff] }
 0x1f1   : > { %4598 = vmatprep.subr.bf16.mxu0 %v9324_v9  ;;  %4639 = vmatprep.subr.bf16.mxu1 %v9326_v7  ;;  %v9250_v9 = vcombine.high %v1285_v4, %v1293_v5  ;;  %v1268_v7 = vld [vmem:[%s10296_s25 + $0x230] sm:$0xff] }
 0x1f2   : > { %v9231_v37 = vcombine.low %v1268_v7, %v1276_v13 }
 0x1f8   : > { %4599 = vmatpush2.bf16.xpose.msra.mxu0 %v9323_v15  ;;  %4640 = vmatpush2.bf16.xpose.msra.mxu1 %v9325_v12  ;;  %v9249_v15 = vcombine.low %v1285_v4, %v1293_v5  ;;  %v9232_v12 = vcombine.high %v1268_v7, %v1276_v13  ;;  %v9185_v4 = vcombine.low %v1221_v35, %v1229_v38  ;;  %v1453_v7 = vld [vmem:[%s10296_s25 + $0x7f8] sm:$0xff] }
 0x1f9   : > { %4600 = vmatprep.subr.bf16.mxu0 %v9308_v21  ;;  %4641 = vmatprep.subr.bf16.mxu1 %v9310_v25  ;;  %v9234_v21 = vcombine.high %v1269_v11, %v1277_v14  ;;  %v1252_v25 = vld [vmem:[%s10296_s25 + $0x1b0] sm:$0xff] }
 0x1fa   : > { %v9215_v42 = vcombine.low %v1252_v25, %v1260_v17 }
 0x200   : > { %4601 = vmatpush2.bf16.xpose.msra.mxu0 %v9307_v41  ;;  %4642 = vmatpush2.bf16.xpose.msra.mxu1 %v9309_v45  ;;  %v9233_v41 = vcombine.low %v1269_v11, %v1277_v14  ;;  %v9216_v45 = vcombine.high %v1252_v25, %v1260_v17  ;;  %v1437_v25 = vld [vmem:[%s10296_s25 + $0x778] sm:$0xff] }
 0x201   : > { %4602 = vmatprep.subr.bf16.mxu0 %v9292_v50  ;;  %4643 = vmatprep.subr.bf16.mxu1 %v9294_v30  ;;  %v9218_v50 = vcombine.high %v1253_v33, %v1261_v58  ;;  %v1236_v30 = vld [vmem:[%s10296_s25 + $0x130] sm:$0xff] }
 0x202   : > { %v9199_v40 = vcombine.low %v1236_v30, %v1244_v32 }
 0x208   : > { %4603 = vmatpush2.bf16.xpose.msra.mxu0 %v9291_v43  ;;  %4644 = vmatpush2.bf16.xpose.msra.mxu1 %v9293_v62  ;;  %v9217_v43 = vcombine.low %v1253_v33, %v1261_v58  ;;  %v9200_v62 = vcombine.high %v1236_v30, %v1244_v32 }
 0x209   : > { %4654 = vmatprep.subr.bf16.mxu0 %v9280_v54  ;;  %4695 = vmatprep.subr.bf16.mxu1 %v9282_v28  ;;  %v9202_v54 = vcombine.high %v1237_v55, %v1245_v57  ;;  %v1228_v28 = vld [vmem:[%s10296_s25 + $0xf0] sm:$0xff] }
 0x20a   : > { %v9184_v31 = vcombine.high %v1220_v19, %v1228_v28  ;;  %v9183_v3 = vcombine.low %v1220_v19, %v1228_v28  ;;  %v1421_v19 = vld [vmem:[%s10296_s25 + $0x6f8] sm:$0xff] }
 0x20f   : > { %4605 = vmatmul.mubr.bf16.vlgmr.msra.gmra.mxu0 %v10976_v34  ;;  %4646 = vmatmul.mubr.bf16.vlgmr.msra.gmra.mxu1 %v10989_v20 }
 0x210   : > { %4655 = vmatpush1.bf16.xpose.msra.mxu0 %v9279_v48  ;;  %4696 = vmatpush1.bf16.xpose.msra.mxu1 %v9281_v63  ;;  %v9186_v48 = vcombine.high %v1221_v35, %v1229_v38  ;;  %v1204_v63 = vld [vmem:[%s10296_s25 + $0x30] sm:$0xff] }
 0x211   : > { %4656 = vmatprep.subr.bf16.mxu0 %v9264_v53  ;;  %4697 = vmatprep.subr.bf16.mxu1 %v9266_v0  ;;  %v1212_v53 = vld [vmem:[%s10296_s25 + $0x70] sm:$0xff]  ;;  %v1205_v0 = vld [vmem:[%s10296_s25 + $0x38] sm:$0xff] }
 0x212   : > { %4686 = vmatprep.mubr.bf16.mxu0 %v10985_v47  ;;  %4727 = vmatprep.mubr.bf16.mxu1 %v10994_v24  ;;  %v9168_v5 = vcombine.high %v1204_v63, %v1212_v53  ;;  %v9167_v13 = vcombine.low %v1204_v63, %v1212_v53  ;;  %v9169_v11 = vcombine.low %v1205_v0, %v1213_v56  ;;  %v1404_v63 = vld [vmem:[%s10296_s25 + $0x670] sm:$0xff]  ;;  %v1397_v53 = vld [vmem:[%s10296_s25 + $0x638] sm:$0xff] }
 0x218   : > { %4657 = vmatpush1.bf16.xpose.msra.mxu0 %v9263_v10  ;;  %4698 = vmatpush1.bf16.xpose.msra.mxu1 %v9265_v8  ;;  %v9170_v10 = vcombine.high %v1205_v0, %v1213_v56  ;;  %v1444_v8 = vld [vmem:[%s10296_s25 + $0x7b0] sm:$0xff]  ;;  %v1405_v0 = vld [vmem:[%s10296_s25 + $0x678] sm:$0xff] }
 0x219   : > { %4658 = vmatprep.subr.bf16.mxu0 %v9248_v6  ;;  %4699 = vmatprep.subr.bf16.mxu1 %v9250_v9  ;;  %v1452_v6 = vld [vmem:[%s10296_s25 + $0x7f0] sm:$0xff]  ;;  %v1445_v9 = vld [vmem:[%s10296_s25 + $0x7b8] sm:$0xff] }
 0x21a   : > { %v9408_v14 = vcombine.high %v1444_v8, %v1452_v6  ;;  %v9407_v17 = vcombine.low %v1444_v8, %v1452_v6  ;;  %v9409_v33 = vcombine.low %v1445_v9, %v1453_v7  ;;  %v1388_v8 = vld [vmem:[%s10296_s25 + $0x5f0] sm:$0xff]  ;;  %v1381_v6 = vld [vmem:[%s10296_s25 + $0x5b8] sm:$0xff] }
 0x220   : > { %4659 = vmatpush1.bf16.xpose.msra.mxu0 %v9247_v18  ;;  %4700 = vmatpush1.bf16.xpose.msra.mxu1 %v9249_v15  ;;  %v9410_v18 = vcombine.high %v1445_v9, %v1453_v7  ;;  %v1428_v15 = vld [vmem:[%s10296_s25 + $0x730] sm:$0xff]  ;;  %v1389_v9 = vld [vmem:[%s10296_s25 + $0x5f8] sm:$0xff] }
 0x221   : > { %4660 = vmatprep.subr.bf16.mxu0 %v9232_v12  ;;  %4701 = vmatprep.subr.bf16.mxu1 %v9234_v21  ;;  %v1436_v12 = vld [vmem:[%s10296_s25 + $0x770] sm:$0xff]  ;;  %v1429_v21 = vld [vmem:[%s10296_s25 + $0x738] sm:$0xff] }
 0x222   : > { %v9392_v58 = vcombine.high %v1428_v15, %v1436_v12  ;;  %v9391_v35 = vcombine.low %v1428_v15, %v1436_v12  ;;  %v1372_v15 = vld [vmem:[%s10296_s25 + $0x570] sm:$0xff]  ;;  %v1365_v12 = vld [vmem:[%s10296_s25 + $0x538] sm:$0xff] }
 0x228   : > { %4661 = vmatpush1.bf16.xpose.msra.mxu0 %v9231_v37  ;;  %4702 = vmatpush1.bf16.xpose.msra.mxu1 %v9233_v41  ;;  %v9394_v37 = vcombine.high %v1429_v21, %v1437_v25 }
 0x229   : > { %4662 = vmatprep.subr.bf16.mxu0 %v9216_v45  ;;  %4703 = vmatprep.subr.bf16.mxu1 %v9218_v50 }
 0x230   : > { %4663 = vmatpush1.bf16.xpose.msra.mxu0 %v9215_v42  ;;  %4704 = vmatpush1.bf16.xpose.msra.mxu1 %v9217_v43  ;;  %v1412_v42 = vld [vmem:[%s10296_s25 + $0x6b0] sm:$0xff] }
 0x231   : > { %4664 = vmatprep.subr.bf16.mxu0 %v9200_v62  ;;  %4705 = vmatprep.subr.bf16.mxu1 %v9202_v54  ;;  %v1420_v43 = vld [vmem:[%s10296_s25 + $0x6f0] sm:$0xff]  ;;  %v1413_v54 = vld [vmem:[%s10296_s25 + $0x6b8] sm:$0xff] }
 0x232   : > { %v9375_v56 = vcombine.low %v1412_v42, %v1420_v43 }
 0x238   : > { %4665 = vmatpush1.bf16.xpose.msra.mxu0 %v9199_v40  ;;  %4706 = vmatpush1.bf16.xpose.msra.mxu1 %v9201_v46  ;;  %v9393_v40 = vcombine.low %v1429_v21, %v1437_v25  ;;  %v9376_v46 = vcombine.high %v1412_v42, %v1420_v43  ;;  %v1373_v21 = vld [vmem:[%s10296_s25 + $0x578] sm:$0xff]  ;;  %v1332_v43 = vld [vmem:[%s10296_s25 + $0x430] sm:$0xff] }
 0x239   : > { %4666 = vmatprep.subr.bf16.mxu0 %v9184_v31  ;;  %4707 = vmatprep.subr.bf16.mxu1 %v9186_v48  ;;  %v1396_v48 = vld [vmem:[%s10296_s25 + $0x630] sm:$0xff] }
 0x23a   : > { %v9359_v7 = vcombine.low %v1396_v48, %v1404_v63 }
 0x240   : > { %4667 = vmatpush1.bf16.xpose.msra.mxu0 %v9183_v3  ;;  %4708 = vmatpush1.bf16.xpose.msra.mxu1 %v9185_v4  ;;  %v9377_v3 = vcombine.low %v1413_v54, %v1421_v19  ;;  %v9360_v4 = vcombine.high %v1396_v48, %v1404_v63  ;;  %v1575_v48 = vld [vmem:[%s10296_s25 + $0xbc8] sm:$0xff] }
 0x241   : > { %4668 = vmatprep.subr.bf16.mxu0 %v9168_v5  ;;  %4709 = vmatprep.subr.bf16.mxu1 %v9170_v10  ;;  %v9362_v5 = vcombine.high %v1397_v53, %v1405_v0  ;;  %v1380_v10 = vld [vmem:[%s10296_s25 + $0x5b0] sm:$0xff] }
 0x242   : > { %v9343_v25 = vcombine.low %v1380_v10, %v1388_v8 }
 0x248   : > { %4669 = vmatpush1.bf16.xpose.msra.mxu0 %v9167_v13  ;;  %4710 = vmatpush1.bf16.xpose.msra.mxu1 %v9169_v11  ;;  %v9361_v13 = vcombine.low %v1397_v53, %v1405_v0  ;;  %v9344_v11 = vcombine.high %v1380_v10, %v1388_v8  ;;  %v1551_v10 = vld [vmem:[%s10296_s25 + $0xb08] sm:$0xff] }
 0x249   : > { %4670 = vmatprep.subr.bf16.mxu0 %v9408_v14  ;;  %4711 = vmatprep.subr.bf16.mxu1 %v9410_v18  ;;  %v9346_v14 = vcombine.high %v1381_v6, %v1389_v9  ;;  %v1364_v18 = vld [vmem:[%s10296_s25 + $0x530] sm:$0xff]  ;;  %v1559_v8 = vld [vmem:[%s10296_s25 + $0xb48] sm:$0xff] }
 0x24f   : > { %v4524_v41 = vpop.f32.mrf.mxu0  ;;  %v4565_v50 = vpop.f32.mrf.mxu1 }
 0x250   : > { %v4525_v45 = vadd.f32 %v4524_v41, %v10937_v26  ;;  %4671 = vmatpush2.bf16.xpose.msra.mxu0 %v9407_v17  ;;  %4712 = vmatpush2.bf16.xpose.msra.mxu1 %v9409_v33  ;;  %v9345_v17 = vcombine.low %v1381_v6, %v1389_v9  ;;  %v9328_v33 = vcombine.high %v1364_v18, %v1372_v15  ;;  %v1356_v41 = vld [vmem:[%s10296_s25 + $0x4f0] sm:$0xff] }
 0x251   : > { %v4526_v30 = vpop.f32.mrf.mxu0  ;;  %4672 = vmatprep.subr.bf16.mxu0 %v9392_v58  ;;  %v4567_v57 = vpop.f32.mrf.mxu1  ;;  %4713 = vmatprep.subr.bf16.mxu1 %v9394_v37  ;;  %v9330_v58 = vcombine.high %v1365_v12, %v1373_v21  ;;  %v1348_v37 = vld [vmem:[%s10296_s25 + $0x4b0] sm:$0xff] }
 0x252   : > { %v11032_v32 = vadd.f32 %v4565_v50, %v4525_v45  ;;  %v4527_v55 = vadd.f32 %v4526_v30, %v10943_v60  ;;  %v9378_v60 = vcombine.high %v1413_v54, %v1421_v19  ;;  %v1349_v45 = vld [vmem:[%s10296_s25 + $0x4b8] sm:$0xff]  ;;  %v9327_v30 = vcombine.low %v1364_v18, %v1372_v15  ;;  %v1543_v18 = vld [vmem:[%s10296_s25 + $0xac8] sm:$0xff] }
 0x253   : > { %v4528_v62 = vpop.f32.mrf.mxu0  ;;  %v4569_v28 = vpop.f32.mrf.mxu1  ;;  %v1357_v50 = vld [vmem:[%s10296_s25 + $0x4f8] sm:$0xff] }
 0x254   : > { %v11039_v26 = vadd.f32 %v4567_v57, %v4527_v55  ;;  %v9329_v55 = vcombine.low %v1365_v12, %v1373_v21  ;;  %v9312_v57 = vcombine.high %v1348_v37, %v1356_v41  ;;  %v9314_v42 = vcombine.high %v1349_v45, %v1357_v50  ;;  %v1340_v62 = vld [vmem:[%s10296_s25 + $0x470] sm:$0xff]  ;;  %v1333_v54 = vld [vmem:[%s10296_s25 + $0x438] sm:$0xff] }
 0x255   : > { %v4529_v38 = vpop.f32.mrf.mxu0  ;;  %v4570_v31 = vpop.f32.mrf.mxu1  ;;  %v1341_v19 = vld [vmem:[%s10296_s25 + $0x478] sm:$0xff]  ;;  %v9311_v28 = vcombine.low %v1348_v37, %v1356_v41  ;;  %v9295_v63 = vcombine.low %v1332_v43, %v1340_v62  ;;  %v9509_v12 = vcombine.low %v1551_v10, %v1559_v8 }
 0x256   : > { %v9296_v38 = vcombine.high %v1332_v43, %v1340_v62  ;;  %v1574_v31 = vld [vmem:[%s10296_s25 + $0xbc0] sm:$0xff]  ;;  %v9297_v53 = vcombine.low %v1333_v54, %v1341_v19 }
 0x258   : > { %4673 = vmatpush2.bf16.xpose.msra.mxu0 %v9391_v35  ;;  %4714 = vmatpush2.bf16.xpose.msra.mxu1 %v9393_v40  ;;  %v9313_v35 = vcombine.low %v1349_v45, %v1357_v50  ;;  %v9298_v40 = vcombine.high %v1333_v54, %v1341_v19  ;;  %v1502_v50 = vld [vmem:[%s10296_s25 + $0x980] sm:$0xff] }
 0x259   : > { %4674 = vmatprep.subr.bf16.mxu0 %v9376_v46  ;;  %4715 = vmatprep.subr.bf16.mxu1 %v9378_v60  ;;  %v1566_v46 = vld [vmem:[%s10296_s25 + $0xb80] sm:$0xff]  ;;  %v1567_v60 = vld [vmem:[%s10296_s25 + $0xb88] sm:$0xff] }
 0x25a   : > { %v9524_v0 = vcombine.high %v1566_v46, %v1574_v31  ;;  %v9523_v9 = vcombine.low %v1566_v46, %v1574_v31  ;;  %v1486_v19 = vld [vmem:[%s10296_s25 + $0x900] sm:$0xff] }
 0x260   : > { %4675 = vmatpush2.bf16.xpose.msra.mxu0 %v9375_v56  ;;  %4716 = vmatpush2.bf16.xpose.msra.mxu1 %v9377_v3  ;;  %v9526_v56 = vcombine.high %v1567_v60, %v1575_v48  ;;  %v11067_v3 = vrot.slane %v10972_v29, %v10704_v49  ;;  %v9510_v49 = vcombine.high %v1551_v10, %v1559_v8  ;;  %v1534_v29 = vld [vmem:[%s10296_s25 + $0xa80] sm:$0xff] }
 0x261   : > { %4676 = vmatprep.subr.bf16.mxu0 %v9360_v4  ;;  %4717 = vmatprep.subr.bf16.mxu1 %v9362_v5  ;;  %v1550_v4 = vld [vmem:[%s10296_s25 + $0xb00] sm:$0xff] }
 0x262   : > { %v1558_v5 = vld [vmem:[%s10296_s25 + $0xb40] sm:$0xff]  ;;  %v11075_v6 = vcombine.high %v11067_v3, %v11067_v3 }
 0x263   : > { %v9507_v15 = vcombine.low %v1550_v4, %v1558_v5  ;;  %v1454_v8 = vld [vmem:[%s10296_s25 + $0x800] sm:$0xff] }
 0x268   : > { %4677 = vmatpush2.bf16.xpose.msra.mxu0 %v9359_v7  ;;  %4718 = vmatpush2.bf16.xpose.msra.mxu1 %v9361_v13  ;;  %v9525_v7 = vcombine.low %v1567_v60, %v1575_v48  ;;  %v9508_v13 = vcombine.high %v1550_v4, %v1558_v5  ;;  %v1470_v48 = vld [vmem:[%s10296_s25 + $0x880] sm:$0xff] }
 0x269   : > { %4678 = vmatprep.subr.bf16.mxu0 %v9344_v11  ;;  %4719 = vmatprep.subr.bf16.mxu1 %v9346_v14  ;;  %v1542_v11 = vld [vmem:[%s10296_s25 + $0xac0] sm:$0xff]  ;;  %v1535_v14 = vld [vmem:[%s10296_s25 + $0xa88] sm:$0xff] }
 0x26a   : > { %v9492_v21 = vcombine.high %v1534_v29, %v1542_v11  ;;  %v9491_v37 = vcombine.low %v1534_v29, %v1542_v11  ;;  %v9493_v41 = vcombine.low %v1535_v14, %v1543_v18 }
 0x270   : > { %4679 = vmatpush2.bf16.xpose.msra.mxu0 %v9343_v25  ;;  %4720 = vmatpush2.bf16.xpose.msra.mxu1 %v9345_v17  ;;  %v9494_v25 = vcombine.high %v1535_v14, %v1543_v18  ;;  %v1518_v17 = vld [vmem:[%s10296_s25 + $0xa00] sm:$0xff] }
 0x271   : > { %4680 = vmatprep.subr.bf16.mxu0 %v9328_v33  ;;  %4721 = vmatprep.subr.bf16.mxu1 %v9330_v58  ;;  %v1526_v33 = vld [vmem:[%s10296_s25 + $0xa40] sm:$0xff]  ;;  %v1519_v58 = vld [vmem:[%s10296_s25 + $0xa08] sm:$0xff] }
 0x272   : > { %v9476_v45 = vcombine.high %v1518_v17, %v1526_v33  ;;  %v1694_v18 = vld [vmem:[%s10296_s25 + $0xf80] sm:$0xff] }
 0x278   : > { %4681 = vmatpush2.bf16.xpose.msra.mxu0 %v9327_v30  ;;  %4722 = vmatpush2.bf16.xpose.msra.mxu1 %v9329_v55  ;;  %v1510_v30 = vld [vmem:[%s10296_s25 + $0x9c0] sm:$0xff]  ;;  %v1503_v55 = vld [vmem:[%s10296_s25 + $0x988] sm:$0xff] }
 0x279   : > { %4682 = vmatprep.subr.bf16.mxu0 %v9312_v57  ;;  %4723 = vmatprep.subr.bf16.mxu1 %v9314_v42  ;;  %v1511_v57 = vld [vmem:[%s10296_s25 + $0x9c8] sm:$0xff]  ;;  %v9475_v42 = vcombine.low %v1518_v17, %v1526_v33  ;;  %v9460_v62 = vcombine.high %v1502_v50, %v1510_v30 }
 0x27a   : > { %v9462_v54 = vcombine.high %v1503_v55, %v1511_v57  ;;  %v9461_v46 = vcombine.low %v1503_v55, %v1511_v57 }
 0x280   : > { %4683 = vmatpush2.bf16.xpose.msra.mxu0 %v9311_v28  ;;  %4724 = vmatpush2.bf16.xpose.msra.mxu1 %v9313_v35  ;;  %v1494_v28 = vld [vmem:[%s10296_s25 + $0x940] sm:$0xff]  ;;  %v1487_v35 = vld [vmem:[%s10296_s25 + $0x908] sm:$0xff] }
 0x281   : > { %4684 = vmatprep.subr.bf16.mxu0 %v9296_v38  ;;  %4725 = vmatprep.subr.bf16.mxu1 %v9298_v40  ;;  %v1495_v38 = vld [vmem:[%s10296_s25 + $0x948] sm:$0xff]  ;;  %v9459_v40 = vcombine.low %v1502_v50, %v1510_v30  ;;  %v9444_v31 = vcombine.high %v1486_v19, %v1494_v28 }
 0x282   : > { %v9446_v60 = vcombine.high %v1487_v35, %v1495_v38  ;;  %v9445_v4 = vcombine.low %v1487_v35, %v1495_v38  ;;  %v1662_v35 = vld [vmem:[%s10296_s25 + $0xe80] sm:$0xff] }
 0x283   : > { %v1670_v38 = vld [vmem:[%s10296_s25 + $0xec0] sm:$0xff] }
 0x288   : > { %4685 = vmatpush2.bf16.xpose.msra.mxu0 %v9295_v63  ;;  %4726 = vmatpush2.bf16.xpose.msra.mxu1 %v9297_v53  ;;  %v1478_v63 = vld [vmem:[%s10296_s25 + $0x8c0] sm:$0xff]  ;;  %v1471_v53 = vld [vmem:[%s10296_s25 + $0x888] sm:$0xff] }
 0x289   : > { %4736 = vmatprep.subr.bf16.mxu0 %v9524_v0  ;;  %4777 = vmatprep.subr.bf16.mxu1 %v9526_v56  ;;  %v1479_v0 = vld [vmem:[%s10296_s25 + $0x8c8] sm:$0xff]  ;;  %v9443_v56 = vcombine.low %v1486_v19, %v1494_v28  ;;  %v9428_v5 = vcombine.high %v1470_v48, %v1478_v63 }
 0x28a   : > { %v9430_v10 = vcombine.high %v1471_v53, %v1479_v0  ;;  %v9429_v29 = vcombine.low %v1471_v53, %v1479_v0  ;;  %v9620_v0 = vcombine.high %v1662_v35, %v1670_v38 }
 0x28f   : > { %4687 = vmatmul.mubr.bf16.vlgmr.msra.gmra.mxu0 %v11067_v3  ;;  %4728 = vmatmul.mubr.bf16.vlgmr.msra.gmra.mxu1 %v11075_v6 }
 0x290   : > { %4737 = vmatpush1.bf16.xpose.msra.mxu0 %v9523_v9  ;;  %4778 = vmatpush1.bf16.xpose.msra.mxu1 %v9525_v7  ;;  %v1462_v9 = vld [vmem:[%s10296_s25 + $0x840] sm:$0xff]  ;;  %v1455_v7 = vld [vmem:[%s10296_s25 + $0x808] sm:$0xff] }
 0x291   : > { %4738 = vmatprep.subr.bf16.mxu0 %v9508_v13  ;;  %4779 = vmatprep.subr.bf16.mxu1 %v9510_v49  ;;  %v1463_v13 = vld [vmem:[%s10296_s25 + $0x848] sm:$0xff]  ;;  %v9427_v49 = vcombine.low %v1470_v48, %v1478_v63  ;;  %v9412_v11 = vcombine.high %v1454_v8, %v1462_v9 }
 0x292   : > { %4768 = vmatprep.mubr.bf16.mxu0 %v10719_v44  ;;  %4809 = vmatprep.mubr.bf16.mxu1 %v10724_v61  ;;  %v1527_v44 = vld [vmem:[%s10296_s25 + $0xa48] sm:$0xff]  ;;  %v9414_v14 = vcombine.high %v1455_v7, %v1463_v13  ;;  %v9413_v17 = vcombine.low %v1455_v7, %v1463_v13 }
 0x293   : > { %v9478_v61 = vcombine.high %v1519_v58, %v1527_v44  ;;  %v9477_v43 = vcombine.low %v1519_v58, %v1527_v44  ;;  %v1678_v44 = vld [vmem:[%s10296_s25 + $0xf00] sm:$0xff] }
 0x298   : > { %4739 = vmatpush1.bf16.xpose.msra.mxu0 %v9507_v15  ;;  %4780 = vmatpush1.bf16.xpose.msra.mxu1 %v9509_v12  ;;  %v1702_v15 = vld [vmem:[%s10296_s25 + $0xfc0] sm:$0xff]  ;;  %v1695_v12 = vld [vmem:[%s10296_s25 + $0xf88] sm:$0xff] }
 0x299   : > { %4740 = vmatprep.subr.bf16.mxu0 %v9492_v21  ;;  %4781 = vmatprep.subr.bf16.mxu1 %v9494_v25  ;;  %v1703_v21 = vld [vmem:[%s10296_s25 + $0xfc8] sm:$0xff]  ;;  %v9411_v25 = vcombine.low %v1454_v8, %v1462_v9  ;;  %v9652_v33 = vcombine.high %v1694_v18, %v1702_v15  ;;  %v9619_v9 = vcombine.low %v1662_v35, %v1670_v38  ;;  %v1590_v35 = vld [vmem:[%s10296_s25 + $0xc40] sm:$0xff] }
 0x29a   : > { %v9654_v58 = vcombine.high %v1695_v12, %v1703_v21  ;;  %v9653_v50 = vcombine.low %v1695_v12, %v1703_v21  ;;  %v1655_v8 = vld [vmem:[%s10296_s25 + $0xe48] sm:$0xff] }
 0x29b   : > { %v1583_v38 = vld [vmem:[%s10296_s25 + $0xc08] sm:$0xff] }
 0x2a0   : > { %4741 = vmatpush1.bf16.xpose.msra.mxu0 %v9491_v37  ;;  %4782 = vmatpush1.bf16.xpose.msra.mxu1 %v9493_v41  ;;  %v1686_v37 = vld [vmem:[%s10296_s25 + $0xf40] sm:$0xff]  ;;  %v1679_v41 = vld [vmem:[%s10296_s25 + $0xf08] sm:$0xff] }
 0x2a1   : > { %4742 = vmatprep.subr.bf16.mxu0 %v9476_v45  ;;  %4783 = vmatprep.subr.bf16.mxu1 %v9478_v61  ;;  %v1687_v45 = vld [vmem:[%s10296_s25 + $0xf48] sm:$0xff]  ;;  %v9651_v61 = vcombine.low %v1694_v18, %v1702_v15  ;;  %v9636_v30 = vcombine.high %v1678_v44, %v1686_v37  ;;  %v9635_v48 = vcombine.low %v1678_v44, %v1686_v37 }
 0x2a2   : > { %v9638_v55 = vcombine.high %v1679_v41, %v1687_v45  ;;  %v9637_v53 = vcombine.low %v1679_v41, %v1687_v45  ;;  %v1639_v18 = vld [vmem:[%s10296_s25 + $0xdc8] sm:$0xff] }
 0x2a3   : > { %v1623_v44 = vld [vmem:[%s10296_s25 + $0xd48] sm:$0xff] }
 0x2a8   : > { %4743 = vmatpush1.bf16.xpose.msra.mxu0 %v9475_v42  ;;  %4784 = vmatpush1.bf16.xpose.msra.mxu1 %v9477_v43 }
 0x2a9   : > { %4744 = vmatprep.subr.bf16.mxu0 %v9460_v62  ;;  %4785 = vmatprep.subr.bf16.mxu1 %v9462_v54 }
 0x2b0   : > { %4745 = vmatpush1.bf16.xpose.msra.mxu0 %v9459_v40  ;;  %4786 = vmatpush1.bf16.xpose.msra.mxu1 %v9461_v46  ;;  %v1663_v46 = vld [vmem:[%s10296_s25 + $0xe88] sm:$0xff] }
 0x2b1   : > { %4746 = vmatprep.subr.bf16.mxu0 %v9444_v31  ;;  %4787 = vmatprep.subr.bf16.mxu1 %v9446_v60  ;;  %v1671_v31 = vld [vmem:[%s10296_s25 + $0xec8] sm:$0xff] }
 0x2b2   : > { %v9621_v7 = vcombine.low %v1663_v46, %v1671_v31 }
 0x2b8   : > { %4747 = vmatpush1.bf16.xpose.msra.mxu0 %v9443_v56  ;;  %4788 = vmatpush1.bf16.xpose.msra.mxu1 %v9445_v4  ;;  %v1646_v4 = vld [vmem:[%s10296_s25 + $0xe00] sm:$0xff] }
 0x2b9   : > { %4748 = vmatprep.subr.bf16.mxu0 %v9428_v5  ;;  %4789 = vmatprep.subr.bf16.mxu1 %v9430_v10  ;;  %v1654_v5 = vld [vmem:[%s10296_s25 + $0xe40] sm:$0xff]  ;;  %v1647_v10 = vld [vmem:[%s10296_s25 + $0xe08] sm:$0xff] }
 0x2ba   : > { %v9604_v13 = vcombine.high %v1646_v4, %v1654_v5  ;;  %v9603_v15 = vcombine.low %v1646_v4, %v1654_v5  ;;  %v9605_v12 = vcombine.low %v1647_v10, %v1655_v8 }
 0x2c0   : > { %4749 = vmatpush1.bf16.xpose.msra.mxu0 %v9427_v49  ;;  %4790 = vmatpush1.bf16.xpose.msra.mxu1 %v9429_v29  ;;  %v9606_v49 = vcombine.high %v1647_v10, %v1655_v8  ;;  %v1630_v29 = vld [vmem:[%s10296_s25 + $0xd80] sm:$0xff]  ;;  %v1552_v8 = vld [vmem:[%s10296_s25 + $0xb10] sm:$0xff] }
 0x2c1   : > { %4750 = vmatprep.subr.bf16.mxu0 %v9412_v11  ;;  %4791 = vmatprep.subr.bf16.mxu1 %v9414_v14  ;;  %v1638_v11 = vld [vmem:[%s10296_s25 + $0xdc0] sm:$0xff]  ;;  %v1631_v14 = vld [vmem:[%s10296_s25 + $0xd88] sm:$0xff] }
 0x2c2   : > { %v9588_v21 = vcombine.high %v1630_v29, %v1638_v11  ;;  %v9587_v37 = vcombine.low %v1630_v29, %v1638_v11  ;;  %v9589_v41 = vcombine.low %v1631_v14, %v1639_v18 }
 0x2c8   : > { %4751 = vmatpush1.bf16.xpose.msra.mxu0 %v9411_v25  ;;  %4792 = vmatpush1.bf16.xpose.msra.mxu1 %v9413_v17  ;;  %v9590_v25 = vcombine.high %v1631_v14, %v1639_v18  ;;  %v1614_v17 = vld [vmem:[%s10296_s25 + $0xd00] sm:$0xff]  ;;  %v1536_v18 = vld [vmem:[%s10296_s25 + $0xa90] sm:$0xff] }
 0x2c9   : > { %4752 = vmatprep.subr.bf16.mxu0 %v9652_v33  ;;  %4793 = vmatprep.subr.bf16.mxu1 %v9654_v58  ;;  %v1622_v33 = vld [vmem:[%s10296_s25 + $0xd40] sm:$0xff]  ;;  %v1615_v58 = vld [vmem:[%s10296_s25 + $0xd08] sm:$0xff] }
 0x2ca   : > { %v9572_v45 = vcombine.high %v1614_v17, %v1622_v33 }
 0x2cf   : > { %v4606_v57 = vpop.f32.mrf.mxu0  ;;  %v4647_v43 = vpop.f32.mrf.mxu1 }
 0x2d0   : > { %v4607_v42 = vadd.f32 %v4606_v57, %v11032_v32  ;;  %4753 = vmatpush2.bf16.xpose.msra.mxu0 %v9651_v61  ;;  %4794 = vmatpush2.bf16.xpose.msra.mxu1 %v9653_v50  ;;  %v9574_v61 = vcombine.high %v1615_v58, %v1623_v44  ;;  %v1598_v50 = vld [vmem:[%s10296_s25 + $0xc80] sm:$0xff]  ;;  %v1607_v57 = vld [vmem:[%s10296_s25 + $0xcc8] sm:$0xff] }
 0x2d1   : > { %v4608_v62 = vpop.f32.mrf.mxu0  ;;  %4754 = vmatprep.subr.bf16.mxu0 %v9636_v30  ;;  %v4649_v28 = vpop.f32.mrf.mxu1  ;;  %4795 = vmatprep.subr.bf16.mxu1 %v9638_v55  ;;  %v1606_v30 = vld [vmem:[%s10296_s25 + $0xcc0] sm:$0xff]  ;;  %v1599_v55 = vld [vmem:[%s10296_s25 + $0xc88] sm:$0xff] }
 0x2d2   : > { %v11114_v54 = vadd.f32 %v4647_v43, %v4607_v42  ;;  %v4609_v19 = vadd.f32 %v4608_v62, %v11039_v26  ;;  %v9622_v26 = vcombine.high %v1663_v46, %v1671_v31  ;;  %v9571_v42 = vcombine.low %v1614_v17, %v1622_v33  ;;  %v1520_v33 = vld [vmem:[%s10296_s25 + $0xa10] sm:$0xff] }
 0x2d3   : > { %v4610_v40 = vpop.f32.mrf.mxu0  ;;  %v4651_v60 = vpop.f32.mrf.mxu1  ;;  %v9573_v43 = vcombine.low %v1615_v58, %v1623_v44  ;;  %v9556_v62 = vcombine.high %v1598_v50, %v1606_v30  ;;  %v9555_v46 = vcombine.low %v1598_v50, %v1606_v30  ;;  %v9557_v31 = vcombine.low %v1599_v55, %v1607_v57  ;;  %v1528_v58 = vld [vmem:[%s10296_s25 + $0xa50] sm:$0xff]  ;;  %v1521_v44 = vld [vmem:[%s10296_s25 + $0xa18] sm:$0xff] }
 0x2d4   : > { %v11121_v32 = vadd.f32 %v4649_v28, %v4609_v19  ;;  %v9558_v19 = vcombine.high %v1599_v55, %v1607_v57  ;;  %v1582_v28 = vld [vmem:[%s10296_s25 + $0xc00] sm:$0xff]  ;;  %v1591_v40 = vld [vmem:[%s10296_s25 + $0xc48] sm:$0xff]  ;;  %v1512_v50 = vld [vmem:[%s10296_s25 + $0x9d0] sm:$0xff]  ;;  %v9479_v57 = vcombine.low %v1520_v33, %v1528_v58 }
 0x2d5   : > { %v4611_v63 = vpop.f32.mrf.mxu0  ;;  %v4652_v56 = vpop.f32.mrf.mxu1  ;;  %v9540_v60 = vcombine.high %v1582_v28, %v1590_v35  ;;  %v9541_v4 = vcombine.low %v1583_v38, %v1591_v40  ;;  %v1505_v30 = vld [vmem:[%s10296_s25 + $0x998] sm:$0xff] }
 0x2d6   : > { %v1568_v63 = vld [vmem:[%s10296_s25 + $0xb90] sm:$0xff]  ;;  %v1577_v56 = vld [vmem:[%s10296_s25 + $0xbd8] sm:$0xff] }
 0x2d7   : > { %v1513_v55 = vld [vmem:[%s10296_s25 + $0x9d8] sm:$0xff] }
 0x2d8   : > { %4755 = vmatpush2.bf16.xpose.msra.mxu0 %v9635_v48  ;;  %4796 = vmatpush2.bf16.xpose.msra.mxu1 %v9637_v53  ;;  %v9542_v48 = vcombine.high %v1583_v38, %v1591_v40  ;;  %v1576_v53 = vld [vmem:[%s10296_s25 + $0xbd0] sm:$0xff]  ;;  %v1497_v38 = vld [vmem:[%s10296_s25 + $0x958] sm:$0xff] }
 0x2d9   : > { %4756 = vmatprep.subr.bf16.mxu0 %v9620_v0  ;;  %4797 = vmatprep.subr.bf16.mxu1 %v9622_v26  ;;  %v1569_v0 = vld [vmem:[%s10296_s25 + $0xb98] sm:$0xff]  ;;  %v9539_v26 = vcombine.low %v1582_v28, %v1590_v35  ;;  %v9528_v5 = vcombine.high %v1568_v63, %v1576_v53  ;;  %v1496_v28 = vld [vmem:[%s10296_s25 + $0x950] sm:$0xff] }
 0x2da   : > { %v9530_v10 = vcombine.high %v1569_v0, %v1577_v56  ;;  %v9529_v29 = vcombine.low %v1569_v0, %v1577_v56  ;;  %v1489_v35 = vld [vmem:[%s10296_s25 + $0x918] sm:$0xff] }
 0x2db   : > { %v1481_v0 = vld [vmem:[%s10296_s25 + $0x8d8] sm:$0xff] }
 0x2e0   : > { %4757 = vmatpush2.bf16.xpose.msra.mxu0 %v9619_v9  ;;  %4798 = vmatpush2.bf16.xpose.msra.mxu1 %v9621_v7  ;;  %v1560_v9 = vld [vmem:[%s10296_s25 + $0xb50] sm:$0xff]  ;;  %v1553_v7 = vld [vmem:[%s10296_s25 + $0xb18] sm:$0xff] }
 0x2e1   : > { %4758 = vmatprep.subr.bf16.mxu0 %v9604_v13  ;;  %4799 = vmatprep.subr.bf16.mxu1 %v9606_v49  ;;  %v1561_v13 = vld [vmem:[%s10296_s25 + $0xb58] sm:$0xff]  ;;  %v9527_v49 = vcombine.low %v1568_v63, %v1576_v53  ;;  %v9512_v11 = vcombine.high %v1552_v8, %v1560_v9  ;;  %v1480_v63 = vld [vmem:[%s10296_s25 + $0x8d0] sm:$0xff] }
 0x2e2   : > { %v9514_v14 = vcombine.high %v1553_v7, %v1561_v13  ;;  %v1473_v53 = vld [vmem:[%s10296_s25 + $0x898] sm:$0xff] }
 0x2e8   : > { %4759 = vmatpush2.bf16.xpose.msra.mxu0 %v9603_v15  ;;  %4800 = vmatpush2.bf16.xpose.msra.mxu1 %v9605_v12  ;;  %v1544_v15 = vld [vmem:[%s10296_s25 + $0xad0] sm:$0xff]  ;;  %v1537_v12 = vld [vmem:[%s10296_s25 + $0xa98] sm:$0xff] }
 0x2e9   : > { %4760 = vmatprep.subr.bf16.mxu0 %v9588_v21  ;;  %4801 = vmatprep.subr.bf16.mxu1 %v9590_v25  ;;  %v1545_v21 = vld [vmem:[%s10296_s25 + $0xad8] sm:$0xff]  ;;  %v9511_v25 = vcombine.low %v1552_v8, %v1560_v9  ;;  %v9496_v17 = vcombine.high %v1536_v18, %v1544_v15  ;;  %v1464_v8 = vld [vmem:[%s10296_s25 + $0x850] sm:$0xff] }
 0x2ea   : > { %v1457_v9 = vld [vmem:[%s10296_s25 + $0x818] sm:$0xff] }
 0x2f0   : > { %4761 = vmatpush2.bf16.xpose.msra.mxu0 %v9587_v37  ;;  %4802 = vmatpush2.bf16.xpose.msra.mxu1 %v9589_v41  ;;  %v9495_v37 = vcombine.low %v1536_v18, %v1544_v15  ;;  %v9497_v41 = vcombine.low %v1537_v12, %v1545_v21  ;;  %v1704_v18 = vld [vmem:[%s10296_s25 + $0xfd0] sm:$0xff]  ;;  %v1697_v15 = vld [vmem:[%s10296_s25 + $0xf98] sm:$0xff] }
 0x2f1   : > { %4762 = vmatprep.subr.bf16.mxu0 %v9572_v45  ;;  %4803 = vmatprep.subr.bf16.mxu1 %v9574_v61  ;;  %v9480_v45 = vcombine.high %v1520_v33, %v1528_v58  ;;  %v1504_v61 = vld [vmem:[%s10296_s25 + $0x990] sm:$0xff]  ;;  %v1681_v58 = vld [vmem:[%s10296_s25 + $0xf18] sm:$0xff] }
 0x2f2   : > { %v9463_v40 = vcombine.low %v1504_v61, %v1512_v50  ;;  %v1688_v33 = vld [vmem:[%s10296_s25 + $0xf50] sm:$0xff] }
 0x2f8   : > { %4763 = vmatpush2.bf16.xpose.msra.mxu0 %v9571_v42  ;;  %4804 = vmatpush2.bf16.xpose.msra.mxu1 %v9573_v43  ;;  %v9464_v43 = vcombine.high %v1504_v61, %v1512_v50 }
 0x2f9   : > { %4764 = vmatprep.subr.bf16.mxu0 %v9556_v62  ;;  %4805 = vmatprep.subr.bf16.mxu1 %v9558_v19  ;;  %v9466_v62 = vcombine.high %v1505_v30, %v1513_v55  ;;  %v1488_v19 = vld [vmem:[%s10296_s25 + $0x910] sm:$0xff] }
 0x2fa   : > { %v9447_v56 = vcombine.low %v1488_v19, %v1496_v28 }
 0x300   : > { %4765 = vmatpush2.bf16.xpose.msra.mxu0 %v9555_v46  ;;  %4806 = vmatpush2.bf16.xpose.msra.mxu1 %v9557_v31  ;;  %v9465_v46 = vcombine.low %v1505_v30, %v1513_v55  ;;  %v9448_v31 = vcombine.high %v1488_v19, %v1496_v28  ;;  %v1665_v28 = vld [vmem:[%s10296_s25 + $0xe98] sm:$0xff] }
 0x301   : > { %4766 = vmatprep.subr.bf16.mxu0 %v9540_v60  ;;  %4807 = vmatprep.subr.bf16.mxu1 %v9542_v48  ;;  %v9450_v60 = vcombine.high %v1489_v35, %v1497_v38  ;;  %v1472_v48 = vld [vmem:[%s10296_s25 + $0x890] sm:$0xff] }
 0x308   : > { %4767 = vmatpush2.bf16.xpose.msra.mxu0 %v9539_v26  ;;  %4808 = vmatpush2.bf16.xpose.msra.mxu1 %v9541_v4  ;;  %v9449_v26 = vcombine.low %v1489_v35, %v1497_v38  ;;  %v9432_v4 = vcombine.high %v1472_v48, %v1480_v63  ;;  %v1673_v35 = vld [vmem:[%s10296_s25 + $0xed8] sm:$0xff] }
 0x309   : > { %4818 = vmatprep.subr.bf16.mxu0 %v9528_v5  ;;  %4859 = vmatprep.subr.bf16.mxu1 %v9530_v10  ;;  %v9434_v5 = vcombine.high %v1473_v53, %v1481_v0  ;;  %v1456_v10 = vld [vmem:[%s10296_s25 + $0x810] sm:$0xff] }
 0x30f   : > { %4769 = vmatmul.mubr.bf16.vlgmr.msra.gmra.mxu0 %v10782_v23  ;;  %4810 = vmatmul.mubr.bf16.vlgmr.msra.gmra.mxu1 %v10795_v51  ;;  %v9513_v23 = vcombine.low %v1553_v7, %v1561_v13  ;;  %v9498_v51 = vcombine.high %v1537_v12, %v1545_v21  ;;  %v1465_v7 = vld [vmem:[%s10296_s25 + $0x858] sm:$0xff]  ;;  %v9431_v13 = vcombine.low %v1472_v48, %v1480_v63  ;;  %v1648_v63 = vld [vmem:[%s10296_s25 + $0xe10] sm:$0xff] }
 0x310   : > { %4819 = vmatpush1.bf16.xpose.msra.mxu0 %v9527_v49  ;;  %4860 = vmatpush1.bf16.xpose.msra.mxu1 %v9529_v29  ;;  %v9433_v49 = vcombine.low %v1473_v53, %v1481_v0  ;;  %v9416_v29 = vcombine.high %v1456_v10, %v1464_v8  ;;  %v1705_v12 = vld [vmem:[%s10296_s25 + $0xfd8] sm:$0xff]  ;;  %v9415_v21 = vcombine.low %v1456_v10, %v1464_v8  ;;  %v1656_v53 = vld [vmem:[%s10296_s25 + $0xe50] sm:$0xff] }
 0x311   : > { %4820 = vmatprep.subr.bf16.mxu0 %v9512_v11  ;;  %4861 = vmatprep.subr.bf16.mxu1 %v9514_v14  ;;  %v9418_v11 = vcombine.high %v1457_v9, %v1465_v7  ;;  %v1696_v14 = vld [vmem:[%s10296_s25 + $0xf90] sm:$0xff]  ;;  %v1649_v0 = vld [vmem:[%s10296_s25 + $0xe18] sm:$0xff] }
 0x312   : > { %4850 = vmatprep.mubr.bf16.mxu0 %v10791_v36  ;;  %4891 = vmatprep.mubr.bf16.mxu1 %v10800_v59  ;;  %v1529_v36 = vld [vmem:[%s10296_s25 + $0xa58] sm:$0xff]  ;;  %v1632_v8 = vld [vmem:[%s10296_s25 + $0xd90] sm:$0xff] }
 0x313   : > { %v9482_v59 = vcombine.high %v1521_v44, %v1529_v36  ;;  %v9481_v42 = vcombine.low %v1521_v44, %v1529_v36  ;;  %v1689_v44 = vld [vmem:[%s10296_s25 + $0xf58] sm:$0xff]  ;;  %v9655_v36 = vcombine.low %v1696_v14, %v1704_v18 }
 0x318   : > { %4821 = vmatpush1.bf16.xpose.msra.mxu0 %v9511_v25  ;;  %4862 = vmatpush1.bf16.xpose.msra.mxu1 %v9513_v23  ;;  %v9417_v25 = vcombine.low %v1457_v9, %v1465_v7  ;;  %v9656_v23 = vcombine.high %v1696_v14, %v1704_v18  ;;  %v1640_v9 = vld [vmem:[%s10296_s25 + $0xdd0] sm:$0xff]  ;;  %v1633_v7 = vld [vmem:[%s10296_s25 + $0xd98] sm:$0xff] }
 0x319   : > { %4822 = vmatprep.subr.bf16.mxu0 %v9496_v17  ;;  %4863 = vmatprep.subr.bf16.mxu1 %v9498_v51  ;;  %v9658_v17 = vcombine.high %v1697_v15, %v1705_v12  ;;  %v1680_v51 = vld [vmem:[%s10296_s25 + $0xf10] sm:$0xff] }
 0x31a   : > { %v1616_v18 = vld [vmem:[%s10296_s25 + $0xd10] sm:$0xff] }
 0x320   : > { %4823 = vmatpush1.bf16.xpose.msra.mxu0 %v9495_v37  ;;  %4864 = vmatpush1.bf16.xpose.msra.mxu1 %v9497_v41  ;;  %v9657_v37 = vcombine.low %v1697_v15, %v1705_v12  ;;  %v9640_v41 = vcombine.high %v1680_v51, %v1688_v33  ;;  %v1624_v15 = vld [vmem:[%s10296_s25 + $0xd50] sm:$0xff]  ;;  %v1617_v12 = vld [vmem:[%s10296_s25 + $0xd18] sm:$0xff] }
 0x321   : > { %4824 = vmatprep.subr.bf16.mxu0 %v9480_v45  ;;  %4865 = vmatprep.subr.bf16.mxu1 %v9482_v59  ;;  %v9642_v45 = vcombine.high %v1681_v58, %v1689_v44 }
 0x328   : > { %4825 = vmatpush1.bf16.xpose.msra.mxu0 %v9479_v57  ;;  %4866 = vmatpush1.bf16.xpose.msra.mxu1 %v9481_v42 }
 0x329   : > { %4826 = vmatprep.subr.bf16.mxu0 %v9464_v43  ;;  %4867 = vmatprep.subr.bf16.mxu1 %v9466_v62  ;;  %v1664_v43 = vld [vmem:[%s10296_s25 + $0xe90] sm:$0xff] }
 0x32a   : > { %v1672_v62 = vld [vmem:[%s10296_s25 + $0xed0] sm:$0xff] }
 0x330   : > { %4827 = vmatpush1.bf16.xpose.msra.mxu0 %v9463_v40  ;;  %4868 = vmatpush1.bf16.xpose.msra.mxu1 %v9465_v46  ;;  %v9639_v40 = vcombine.low %v1680_v51, %v1688_v33  ;;  %v1600_v33 = vld [vmem:[%s10296_s25 + $0xc90] sm:$0xff] }
 0x331   : > { %4828 = vmatprep.subr.bf16.mxu0 %v9448_v31  ;;  %4869 = vmatprep.subr.bf16.mxu1 %v9450_v60  ;;  %v9641_v31 = vcombine.low %v1681_v58, %v1689_v44  ;;  %v9624_v60 = vcombine.high %v1664_v43, %v1672_v62  ;;  %v1608_v58 = vld [vmem:[%s10296_s25 + $0xcd0] sm:$0xff]  ;;  %v1601_v44 = vld [vmem:[%s10296_s25 + $0xc98] sm:$0xff] }
 0x338   : > { %4829 = vmatpush1.bf16.xpose.msra.mxu0 %v9447_v56  ;;  %4870 = vmatpush1.bf16.xpose.msra.mxu1 %v9449_v26  ;;  %v1657_v56 = vld [vmem:[%s10296_s25 + $0xe58] sm:$0xff]  ;;  %v9623_v26 = vcombine.low %v1664_v43, %v1672_v62 }
 0x339   : > { %4830 = vmatprep.subr.bf16.mxu0 %v9432_v4  ;;  %4871 = vmatprep.subr.bf16.mxu1 %v9434_v5  ;;  %v9625_v4 = vcombine.low %v1665_v28, %v1673_v35  ;;  %v9608_v5 = vcombine.high %v1648_v63, %v1656_v53  ;;  %v9610_v10 = vcombine.high %v1649_v0, %v1657_v56 }
 0x340   : > { %4831 = vmatpush1.bf16.xpose.msra.mxu0 %v9431_v13  ;;  %4872 = vmatpush1.bf16.xpose.msra.mxu1 %v9433_v49  ;;  %v1641_v13 = vld [vmem:[%s10296_s25 + $0xdd8] sm:$0xff]  ;;  %v9607_v49 = vcombine.low %v1648_v63, %v1656_v53  ;;  %v1562_v63 = vld [vmem:[%s10296_s25 + $0xb60] sm:$0xff]  ;;  %v1555_v53 = vld [vmem:[%s10296_s25 + $0xb28] sm:$0xff] }
 0x341   : > { %4832 = vmatprep.subr.bf16.mxu0 %v9416_v29  ;;  %4873 = vmatprep.subr.bf16.mxu1 %v9418_v11  ;;  %v9609_v29 = vcombine.low %v1649_v0, %v1657_v56  ;;  %v9592_v11 = vcombine.high %v1632_v8, %v1640_v9  ;;  %v9594_v14 = vcombine.high %v1633_v7, %v1641_v13  ;;  %v1563_v0 = vld [vmem:[%s10296_s25 + $0xb68] sm:$0xff] }
 0x348   : > { %4833 = vmatpush1.bf16.xpose.msra.mxu0 %v9415_v21  ;;  %4874 = vmatpush1.bf16.xpose.msra.mxu1 %v9417_v25  ;;  %v1625_v21 = vld [vmem:[%s10296_s25 + $0xd58] sm:$0xff]  ;;  %v9591_v25 = vcombine.low %v1632_v8, %v1640_v9  ;;  %v1546_v8 = vld [vmem:[%s10296_s25 + $0xae0] sm:$0xff]  ;;  %v1539_v9 = vld [vmem:[%s10296_s25 + $0xaa8] sm:$0xff] }
 0x349   : > { %4834 = vmatprep.subr.bf16.mxu0 %v9656_v23  ;;  %4875 = vmatprep.subr.bf16.mxu1 %v9658_v17  ;;  %v9593_v23 = vcombine.low %v1633_v7, %v1641_v13  ;;  %v9576_v17 = vcombine.high %v1616_v18, %v1624_v15  ;;  %v9578_v51 = vcombine.high %v1617_v12, %v1625_v21  ;;  %v1547_v7 = vld [vmem:[%s10296_s25 + $0xae8] sm:$0xff] }
 0x34f   : > { %v4688_v59 = vpop.f32.mrf.mxu0  ;;  %v4729_v50 = vpop.f32.mrf.mxu1 }
 0x350   : > { %v4689_v61 = vadd.f32 %v4688_v59, %v11114_v54  ;;  %4835 = vmatpush2.bf16.xpose.msra.mxu0 %v9655_v36  ;;  %4876 = vmatpush2.bf16.xpose.msra.mxu1 %v9657_v37  ;;  %v1609_v36 = vld [vmem:[%s10296_s25 + $0xcd8] sm:$0xff]  ;;  %v9575_v37 = vcombine.low %v1616_v18, %v1624_v15  ;;  %v9501_v15 = vcombine.low %v1539_v9, %v1547_v7 }
 0x351   : > { %v4690_v30 = vpop.f32.mrf.mxu0  ;;  %4836 = vmatprep.subr.bf16.mxu0 %v9640_v41  ;;  %v4731_v42 = vpop.f32.mrf.mxu1  ;;  %4877 = vmatprep.subr.bf16.mxu1 %v9642_v45  ;;  %v9577_v41 = vcombine.low %v1617_v12, %v1625_v21  ;;  %v9560_v45 = vcombine.high %v1600_v33, %v1608_v58  ;;  %v9562_v59 = vcombine.high %v1601_v44, %v1609_v36  ;;  %v1506_v21 = vld [vmem:[%s10296_s25 + $0x9a0] sm:$0xff] }
 0x352   : > { %v11188_v55 = vadd.f32 %v4729_v50, %v4689_v61  ;;  %v4691_v57 = vadd.f32 %v4690_v30, %v11121_v32  ;;  %v9626_v32 = vcombine.high %v1665_v28, %v1673_v35  ;;  %v1584_v61 = vld [vmem:[%s10296_s25 + $0xc10] sm:$0xff]  ;;  %v1585_v30 = vld [vmem:[%s10296_s25 + $0xc18] sm:$0xff]  ;;  %v9561_v43 = vcombine.low %v1601_v44, %v1609_v36  ;;  %v1570_v28 = vld [vmem:[%s10296_s25 + $0xba0] sm:$0xff] }
 0x353   : > { %v4692_v19 = vpop.f32.mrf.mxu0  ;;  %v4733_v38 = vpop.f32.mrf.mxu1  ;;  %v1592_v50 = vld [vmem:[%s10296_s25 + $0xc50] sm:$0xff]  ;;  %v1578_v35 = vld [vmem:[%s10296_s25 + $0xbe0] sm:$0xff] }
 0x354   : > { %v11195_v54 = vadd.f32 %v4731_v42, %v4691_v57  ;;  %v1593_v57 = vld [vmem:[%s10296_s25 + $0xc58] sm:$0xff]  ;;  %v9559_v42 = vcombine.low %v1600_v33, %v1608_v58  ;;  %v9544_v62 = vcombine.high %v1584_v61, %v1592_v50  ;;  %v1571_v38 = vld [vmem:[%s10296_s25 + $0xba8] sm:$0xff]  ;;  %v9531_v56 = vcombine.low %v1570_v28, %v1578_v35  ;;  %v1490_v36 = vld [vmem:[%s10296_s25 + $0x920] sm:$0xff] }
 0x355   : > { %v4693_v46 = vpop.f32.mrf.mxu0  ;;  %v4734_v48 = vpop.f32.mrf.mxu1  ;;  %v9546_v19 = vcombine.high %v1585_v30, %v1593_v57 }
 0x356   : > { %v9543_v46 = vcombine.low %v1584_v61, %v1592_v50 }
 0x358   : > { %4837 = vmatpush2.bf16.xpose.msra.mxu0 %v9639_v40  ;;  %4878 = vmatpush2.bf16.xpose.msra.mxu1 %v9641_v31  ;;  %v1579_v40 = vld [vmem:[%s10296_s25 + $0xbe8] sm:$0xff]  ;;  %v9545_v31 = vcombine.low %v1585_v30, %v1593_v57  ;;  %v1474_v57 = vld [vmem:[%s10296_s25 + $0x8a0] sm:$0xff] }
 0x359   : > { %4838 = vmatprep.subr.bf16.mxu0 %v9624_v60  ;;  %4879 = vmatprep.subr.bf16.mxu1 %v9626_v32  ;;  %v9532_v60 = vcombine.high %v1570_v28, %v1578_v35  ;;  %v9534_v48 = vcombine.high %v1571_v38, %v1579_v40  ;;  %v1554_v32 = vld [vmem:[%s10296_s25 + $0xb20] sm:$0xff] }
 0x35a   : > { %v9515_v13 = vcombine.low %v1554_v32, %v1562_v63 }
 0x360   : > { %4839 = vmatpush2.bf16.xpose.msra.mxu0 %v9623_v26  ;;  %4880 = vmatpush2.bf16.xpose.msra.mxu1 %v9625_v4  ;;  %v9533_v26 = vcombine.low %v1571_v38, %v1579_v40  ;;  %v9516_v4 = vcombine.high %v1554_v32, %v1562_v63  ;;  %v1458_v40 = vld [vmem:[%s10296_s25 + $0x820] sm:$0xff] }
 0x361   : > { %4840 = vmatprep.subr.bf16.mxu0 %v9608_v5  ;;  %4881 = vmatprep.subr.bf16.mxu1 %v9610_v10  ;;  %v9518_v5 = vcombine.high %v1555_v53, %v1563_v0  ;;  %v1538_v10 = vld [vmem:[%s10296_s25 + $0xaa0] sm:$0xff] }
 0x362   : > { %v9499_v18 = vcombine.low %v1538_v10, %v1546_v8 }
 0x368   : > { %4841 = vmatpush2.bf16.xpose.msra.mxu0 %v9607_v49  ;;  %4882 = vmatpush2.bf16.xpose.msra.mxu1 %v9609_v29  ;;  %v9500_v49 = vcombine.high %v1538_v10, %v1546_v8  ;;  %v1522_v29 = vld [vmem:[%s10296_s25 + $0xa20] sm:$0xff] }
 0x369   : > { %4842 = vmatprep.subr.bf16.mxu0 %v9592_v11  ;;  %4883 = vmatprep.subr.bf16.mxu1 %v9594_v14  ;;  %v1530_v11 = vld [vmem:[%s10296_s25 + $0xa60] sm:$0xff]  ;;  %v1523_v14 = vld [vmem:[%s10296_s25 + $0xa28] sm:$0xff] }
 0x36a   : > { %v9484_v12 = vcombine.high %v1522_v29, %v1530_v11 }
 0x370   : > { %4843 = vmatpush2.bf16.xpose.msra.mxu0 %v9591_v25  ;;  %4884 = vmatpush2.bf16.xpose.msra.mxu1 %v9593_v23  ;;  %v1514_v25 = vld [vmem:[%s10296_s25 + $0x9e0] sm:$0xff]  ;;  %v1507_v23 = vld [vmem:[%s10296_s25 + $0x9a8] sm:$0xff] }
 0x371   : > { %4844 = vmatprep.subr.bf16.mxu0 %v9576_v17  ;;  %4885 = vmatprep.subr.bf16.mxu1 %v9578_v51  ;;  %v1515_v17 = vld [vmem:[%s10296_s25 + $0x9e8] sm:$0xff]  ;;  %v9483_v51 = vcombine.low %v1522_v29, %v1530_v11  ;;  %v9468_v58 = vcombine.high %v1506_v21, %v1514_v25  ;;  %v10208_v11 = vld [vmem:[%s10301_s28] sm:$0xf] }
 0x372   : > { %v9470_v44 = vcombine.high %v1507_v23, %v1515_v17  ;;  %v9469_v61 = vcombine.low %v1507_v23, %v1515_v17  ;;  %v1691_v29 = vld [vmem:[%s10296_s25 + $0xf68] sm:$0xff] }
 0x378   : > { %4845 = vmatpush2.bf16.xpose.msra.mxu0 %v9575_v37  ;;  %4886 = vmatpush2.bf16.xpose.msra.mxu1 %v9577_v41  ;;  %v1498_v37 = vld [vmem:[%s10296_s25 + $0x960] sm:$0xff]  ;;  %v1491_v41 = vld [vmem:[%s10296_s25 + $0x928] sm:$0xff] }
 0x379   : > { %4846 = vmatprep.subr.bf16.mxu0 %v9560_v45  ;;  %4887 = vmatprep.subr.bf16.mxu1 %v9562_v59  ;;  %v1499_v45 = vld [vmem:[%s10296_s25 + $0x968] sm:$0xff]  ;;  %v9467_v59 = vcombine.low %v1506_v21, %v1514_v25  ;;  %v9452_v50 = vcombine.high %v1490_v36, %v1498_v37 }
 0x37a   : > { %v9454_v30 = vcombine.high %v1491_v41, %v1499_v45  ;;  %v9453_v28 = vcombine.low %v1491_v41, %v1499_v45  ;;  %v1667_v41 = vld [vmem:[%s10296_s25 + $0xea8] sm:$0xff] }
 0x37b   : > { %v1675_v45 = vld [vmem:[%s10296_s25 + $0xee8] sm:$0xff] }
 0x380   : > { %4847 = vmatpush2.bf16.xpose.msra.mxu0 %v9559_v42  ;;  %4888 = vmatpush2.bf16.xpose.msra.mxu1 %v9561_v43  ;;  %v1482_v42 = vld [vmem:[%s10296_s25 + $0x8e0] sm:$0xff]  ;;  %v1475_v43 = vld [vmem:[%s10296_s25 + $0x8a8] sm:$0xff] }
 0x381   : > { %4848 = vmatprep.subr.bf16.mxu0 %v9544_v62  ;;  %4889 = vmatprep.subr.bf16.mxu1 %v9546_v19  ;;  %v1483_v62 = vld [vmem:[%s10296_s25 + $0x8e8] sm:$0xff]  ;;  %v9451_v19 = vcombine.low %v1490_v36, %v1498_v37  ;;  %v9436_v35 = vcombine.high %v1474_v57, %v1482_v42  ;;  %v1674_v36 = vld [vmem:[%s10296_s25 + $0xee0] sm:$0xff] }
 0x382   : > { %v9438_v38 = vcombine.high %v1475_v43, %v1483_v62  ;;  %v9437_v32 = vcombine.low %v1475_v43, %v1483_v62  ;;  %v9630_v62 = vcombine.high %v1667_v41, %v1675_v45 }
 0x388   : > { %4849 = vmatpush2.bf16.xpose.msra.mxu0 %v9543_v46  ;;  %4890 = vmatpush2.bf16.xpose.msra.mxu1 %v9545_v31  ;;  %v1466_v46 = vld [vmem:[%s10296_s25 + $0x860] sm:$0xff]  ;;  %v1459_v31 = vld [vmem:[%s10296_s25 + $0x828] sm:$0xff] }
 0x389   : > { %4900 = vmatprep.subr.bf16.mxu0 %v9532_v60  ;;  %4941 = vmatprep.subr.bf16.mxu1 %v9534_v48  ;;  %v1467_v60 = vld [vmem:[%s10296_s25 + $0x868] sm:$0xff]  ;;  %v9435_v48 = vcombine.low %v1474_v57, %v1482_v42  ;;  %v9420_v63 = vcombine.high %v1458_v40, %v1466_v46 }
 0x38a   : > { %v9421_v10 = vcombine.low %v1459_v31, %v1467_v60 }
 0x38f   : > { %4851 = vmatmul.mubr.bf16.vlgmr.msra.gmra.mxu0 %v10873_v27  ;;  %4892 = vmatmul.mubr.bf16.vlgmr.msra.gmra.mxu1 %v10886_v22  ;;  %v9517_v27 = vcombine.low %v1555_v53, %v1563_v0  ;;  %v9502_v22 = vcombine.high %v1539_v9, %v1547_v7  ;;  %v9422_v53 = vcombine.high %v1459_v31, %v1467_v60  ;;  %v1698_v0 = vld [vmem:[%s10296_s25 + $0xfa0] sm:$0xff]  ;;  %v11258_v7 = vsub.s32 2, %v10699_v16 }
 0x390   : > { %4901 = vmatpush1.bf16.xpose.msra.mxu0 %v9531_v56  ;;  %4942 = vmatpush1.bf16.xpose.msra.mxu1 %v9533_v26  ;;  %v1706_v56 = vld [vmem:[%s10296_s25 + $0xfe0] sm:$0xff]  ;;  %v1699_v26 = vld [vmem:[%s10296_s25 + $0xfa8] sm:$0xff] }
 0x391   : > { %4902 = vmatprep.subr.bf16.mxu0 %v9516_v4  ;;  %4943 = vmatprep.subr.bf16.mxu1 %v9518_v5  ;;  %v1707_v4 = vld [vmem:[%s10296_s25 + $0xfe8] sm:$0xff]  ;;  %v9419_v5 = vcombine.low %v1458_v40, %v1466_v46  ;;  %v9660_v8 = vcombine.high %v1698_v0, %v1706_v56  ;;  %v9629_v46 = vcombine.low %v1667_v41, %v1675_v45  ;;  %v1572_v41 = vld [vmem:[%s10296_s25 + $0xbb0] sm:$0xff] }
 0x392   : > { %4932 = vmatprep.mubr.bf16.mxu0 %v10882_v39  ;;  %4973 = vmatprep.mubr.bf16.mxu1 %v10891_v52  ;;  %v1531_v39 = vld [vmem:[%s10296_s25 + $0xa68] sm:$0xff]  ;;  %v9662_v9 = vcombine.high %v1699_v26, %v1707_v4  ;;  %v1580_v45 = vld [vmem:[%s10296_s25 + $0xbf0] sm:$0xff] }
 0x393   : > { %v9486_v52 = vcombine.high %v1523_v14, %v1531_v39  ;;  %v9485_v33 = vcombine.low %v1523_v14, %v1531_v39  ;;  %v1723_v14 = vrot.slane %v10208_v11, %v11258_v7  ;;  %v9659_v39 = vcombine.low %v1698_v0, %v1706_v56 }
 0x398   : > { %4903 = vmatpush1.bf16.xpose.msra.mxu0 %v9515_v13  ;;  %4944 = vmatpush1.bf16.xpose.msra.mxu1 %v9517_v27  ;;  %v11261_v13 = vsub.s32 3, %v10699_v16  ;;  %v1682_v27 = vld [vmem:[%s10296_s25 + $0xf20] sm:$0xff] }
 0x399   : > { %4904 = vmatprep.subr.bf16.mxu0 %v9500_v49  ;;  %4945 = vmatprep.subr.bf16.mxu1 %v9502_v22  ;;  %v1690_v49 = vld [vmem:[%s10296_s25 + $0xf60] sm:$0xff]  ;;  %v1683_v22 = vld [vmem:[%s10296_s25 + $0xf28] sm:$0xff] }
 0x39a   : > { %v9645_v57 = vcombine.low %v1683_v22, %v1691_v29 }
 0x3a0   : > { %4905 = vmatpush1.bf16.xpose.msra.mxu0 %v9499_v18  ;;  %4946 = vmatpush1.bf16.xpose.msra.mxu1 %v9501_v15  ;;  %v9661_v18 = vcombine.low %v1699_v26, %v1707_v4  ;;  %v9644_v15 = vcombine.high %v1682_v27, %v1690_v49 }
 0x3a1   : > { %4906 = vmatprep.subr.bf16.mxu0 %v9484_v12  ;;  %4947 = vmatprep.subr.bf16.mxu1 %v9486_v52  ;;  %v1727_v12 = vrot.slane %v10208_v11, %v11261_v13  ;;  %v9646_v52 = vcombine.high %v1683_v22, %v1691_v29  ;;  %v1602_v11 = vld [vmem:[%s10296_s25 + $0xca0] sm:$0xff] }
 0x3a8   : > { %4907 = vmatpush1.bf16.xpose.msra.mxu0 %v9483_v51  ;;  %4948 = vmatpush1.bf16.xpose.msra.mxu1 %v9485_v33 }
 0x3a9   : > { %4908 = vmatprep.subr.bf16.mxu0 %v9468_v58  ;;  %4949 = vmatprep.subr.bf16.mxu1 %v9470_v44  ;;  %v1666_v44 = vld [vmem:[%s10296_s25 + $0xea0] sm:$0xff] }
 0x3aa   : > { %v9628_v42 = vcombine.high %v1666_v44, %v1674_v36  ;;  %v9627_v40 = vcombine.low %v1666_v44, %v1674_v36 }
 0x3b0   : > { %4909 = vmatpush1.bf16.xpose.msra.mxu0 %v9467_v59  ;;  %4950 = vmatpush1.bf16.xpose.msra.mxu1 %v9469_v61 }
 0x3b1   : > { %4910 = vmatprep.subr.bf16.mxu0 %v9452_v50  ;;  %4951 = vmatprep.subr.bf16.mxu1 %v9454_v30  ;;  %v9643_v50 = vcombine.low %v1682_v27, %v1690_v49 }
 0x3b8   : > { %4911 = vmatpush1.bf16.xpose.msra.mxu0 %v9451_v19  ;;  %4952 = vmatpush1.bf16.xpose.msra.mxu1 %v9453_v28  ;;  %v1650_v19 = vld [vmem:[%s10296_s25 + $0xe20] sm:$0xff] }
 0x3b9   : > { %4912 = vmatprep.subr.bf16.mxu0 %v9436_v35  ;;  %4953 = vmatprep.subr.bf16.mxu1 %v9438_v38  ;;  %v1658_v28 = vld [vmem:[%s10296_s25 + $0xe60] sm:$0xff]  ;;  %v1651_v35 = vld [vmem:[%s10296_s25 + $0xe28] sm:$0xff] }
 0x3ba   : > { %v1659_v38 = vld [vmem:[%s10296_s25 + $0xe68] sm:$0xff]  ;;  %v9612_v31 = vcombine.high %v1650_v19, %v1658_v28  ;;  %v9611_v0 = vcombine.low %v1650_v19, %v1658_v28  ;;  %v1564_v19 = vld [vmem:[%s10296_s25 + $0xb70] sm:$0xff]  ;;  %v1557_v28 = vld [vmem:[%s10296_s25 + $0xb38] sm:$0xff] }
 0x3bb   : > { %v9614_v60 = vcombine.high %v1651_v35, %v1659_v38  ;;  %v9613_v56 = vcombine.low %v1651_v35, %v1659_v38  ;;  %v1565_v35 = vld [vmem:[%s10296_s25 + $0xb78] sm:$0xff]  ;;  %v9535_v38 = vcombine.low %v1572_v41, %v1580_v45 }
 0x3c0   : > { %4913 = vmatpush1.bf16.xpose.msra.mxu0 %v9435_v48  ;;  %4954 = vmatpush1.bf16.xpose.msra.mxu1 %v9437_v32  ;;  %v1634_v48 = vld [vmem:[%s10296_s25 + $0xda0] sm:$0xff] }
 0x3c1   : > { %4914 = vmatprep.subr.bf16.mxu0 %v9420_v63  ;;  %4955 = vmatprep.subr.bf16.mxu1 %v9422_v53  ;;  %v1642_v32 = vld [vmem:[%s10296_s25 + $0xde0] sm:$0xff]  ;;  %v1635_v63 = vld [vmem:[%s10296_s25 + $0xda8] sm:$0xff] }
 0x3c2   : > { %v1643_v53 = vld [vmem:[%s10296_s25 + $0xde8] sm:$0xff]  ;;  %v9596_v26 = vcombine.high %v1634_v48, %v1642_v32  ;;  %v9595_v27 = vcombine.low %v1634_v48, %v1642_v32  ;;  %v1548_v48 = vld [vmem:[%s10296_s25 + $0xaf0] sm:$0xff]  ;;  %v1541_v32 = vld [vmem:[%s10296_s25 + $0xab8] sm:$0xff] }
 0x3c3   : > { %v9598_v4 = vcombine.high %v1635_v63, %v1643_v53  ;;  %v9597_v49 = vcombine.low %v1635_v63, %v1643_v53  ;;  %v1549_v63 = vld [vmem:[%s10296_s25 + $0xaf8] sm:$0xff] }
 0x3c8   : > { %4915 = vmatpush1.bf16.xpose.msra.mxu0 %v9419_v5  ;;  %4956 = vmatpush1.bf16.xpose.msra.mxu1 %v9421_v10  ;;  %v1618_v5 = vld [vmem:[%s10296_s25 + $0xd20] sm:$0xff] }
 0x3c9   : > { %4916 = vmatprep.subr.bf16.mxu0 %v9660_v8  ;;  %4957 = vmatprep.subr.bf16.mxu1 %v9662_v9  ;;  %v1626_v10 = vld [vmem:[%s10296_s25 + $0xd60] sm:$0xff]  ;;  %v1619_v8 = vld [vmem:[%s10296_s25 + $0xd28] sm:$0xff] }
 0x3ca   : > { %v1627_v9 = vld [vmem:[%s10296_s25 + $0xd68] sm:$0xff]  ;;  %v9580_v22 = vcombine.high %v1618_v5, %v1626_v10 }
 0x3cb   : > { %v9582_v29 = vcombine.high %v1619_v8, %v1627_v9 }
 0x3cf   : > { %v4770_v21 = vpop.f32.mrf.mxu0  ;;  %v4811_v23 = vpop.f32.mrf.mxu1 }
 0x3d0   : > { %v4771_v25 = vadd.f32 %v4770_v21, %v1723_v14  ;;  %4917 = vmatpush2.bf16.xpose.msra.mxu0 %v9659_v39  ;;  %4958 = vmatpush2.bf16.xpose.msra.mxu1 %v9661_v18  ;;  %v1610_v14 = vld [vmem:[%s10296_s25 + $0xce0] sm:$0xff]  ;;  %v1603_v39 = vld [vmem:[%s10296_s25 + $0xca8] sm:$0xff] }
 0x3d1   : > { %v4772_v17 = vpop.f32.mrf.mxu0  ;;  %4918 = vmatprep.subr.bf16.mxu0 %v9644_v15  ;;  %v4813_v58 = vpop.f32.mrf.mxu1  ;;  %4959 = vmatprep.subr.bf16.mxu1 %v9646_v52  ;;  %v1611_v18 = vld [vmem:[%s10296_s25 + $0xce8] sm:$0xff]  ;;  %v9579_v15 = vcombine.low %v1618_v5, %v1626_v10  ;;  %v9564_v52 = vcombine.high %v1602_v11, %v1610_v14  ;;  %v9505_v10 = vcombine.low %v1541_v32, %v1549_v63 }
 0x3d2   : > { %v11270_v51 = vadd.f32 %v4811_v23, %v4771_v25  ;;  %v4773_v33 = vadd.f32 %v4772_v17, %v1727_v12  ;;  %v9581_v12 = vcombine.low %v1619_v8, %v1627_v9  ;;  %v9566_v21 = vcombine.high %v1603_v39, %v1611_v18  ;;  %v1586_v25 = vld [vmem:[%s10296_s25 + $0xc20] sm:$0xff]  ;;  %v1587_v17 = vld [vmem:[%s10296_s25 + $0xc28] sm:$0xff]  ;;  %v1508_v9 = vld [vmem:[%s10296_s25 + $0x9b0] sm:$0xff] }
 0x3d3   : > { %v4774_v37 = vpop.f32.mrf.mxu0  ;;  %v4815_v61 = vpop.f32.mrf.mxu1  ;;  %v1594_v23 = vld [vmem:[%s10296_s25 + $0xc60] sm:$0xff]  ;;  %v9565_v44 = vcombine.low %v1603_v39, %v1611_v18  ;;  %v1492_v18 = vld [vmem:[%s10296_s25 + $0x930] sm:$0xff] }
 0x3d4   : > { %v11276_v59 = vadd.f32 %v4813_v58, %v4773_v33  ;;  %v1595_v33 = vld [vmem:[%s10296_s25 + $0xc68] sm:$0xff]  ;;  %v9563_v58 = vcombine.low %v1602_v11, %v1610_v14  ;;  %v9548_v36 = vcombine.high %v1586_v25, %v1594_v23  ;;  %v1573_v61 = vld [vmem:[%s10296_s25 + $0xbb8] sm:$0xff] }
 0x3d5   : > { %v4775_v30 = vpop.f32.mrf.mxu0  ;;  %v4816_v43 = vpop.f32.mrf.mxu1  ;;  %v9550_v37 = vcombine.high %v1587_v17, %v1595_v33 }
 0x3d6   : > { %v9547_v30 = vcombine.low %v1586_v25, %v1594_v23 }
 0x3d8   : > { %4919 = vmatpush2.bf16.xpose.msra.mxu0 %v9643_v50  ;;  %4960 = vmatpush2.bf16.xpose.msra.mxu1 %v9645_v57  ;;  %v1581_v50 = vld [vmem:[%s10296_s25 + $0xbf8] sm:$0xff]  ;;  %v9549_v57 = vcombine.low %v1587_v17, %v1595_v33  ;;  %v1476_v33 = vld [vmem:[%s10296_s25 + $0x8b0] sm:$0xff] }
 0x3d9   : > { %4920 = vmatprep.subr.bf16.mxu0 %v9628_v42  ;;  %4961 = vmatprep.subr.bf16.mxu1 %v9630_v62  ;;  %v9536_v42 = vcombine.high %v1572_v41, %v1580_v45  ;;  %v9538_v43 = vcombine.high %v1573_v61, %v1581_v50  ;;  %v1556_v62 = vld [vmem:[%s10296_s25 + $0xb30] sm:$0xff] }
 0x3da   : > { %v9519_v53 = vcombine.low %v1556_v62, %v1564_v19 }
 0x3e0   : > { %4921 = vmatpush2.bf16.xpose.msra.mxu0 %v9627_v40  ;;  %4962 = vmatpush2.bf16.xpose.msra.mxu1 %v9629_v46  ;;  %v9537_v40 = vcombine.low %v1573_v61, %v1581_v50  ;;  %v9520_v46 = vcombine.high %v1556_v62, %v1564_v19  ;;  %v1460_v50 = vld [vmem:[%s10296_s25 + $0x830] sm:$0xff] }
 0x3e1   : > { %4922 = vmatprep.subr.bf16.mxu0 %v9612_v31  ;;  %4963 = vmatprep.subr.bf16.mxu1 %v9614_v60  ;;  %v9522_v31 = vcombine.high %v1557_v28, %v1565_v35  ;;  %v1540_v60 = vld [vmem:[%s10296_s25 + $0xab0] sm:$0xff] }
 0x3e2   : > { %v9503_v5 = vcombine.low %v1540_v60, %v1548_v48 }
 0x3e8   : > { %4923 = vmatpush2.bf16.xpose.msra.mxu0 %v9611_v0  ;;  %4964 = vmatpush2.bf16.xpose.msra.mxu1 %v9613_v56  ;;  %v9504_v0 = vcombine.high %v1540_v60, %v1548_v48  ;;  %v1524_v56 = vld [vmem:[%s10296_s25 + $0xa30] sm:$0xff] }
 0x3e9   : > { %4924 = vmatprep.subr.bf16.mxu0 %v9596_v26  ;;  %4965 = vmatprep.subr.bf16.mxu1 %v9598_v4  ;;  %v1532_v26 = vld [vmem:[%s10296_s25 + $0xa70] sm:$0xff]  ;;  %v1525_v4 = vld [vmem:[%s10296_s25 + $0xa38] sm:$0xff] }
 0x3ea   : > { %v9488_v8 = vcombine.high %v1524_v56, %v1532_v26 }
 0x3f0   : > { %4925 = vmatpush2.bf16.xpose.msra.mxu0 %v9595_v27  ;;  %4966 = vmatpush2.bf16.xpose.msra.mxu1 %v9597_v49  ;;  %v1516_v27 = vld [vmem:[%s10296_s25 + $0x9f0] sm:$0xff]  ;;  %v1509_v49 = vld [vmem:[%s10296_s25 + $0x9b8] sm:$0xff] }
 0x3f1   : > { %4926 = vmatprep.subr.bf16.mxu0 %v9580_v22  ;;  %4967 = vmatprep.subr.bf16.mxu1 %v9582_v29  ;;  %v1517_v22 = vld [vmem:[%s10296_s25 + $0x9f8] sm:$0xff]  ;;  %v9487_v29 = vcombine.low %v1524_v56, %v1532_v26  ;;  %v9472_v14 = vcombine.high %v1508_v9, %v1516_v27 }
 0x3f2   : > { %v9474_v39 = vcombine.high %v1509_v49, %v1517_v22  ;;  %v9473_v25 = vcombine.low %v1509_v49, %v1517_v22  ;;  %v1668_v49 = vld [vmem:[%s10296_s25 + $0xeb0] sm:$0xff] }
 0x3f3   : > { %v1676_v22 = vld [vmem:[%s10296_s25 + $0xef0] sm:$0xff] }
 0x3f8   : > { %4927 = vmatpush2.bf16.xpose.msra.mxu0 %v9579_v15  ;;  %4968 = vmatpush2.bf16.xpose.msra.mxu1 %v9581_v12  ;;  %v1500_v15 = vld [vmem:[%s10296_s25 + $0x970] sm:$0xff]  ;;  %v1493_v12 = vld [vmem:[%s10296_s25 + $0x938] sm:$0xff] }
 0x3f9   : > { %4928 = vmatprep.subr.bf16.mxu0 %v9564_v52  ;;  %4969 = vmatprep.subr.bf16.mxu1 %v9566_v21  ;;  %v1501_v52 = vld [vmem:[%s10296_s25 + $0x978] sm:$0xff]  ;;  %v9471_v21 = vcombine.low %v1508_v9, %v1516_v27  ;;  %v9456_v23 = vcombine.high %v1492_v18, %v1500_v15 }
 0x3fa   : > { %v9458_v17 = vcombine.high %v1493_v12, %v1501_v52  ;;  %v9457_v41 = vcombine.low %v1493_v12, %v1501_v52  ;;  %v9632_v52 = vcombine.high %v1668_v49, %v1676_v22 }
 0x400   : > { %4929 = vmatpush2.bf16.xpose.msra.mxu0 %v9563_v58  ;;  %4970 = vmatpush2.bf16.xpose.msra.mxu1 %v9565_v44  ;;  %v1484_v58 = vld [vmem:[%s10296_s25 + $0x8f0] sm:$0xff]  ;;  %v1477_v44 = vld [vmem:[%s10296_s25 + $0x8b8] sm:$0xff] }
 0x401   : > { %4930 = vmatprep.subr.bf16.mxu0 %v9548_v36  ;;  %4971 = vmatprep.subr.bf16.mxu1 %v9550_v37  ;;  %v1485_v36 = vld [vmem:[%s10296_s25 + $0x8f8] sm:$0xff]  ;;  %v9455_v37 = vcombine.low %v1492_v18, %v1500_v15  ;;  %v9440_v45 = vcombine.high %v1476_v33, %v1484_v58 }
 0x402   : > { %v9442_v61 = vcombine.high %v1477_v44, %v1485_v36  ;;  %v9441_v62 = vcombine.low %v1477_v44, %v1485_v36 }
 0x408   : > { %4931 = vmatpush2.bf16.xpose.msra.mxu0 %v9547_v30  ;;  %4972 = vmatpush2.bf16.xpose.msra.mxu1 %v9549_v57  ;;  %v1468_v30 = vld [vmem:[%s10296_s25 + $0x870] sm:$0xff]  ;;  %v1461_v57 = vld [vmem:[%s10296_s25 + $0x838] sm:$0xff] }
 0x409   : > { %4982 = vmatprep.subr.bf16.mxu0 %v9536_v42  ;;  %5023 = vmatprep.subr.bf16.mxu1 %v9538_v43  ;;  %v1469_v42 = vld [vmem:[%s10296_s25 + $0x878] sm:$0xff]  ;;  %v9439_v43 = vcombine.low %v1476_v33, %v1484_v58  ;;  %v9424_v19 = vcombine.high %v1460_v50, %v1468_v30  ;;  %v9631_v58 = vcombine.low %v1668_v49, %v1676_v22  ;;  %v5196_v49 = vld [vmem:[%s10306_s6 + $0x3c0] sm:$0xff] }
 0x40a   : > { %v9425_v60 = vcombine.low %v1461_v57, %v1469_v42  ;;  %v1661_v33 = vld [vmem:[%s10296_s25 + $0xe78] sm:$0xff] }
 0x40f   : > { %4933 = vmatmul.mubr.bf16.vlgmr.msra.gmra.mxu0 %v10976_v34  ;;  %4974 = vmatmul.mubr.bf16.vlgmr.msra.gmra.mxu1 %v10989_v20  ;;  %v9521_v34 = vcombine.low %v1557_v28, %v1565_v35  ;;  %v9506_v20 = vcombine.high %v1541_v32, %v1549_v63  ;;  %v9426_v28 = vcombine.high %v1461_v57, %v1469_v42  ;;  %v1700_v35 = vld [vmem:[%s10296_s25 + $0xfb0] sm:$0xff] }
 0x410   : > { %4983 = vmatpush1.bf16.xpose.msra.mxu0 %v9535_v38  ;;  %5024 = vmatpush1.bf16.xpose.msra.mxu1 %v9537_v40  ;;  %v1708_v38 = vld [vmem:[%s10296_s25 + $0xff0] sm:$0xff]  ;;  %v1701_v40 = vld [vmem:[%s10296_s25 + $0xfb8] sm:$0xff] }
 0x411   : > { %4984 = vmatprep.subr.bf16.mxu0 %v9520_v46  ;;  %5025 = vmatprep.subr.bf16.mxu1 %v9522_v31  ;;  %v1709_v46 = vld [vmem:[%s10296_s25 + $0xff8] sm:$0xff]  ;;  %v9423_v31 = vcombine.low %v1460_v50, %v1468_v30  ;;  %v9664_v48 = vcombine.high %v1700_v35, %v1708_v38  ;;  %v1684_v63 = vld [vmem:[%s10296_s25 + $0xf30] sm:$0xff] }
 0x412   : > { %5014 = vmatprep.mubr.bf16.mxu0 %v10985_v47  ;;  %5055 = vmatprep.mubr.bf16.mxu1 %v10994_v24  ;;  %v1533_v47 = vld [vmem:[%s10296_s25 + $0xa78] sm:$0xff]  ;;  %v9666_v32 = vcombine.high %v1701_v40, %v1709_v46  ;;  %v9665_v56 = vcombine.low %v1701_v40, %v1709_v46 }
 0x413   : > { %v9490_v24 = vcombine.high %v1525_v4, %v1533_v47  ;;  %v9489_v11 = vcombine.low %v1525_v4, %v1533_v47  ;;  %v1645_v50 = vld [vmem:[%s10296_s25 + $0xdf8] sm:$0xff] }
 0x418   : > { %4985 = vmatpush1.bf16.xpose.msra.mxu0 %v9519_v53  ;;  %5026 = vmatpush1.bf16.xpose.msra.mxu1 %v9521_v34  ;;  %v1692_v53 = vld [vmem:[%s10296_s25 + $0xf70] sm:$0xff]  ;;  %v1685_v34 = vld [vmem:[%s10296_s25 + $0xf38] sm:$0xff] }
 0x419   : > { %4986 = vmatprep.subr.bf16.mxu0 %v9504_v0  ;;  %5027 = vmatprep.subr.bf16.mxu1 %v9506_v20  ;;  %v1693_v0 = vld [vmem:[%s10296_s25 + $0xf78] sm:$0xff]  ;;  %v9663_v20 = vcombine.low %v1700_v35, %v1708_v38  ;;  %v9648_v26 = vcombine.high %v1684_v63, %v1692_v53  ;;  %v9647_v18 = vcombine.low %v1684_v63, %v1692_v53 }
 0x41a   : > { %v9650_v4 = vcombine.high %v1685_v34, %v1693_v0  ;;  %v9649_v12 = vcombine.low %v1685_v34, %v1693_v0  ;;  %v1629_v35 = vld [vmem:[%s10296_s25 + $0xd78] sm:$0xff] }
 0x41b   : > { %v1613_v63 = vld [vmem:[%s10296_s25 + $0xcf8] sm:$0xff] }
 0x420   : > { %4987 = vmatpush1.bf16.xpose.msra.mxu0 %v9503_v5  ;;  %5028 = vmatpush1.bf16.xpose.msra.mxu1 %v9505_v10 }
 0x421   : > { %4988 = vmatprep.subr.bf16.mxu0 %v9488_v8  ;;  %5029 = vmatprep.subr.bf16.mxu1 %v9490_v24 }
 0x428   : > { %4989 = vmatpush1.bf16.xpose.msra.mxu0 %v9487_v29  ;;  %5030 = vmatpush1.bf16.xpose.msra.mxu1 %v9489_v11  ;;  %v1669_v11 = vld [vmem:[%s10296_s25 + $0xeb8] sm:$0xff] }
 0x429   : > { %4990 = vmatprep.subr.bf16.mxu0 %v9472_v14  ;;  %5031 = vmatprep.subr.bf16.mxu1 %v9474_v39  ;;  %v1677_v14 = vld [vmem:[%s10296_s25 + $0xef8] sm:$0xff] }
 0x42a   : > { %v9633_v44 = vcombine.low %v1669_v11, %v1677_v14 }
 0x430   : > { %4991 = vmatpush1.bf16.xpose.msra.mxu0 %v9471_v21  ;;  %5032 = vmatpush1.bf16.xpose.msra.mxu1 %v9473_v25  ;;  %v1652_v25 = vld [vmem:[%s10296_s25 + $0xe30] sm:$0xff] }
 0x431   : > { %4992 = vmatprep.subr.bf16.mxu0 %v9456_v23  ;;  %5033 = vmatprep.subr.bf16.mxu1 %v9458_v17  ;;  %v1660_v23 = vld [vmem:[%s10296_s25 + $0xe70] sm:$0xff]  ;;  %v1653_v17 = vld [vmem:[%s10296_s25 + $0xe38] sm:$0xff] }
 0x432   : > { %v9616_v36 = vcombine.high %v1652_v25, %v1660_v23  ;;  %v9615_v30 = vcombine.low %v1652_v25, %v1660_v23  ;;  %v9617_v57 = vcombine.low %v1653_v17, %v1661_v33  ;;  %v5140_v23 = vld [vmem:[%s10306_s6 + $0x200] sm:$0xff] }
 0x438   : > { %4993 = vmatpush1.bf16.xpose.msra.mxu0 %v9455_v37  ;;  %5034 = vmatpush1.bf16.xpose.msra.mxu1 %v9457_v41  ;;  %v9618_v37 = vcombine.high %v1653_v17, %v1661_v33  ;;  %v1636_v41 = vld [vmem:[%s10296_s25 + $0xdb0] sm:$0xff]  ;;  %v5148_v17 = vld [vmem:[%s10306_s6 + $0x240] sm:$0xff] }
 0x439   : > { %4994 = vmatprep.subr.bf16.mxu0 %v9440_v45  ;;  %5035 = vmatprep.subr.bf16.mxu1 %v9442_v61  ;;  %v1644_v45 = vld [vmem:[%s10296_s25 + $0xdf0] sm:$0xff]  ;;  %v1637_v61 = vld [vmem:[%s10296_s25 + $0xdb8] sm:$0xff] }
 0x43a   : > { %v9600_v42 = vcombine.high %v1636_v41, %v1644_v45  ;;  %v9599_v38 = vcombine.low %v1636_v41, %v1644_v45  ;;  %v9601_v40 = vcombine.low %v1637_v61, %v1645_v50 }
 0x440   : > { %4995 = vmatpush1.bf16.xpose.msra.mxu0 %v9439_v43  ;;  %5036 = vmatpush1.bf16.xpose.msra.mxu1 %v9441_v62  ;;  %v9602_v43 = vcombine.high %v1637_v61, %v1645_v50  ;;  %v1620_v62 = vld [vmem:[%s10296_s25 + $0xd30] sm:$0xff]  ;;  %v5108_v50 = vld [vmem:[%s10306_s6 + $0x100] sm:$0xff] }
 0x441   : > { %4996 = vmatprep.subr.bf16.mxu0 %v9424_v19  ;;  %5037 = vmatprep.subr.bf16.mxu1 %v9426_v28  ;;  %v1628_v19 = vld [vmem:[%s10296_s25 + $0xd70] sm:$0xff]  ;;  %v1621_v28 = vld [vmem:[%s10296_s25 + $0xd38] sm:$0xff] }
 0x442   : > { %v9584_v46 = vcombine.high %v1620_v62, %v1628_v19  ;;  %v9583_v53 = vcombine.low %v1620_v62, %v1628_v19  ;;  %v9585_v34 = vcombine.low %v1621_v28, %v1629_v35 }
 0x448   : > { %4997 = vmatpush1.bf16.xpose.msra.mxu0 %v9423_v31  ;;  %5038 = vmatpush1.bf16.xpose.msra.mxu1 %v9425_v60  ;;  %v9586_v31 = vcombine.high %v1621_v28, %v1629_v35  ;;  %v1604_v60 = vld [vmem:[%s10296_s25 + $0xcb0] sm:$0xff]  ;;  %v5092_v35 = vld [vmem:[%s10306_s6 + $0x80] sm:$0xff] }
 0x449   : > { %4998 = vmatprep.subr.bf16.mxu0 %v9664_v48  ;;  %5039 = vmatprep.subr.bf16.mxu1 %v9666_v32  ;;  %v1612_v48 = vld [vmem:[%s10296_s25 + $0xcf0] sm:$0xff]  ;;  %v1605_v32 = vld [vmem:[%s10296_s25 + $0xcb8] sm:$0xff] }
 0x44a   : > { %v9568_v0 = vcombine.high %v1604_v60, %v1612_v48 }
 0x44f   : > { %v4852_v47 = vpop.f32.mrf.mxu0  ;;  %v4893_v10 = vpop.f32.mrf.mxu1 }
 0x450   : > { %v4853_v5 = vadd.f32 %v4852_v47, %v11270_v51  ;;  %4999 = vmatpush2.bf16.xpose.msra.mxu0 %v9663_v20  ;;  %5040 = vmatpush2.bf16.xpose.msra.mxu1 %v9665_v56  ;;  %v9570_v20 = vcombine.high %v1605_v32, %v1613_v63  ;;  %v1588_v56 = vld [vmem:[%s10296_s25 + $0xc30] sm:$0xff]  ;;  %v1597_v47 = vld [vmem:[%s10296_s25 + $0xc78] sm:$0xff] }
 0x451   : > { %v4854_v8 = vpop.f32.mrf.mxu0  ;;  %5000 = vmatprep.subr.bf16.mxu0 %v9648_v26  ;;  %v4895_v27 = vpop.f32.mrf.mxu1  ;;  %5041 = vmatprep.subr.bf16.mxu1 %v9650_v4  ;;  %v1596_v26 = vld [vmem:[%s10296_s25 + $0xc70] sm:$0xff]  ;;  %v1589_v4 = vld [vmem:[%s10296_s25 + $0xc38] sm:$0xff] }
 0x452   : > { %v11343_v24 = vadd.f32 %v4893_v10, %v4853_v5  ;;  %v4855_v9 = vadd.f32 %v4854_v8, %v11276_v59  ;;  %v9634_v59 = vcombine.high %v1669_v11, %v1677_v14  ;;  %v9567_v5 = vcombine.low %v1604_v60, %v1612_v48  ;;  %v5172_v14 = vld [vmem:[%s10306_s6 + $0x300] sm:$0xff] }
 0x453   : > { %v4856_v29 = vpop.f32.mrf.mxu0  ;;  %v4897_v39 = vpop.f32.mrf.mxu1  ;;  %v9569_v10 = vcombine.low %v1605_v32, %v1613_v63  ;;  %v9552_v8 = vcombine.high %v1588_v56, %v1596_v26  ;;  %v9551_v22 = vcombine.low %v1588_v56, %v1596_v26  ;;  %v5076_v63 = vld [vmem:[%s10306_s6] sm:$0xff] }
 0x454   : > { %v11350_v51 = vadd.f32 %v4895_v27, %v4855_v9  ;;  %v9554_v9 = vcombine.high %v1589_v4, %v1597_v47  ;;  %v5188_v27 = vld [vmem:[%s10306_s6 + $0x380] sm:$0xff]  ;;  %v9553_v29 = vcombine.low %v1589_v4, %v1597_v47 }
 0x455   : > { %v4857_v15 = vpop.f32.mrf.mxu0  ;;  %v4898_v21 = vpop.f32.mrf.mxu1  ;;  %v9780_v11 = vcombine.high %v5188_v27, %v5196_v49  ;;  %v5180_v39 = vld [vmem:[%s10306_s6 + $0x340] sm:$0xff] }
 0x456   : > { %v9779_v15 = vcombine.low %v5188_v27, %v5196_v49  ;;  %v5164_v21 = vld [vmem:[%s10306_s6 + $0x2c0] sm:$0xff]  ;;  %v9763_v25 = vcombine.low %v5172_v14, %v5180_v39 }
 0x457   : > { %v5316_v47 = vld [vmem:[%s10306_s6 + $0x780] sm:$0xff] }
 0x458   : > { %5001 = vmatpush2.bf16.xpose.msra.mxu0 %v9647_v18  ;;  %5042 = vmatpush2.bf16.xpose.msra.mxu1 %v9649_v12  ;;  %v5065_v18 = vmax.f32 %v11195_v54, 0.0  ;;  %v9764_v12 = vcombine.high %v5172_v14, %v5180_v39  ;;  %v5364_v39 = vld [vmem:[%s10306_s6 + $0x900] sm:$0xff] }
 0x459   : > { %5002 = vmatprep.subr.bf16.mxu0 %v9632_v52  ;;  %5043 = vmatprep.subr.bf16.mxu1 %v9634_v59  ;;  %v5156_v52 = vld [vmem:[%s10306_s6 + $0x280] sm:$0xff] }
 0x45a   : > { %v11379_v59 = vpack.c.bf16 %v5065_v18, %v5065_v18  ;;  %v9748_v54 = vcombine.high %v5156_v52, %v5164_v21  ;;  %v9747_v33 = vcombine.low %v5156_v52, %v5164_v21  ;;  %v5372_v18 = vld [vmem:[%s10306_s6 + $0x940] sm:$0xff] }
 0x45b   : > { %v9956_v52 = vcombine.high %v5364_v39, %v5372_v18  ;;  %v5284_v21 = vld [vmem:[%s10306_s6 + $0x680] sm:$0xff] }
 0x460   : > { %5003 = vmatpush2.bf16.xpose.msra.mxu0 %v9631_v58  ;;  %5044 = vmatpush2.bf16.xpose.msra.mxu1 %v9633_v44  ;;  %v9732_v58 = vcombine.high %v5140_v23, %v5148_v17  ;;  %v5124_v44 = vld [vmem:[%s10306_s6 + $0x180] sm:$0xff] }
 0x461   : > { %5004 = vmatprep.subr.bf16.mxu0 %v9616_v36  ;;  %5045 = vmatprep.subr.bf16.mxu1 %v9618_v37  ;;  %v5444_v36 = vld [vmem:[%s10306_s6 + $0xb80] sm:$0xff] }
 0x462   : > { %v5452_v37 = vld [vmem:[%s10306_s6 + $0xbc0] sm:$0xff] }
 0x463   : > { %v10035_v45 = vcombine.low %v5444_v36, %v5452_v37  ;;  %v10036_v61 = vcombine.high %v5444_v36, %v5452_v37  ;;  %v5332_v37 = vld [vmem:[%s10306_s6 + $0x800] sm:$0xff] }
 0x468   : > { %5005 = vmatpush2.bf16.xpose.msra.mxu0 %v9615_v30  ;;  %5046 = vmatpush2.bf16.xpose.msra.mxu1 %v9617_v57  ;;  %v5116_v30 = vld [vmem:[%s10306_s6 + $0x140] sm:$0xff] }
 0x469   : > { %5006 = vmatprep.subr.bf16.mxu0 %v9600_v42  ;;  %5047 = vmatprep.subr.bf16.mxu1 %v9602_v43  ;;  %v5428_v42 = vld [vmem:[%s10306_s6 + $0xb00] sm:$0xff]  ;;  %v9700_v62 = vcombine.high %v5108_v50, %v5116_v30 }
 0x46a   : > { %v5436_v43 = vld [vmem:[%s10306_s6 + $0xb40] sm:$0xff] }
 0x46b   : > { %v10019_v19 = vcombine.low %v5428_v42, %v5436_v43  ;;  %v10020_v28 = vcombine.high %v5428_v42, %v5436_v43  ;;  %v5572_v43 = vld [vmem:[%s10306_s6 + $0xf80] sm:$0xff] }
 0x470   : > { %5007 = vmatpush2.bf16.xpose.msra.mxu0 %v9599_v38  ;;  %5048 = vmatpush2.bf16.xpose.msra.mxu1 %v9601_v40  ;;  %v5100_v38 = vld [vmem:[%s10306_s6 + $0xc0] sm:$0xff]  ;;  %v9699_v40 = vcombine.low %v5108_v50, %v5116_v30 }
 0x471   : > { %5008 = vmatprep.subr.bf16.mxu0 %v9584_v46  ;;  %5049 = vmatprep.subr.bf16.mxu1 %v9586_v31  ;;  %v5412_v46 = vld [vmem:[%s10306_s6 + $0xa80] sm:$0xff]  ;;  %v9684_v60 = vcombine.high %v5092_v35, %v5100_v38 }
 0x472   : > { %v5420_v31 = vld [vmem:[%s10306_s6 + $0xac0] sm:$0xff] }
 0x473   : > { %v10003_v48 = vcombine.low %v5412_v46, %v5420_v31  ;;  %v10004_v32 = vcombine.high %v5412_v46, %v5420_v31  ;;  %v5252_v30 = vld [vmem:[%s10306_s6 + $0x580] sm:$0xff] }
 0x474   : > { %v5556_v31 = vld [vmem:[%s10306_s6 + $0xf00] sm:$0xff] }
 0x478   : > { %5009 = vmatpush2.bf16.xpose.msra.mxu0 %v9583_v53  ;;  %5050 = vmatpush2.bf16.xpose.msra.mxu1 %v9585_v34  ;;  %v5084_v53 = vld [vmem:[%s10306_s6 + $0x40] sm:$0xff]  ;;  %v9683_v34 = vcombine.low %v5092_v35, %v5100_v38 }
 0x479   : > { %5010 = vmatprep.subr.bf16.mxu0 %v9568_v0  ;;  %5051 = vmatprep.subr.bf16.mxu1 %v9570_v20  ;;  %v5396_v0 = vld [vmem:[%s10306_s6 + $0xa00] sm:$0xff]  ;;  %v9668_v56 = vcombine.high %v5076_v63, %v5084_v53 }
 0x47a   : > { %v5404_v20 = vld [vmem:[%s10306_s6 + $0xa40] sm:$0xff] }
 0x47b   : > { %v9987_v26 = vcombine.low %v5396_v0, %v5404_v20  ;;  %v9988_v4 = vcombine.high %v5396_v0, %v5404_v20  ;;  %v5236_v38 = vld [vmem:[%s10306_s6 + $0x500] sm:$0xff] }
 0x47c   : > { %v5540_v20 = vld [vmem:[%s10306_s6 + $0xe80] sm:$0xff] }
 0x480   : > { %5011 = vmatpush2.bf16.xpose.msra.mxu0 %v9567_v5  ;;  %5052 = vmatpush2.bf16.xpose.msra.mxu1 %v9569_v10  ;;  %v5324_v5 = vld [vmem:[%s10306_s6 + $0x7c0] sm:$0xff]  ;;  %v9667_v10 = vcombine.low %v5076_v63, %v5084_v53 }
 0x481   : > { %5012 = vmatprep.subr.bf16.mxu0 %v9552_v8  ;;  %5053 = vmatprep.subr.bf16.mxu1 %v9554_v9  ;;  %v5380_v8 = vld [vmem:[%s10306_s6 + $0x980] sm:$0xff]  ;;  %v9908_v27 = vcombine.high %v5316_v47, %v5324_v5  ;;  %v9907_v14 = vcombine.low %v5316_v47, %v5324_v5 }
 0x482   : > { %v5388_v9 = vld [vmem:[%s10306_s6 + $0x9c0] sm:$0xff] }
 0x483   : > { %v9971_v49 = vcombine.low %v5380_v8, %v5388_v9  ;;  %v5220_v53 = vld [vmem:[%s10306_s6 + $0x480] sm:$0xff] }
 0x484   : > { %v5204_v5 = vld [vmem:[%s10306_s6 + $0x400] sm:$0xff] }
 0x488   : > { %5013 = vmatpush2.bf16.xpose.msra.mxu0 %v9551_v22  ;;  %5054 = vmatpush2.bf16.xpose.msra.mxu1 %v9553_v29  ;;  %v9972_v22 = vcombine.high %v5380_v8, %v5388_v9  ;;  %v5300_v29 = vld [vmem:[%s10306_s6 + $0x700] sm:$0xff] }
 0x489   : > { %8148 = vmatprep.subr.bf16.mxu0 %v9780_v11  ;;  %8189 = vmatprep.subr.bf16.mxu1 %v10036_v61  ;;  %v5308_v11 = vld [vmem:[%s10306_s6 + $0x740] sm:$0xff] }
 0x48a   : > { %v5524_v9 = vld [vmem:[%s10306_s6 + $0xe00] sm:$0xff] }
 0x48f   : > { %5015 = vmatmul.mubr.bf16.vlgmr.msra.gmra.mxu0 %v11067_v3  ;;  %5056 = vmatmul.mubr.bf16.vlgmr.msra.gmra.mxu1 %v11075_v6  ;;  %v5132_v3 = vld [vmem:[%s10306_s6 + $0x1c0] sm:$0xff]  ;;  %v9731_v6 = vcombine.low %v5140_v23, %v5148_v17 }
 0x490   : > { %8149 = vmatpush1.bf16.msra.mxu0 %v9779_v15  ;;  %8180 = vmatprep.mubr.bf16.mxu0 %v11379_v59  ;;  %v9716_v41 = vcombine.high %v5124_v44, %v5132_v3  ;;  %v9715_v57 = vcombine.low %v5124_v44, %v5132_v3  ;;  %v9892_v15 = vcombine.high %v5300_v29, %v5308_v11  ;;  %v5348_v23 = vld [vmem:[%s10306_s6 + $0x880] sm:$0xff] }
 0x491   : > { %8150 = vmatprep.subr.bf16.mxu0 %v9764_v12  ;;  %8190 = vmatpush1.bf16.msra.mxu1 %v10035_v45  ;;  %v9955_v12 = vcombine.low %v5364_v39, %v5372_v18  ;;  %v5356_v17 = vld [vmem:[%s10306_s6 + $0x8c0] sm:$0xff] }
 0x492   : > { %8191 = vmatprep.subr.bf16.mxu1 %v10020_v28  ;;  %v9940_v44 = vcombine.high %v5348_v23, %v5356_v17  ;;  %v5268_v3 = vld [vmem:[%s10306_s6 + $0x600] sm:$0xff] }
 0x493   : > { %v5508_v18 = vld [vmem:[%s10306_s6 + $0xd80] sm:$0xff] }
 0x494   : > { %8151 = vmatpush1.bf16.msra.mxu0 %v9763_v25  ;;  %v5292_v25 = vld [vmem:[%s10306_s6 + $0x6c0] sm:$0xff] }
 0x495   : > { %8152 = vmatprep.subr.bf16.mxu0 %v9748_v54  ;;  %8192 = vmatpush1.bf16.msra.mxu1 %v10019_v19  ;;  %v9891_v54 = vcombine.low %v5300_v29, %v5308_v11  ;;  %v9875_v36 = vcombine.low %v5284_v21, %v5292_v25  ;;  %v5189_v11 = vld [vmem:[%s10306_s6 + $0x388] sm:$0xff] }
 0x496   : > { %8193 = vmatprep.subr.bf16.mxu1 %v10004_v32 }
 0x498   : > { %8153 = vmatpush1.bf16.msra.mxu0 %v9747_v33  ;;  %v9876_v33 = vcombine.high %v5284_v21, %v5292_v25 }
 0x499   : > { %8154 = vmatprep.subr.bf16.mxu0 %v9732_v58  ;;  %8194 = vmatpush1.bf16.msra.mxu1 %v10003_v48  ;;  %v9939_v58 = vcombine.low %v5348_v23, %v5356_v17  ;;  %v5181_v23 = vld [vmem:[%s10306_s6 + $0x348] sm:$0xff] }
 0x49a   : > { %8195 = vmatprep.subr.bf16.mxu1 %v9988_v4 }
 0x49c   : > { %8155 = vmatpush1.bf16.msra.mxu0 %v9731_v6  ;;  %v5276_v6 = vld [vmem:[%s10306_s6 + $0x640] sm:$0xff] }
 0x49d   : > { %8156 = vmatprep.subr.bf16.mxu0 %v9716_v41  ;;  %8196 = vmatpush1.bf16.msra.mxu1 %v9987_v26  ;;  %v5340_v41 = vld [vmem:[%s10306_s6 + $0x840] sm:$0xff]  ;;  %v9860_v45 = vcombine.high %v5268_v3, %v5276_v6  ;;  %v9859_v42 = vcombine.low %v5268_v3, %v5276_v6 }
 0x49e   : > { %8197 = vmatprep.subr.bf16.mxu1 %v9972_v22  ;;  %v9923_v61 = vcombine.low %v5332_v37, %v5340_v41  ;;  %v9924_v50 = vcombine.high %v5332_v37, %v5340_v41  ;;  %v5165_v37 = vld [vmem:[%s10306_s6 + $0x2c8] sm:$0xff] }
 0x4a0   : > { %8157 = vmatpush1.bf16.msra.mxu0 %v9715_v57  ;;  %v5260_v57 = vld [vmem:[%s10306_s6 + $0x5c0] sm:$0xff] }
 0x4a1   : > { %8158 = vmatprep.subr.bf16.mxu0 %v9700_v62  ;;  %8198 = vmatpush1.bf16.msra.mxu1 %v9971_v49  ;;  %v5580_v62 = vld [vmem:[%s10306_s6 + $0xfc0] sm:$0xff]  ;;  %v9844_v19 = vcombine.high %v5252_v30, %v5260_v57  ;;  %v9843_v46 = vcombine.low %v5252_v30, %v5260_v57 }
 0x4a2   : > { %8199 = vmatprep.subr.bf16.mxu1 %v9956_v52  ;;  %v10163_v28 = vcombine.low %v5572_v43, %v5580_v62  ;;  %v10164_v35 = vcombine.high %v5572_v43, %v5580_v62  ;;  %v5476_v30 = vld [vmem:[%s10306_s6 + $0xc80] sm:$0xff] }
 0x4a3   : > { %v5484_v57 = vld [vmem:[%s10306_s6 + $0xcc0] sm:$0xff] }
 0x4a4   : > { %8159 = vmatpush1.bf16.msra.mxu0 %v9699_v40  ;;  %v5244_v40 = vld [vmem:[%s10306_s6 + $0x540] sm:$0xff]  ;;  %v10068_v62 = vcombine.high %v5476_v30, %v5484_v57 }
 0x4a5   : > { %8160 = vmatprep.subr.bf16.mxu0 %v9684_v60  ;;  %8200 = vmatpush1.bf16.msra.mxu1 %v9955_v12  ;;  %v5564_v60 = vld [vmem:[%s10306_s6 + $0xf40] sm:$0xff]  ;;  %v9828_v48 = vcombine.high %v5236_v38, %v5244_v40  ;;  %v9827_v0 = vcombine.low %v5236_v38, %v5244_v40  ;;  %v5064_v12 = vmax.f32 %v11188_v55, 0.0  ;;  %v5149_v38 = vld [vmem:[%s10306_s6 + $0x248] sm:$0xff]  ;;  %v10067_v40 = vcombine.low %v5476_v30, %v5484_v57 }
 0x4a6   : > { %8201 = vmatprep.subr.bf16.mxu1 %v9940_v44  ;;  %v10147_v32 = vcombine.low %v5556_v31, %v5564_v60  ;;  %v10148_v63 = vcombine.high %v5556_v31, %v5564_v60  ;;  %v5253_v57 = vld [vmem:[%s10306_s6 + $0x588] sm:$0xff] }
 0x4a7   : > { %v11443_v44 = vpack.c.bf16 %v5064_v12, %v5064_v12  ;;  %v5085_v12 = vld [vmem:[%s10306_s6 + $0x48] sm:$0xff] }
 0x4a8   : > { %8161 = vmatpush1.bf16.msra.mxu0 %v9683_v34  ;;  %v5228_v34 = vld [vmem:[%s10306_s6 + $0x4c0] sm:$0xff] }
 0x4a9   : > { %8162 = vmatprep.subr.bf16.mxu0 %v9668_v56  ;;  %8202 = vmatpush1.bf16.msra.mxu1 %v9939_v58  ;;  %v5548_v56 = vld [vmem:[%s10306_s6 + $0xec0] sm:$0xff]  ;;  %v9812_v26 = vcombine.high %v5220_v53, %v5228_v34  ;;  %v9811_v8 = vcombine.low %v5220_v53, %v5228_v34 }
 0x4aa   : > { %8203 = vmatprep.subr.bf16.mxu1 %v9924_v50  ;;  %v10131_v4 = vcombine.low %v5540_v20, %v5548_v56  ;;  %v10132_v47 = vcombine.high %v5540_v20, %v5548_v56  ;;  %v5500_v58 = vld [vmem:[%s10306_s6 + $0xd40] sm:$0xff]  ;;  %v5125_v20 = vld [vmem:[%s10306_s6 + $0x188] sm:$0xff] }
 0x4ab   : > { %v5133_v56 = vld [vmem:[%s10306_s6 + $0x1c8] sm:$0xff] }
 0x4ac   : > { %8163 = vmatpush1.bf16.msra.mxu0 %v9667_v10  ;;  %v5212_v10 = vld [vmem:[%s10306_s6 + $0x440] sm:$0xff] }
 0x4ad   : > { %8164 = vmatprep.subr.bf16.mxu0 %v9908_v27  ;;  %8204 = vmatpush1.bf16.msra.mxu1 %v9923_v61  ;;  %v5532_v27 = vld [vmem:[%s10306_s6 + $0xe40] sm:$0xff]  ;;  %v9796_v49 = vcombine.high %v5204_v5, %v5212_v10  ;;  %v9795_v39 = vcombine.low %v5204_v5, %v5212_v10  ;;  %v11467_v5 = vld [vmem:[%s10306_s6 + $0xbc8] sm:$0xff]  ;;  %v9718_v10 = vcombine.high %v5125_v20, %v5133_v56 }
 0x4ae   : > { %8205 = vmatprep.subr.bf16.mxu1 %v10164_v35  ;;  %v10115_v22 = vcombine.low %v5524_v9, %v5532_v27  ;;  %v10116_v29 = vcombine.high %v5524_v9, %v5532_v27  ;;  %v5141_v35 = vld [vmem:[%s10306_s6 + $0x208] sm:$0xff] }
 0x4af   : > { %v5109_v9 = vld [vmem:[%s10306_s6 + $0x108] sm:$0xff] }
 0x4b0   : > { %8165 = vmatpush2.bf16.msra.mxu0 %v9907_v14  ;;  %v5197_v14 = vld [vmem:[%s10306_s6 + $0x3c8] sm:$0xff] }
 0x4b1   : > { %8166 = vmatprep.subr.bf16.mxu0 %v9892_v15  ;;  %8206 = vmatpush2.bf16.msra.mxu1 %v10163_v28  ;;  %v5516_v15 = vld [vmem:[%s10306_s6 + $0xdc0] sm:$0xff]  ;;  %v9782_v52 = vcombine.high %v5189_v11, %v5197_v14  ;;  %v9781_v17 = vcombine.low %v5189_v11, %v5197_v14  ;;  %v5117_v27 = vld [vmem:[%s10306_s6 + $0x148] sm:$0xff] }
 0x4b2   : > { %8207 = vmatprep.subr.bf16.mxu1 %v10148_v63  ;;  %v10099_v21 = vcombine.low %v5508_v18, %v5516_v15  ;;  %v10100_v25 = vcombine.high %v5508_v18, %v5516_v15  ;;  %v5468_v63 = vld [vmem:[%s10306_s6 + $0xc40] sm:$0xff]  ;;  %v5093_v11 = vld [vmem:[%s10306_s6 + $0x88] sm:$0xff] }
 0x4b3   : > { %v5101_v14 = vld [vmem:[%s10306_s6 + $0xc8] sm:$0xff] }
 0x4b4   : > { %8167 = vmatpush2.bf16.msra.mxu0 %v9891_v54  ;;  %v5173_v54 = vld [vmem:[%s10306_s6 + $0x308] sm:$0xff]  ;;  %v9686_v18 = vcombine.high %v5093_v11, %v5101_v14 }
 0x4b5   : > { %8168 = vmatprep.subr.bf16.mxu0 %v9876_v33  ;;  %8208 = vmatpush2.bf16.msra.mxu1 %v10147_v32  ;;  %v5492_v33 = vld [vmem:[%s10306_s6 + $0xd00] sm:$0xff]  ;;  %v9766_v55 = vcombine.high %v5173_v54, %v5181_v23  ;;  %v9765_v50 = vcombine.low %v5173_v54, %v5181_v23  ;;  %v5077_v15 = vld [vmem:[%s10306_s6 + $0x8] sm:$0xff] }
 0x4b6   : > { %8209 = vmatprep.subr.bf16.mxu1 %v10132_v47  ;;  %v10083_v3 = vcombine.low %v5492_v33, %v5500_v58  ;;  %v10084_v6 = vcombine.high %v5492_v33, %v5500_v58  ;;  %v5460_v32 = vld [vmem:[%s10306_s6 + $0xc00] sm:$0xff]  ;;  %v11464_v47 = vld [vmem:[%s10306_s6 + $0xb88] sm:$0xff]  ;;  %v9669_v23 = vcombine.low %v5077_v15, %v5085_v12 }
 0x4b7   : > { %v10052_v34 = vcombine.high %v5460_v32, %v5468_v63  ;;  %v5325_v54 = vld [vmem:[%s10306_s6 + $0x7c8] sm:$0xff] }
 0x4b8   : > { %8169 = vmatpush2.bf16.msra.mxu0 %v9875_v36  ;;  %v5157_v36 = vld [vmem:[%s10306_s6 + $0x288] sm:$0xff] }
 0x4b9   : > { %8170 = vmatprep.subr.bf16.mxu0 %v9860_v45  ;;  %8210 = vmatpush2.bf16.msra.mxu1 %v10131_v4  ;;  %v9750_v43 = vcombine.high %v5157_v36, %v5165_v37  ;;  %v9733_v4 = vcombine.low %v5141_v35, %v5149_v38  ;;  %v5301_v33 = vld [vmem:[%s10306_s6 + $0x708] sm:$0xff] }
 0x4ba   : > { %8211 = vmatprep.subr.bf16.mxu1 %v10116_v29  ;;  %v9702_v29 = vcombine.high %v5109_v9, %v5117_v27  ;;  %v5309_v58 = vld [vmem:[%s10306_s6 + $0x748] sm:$0xff] }
 0x4bc   : > { %8171 = vmatpush2.bf16.msra.mxu0 %v9859_v42 }
 0x4bd   : > { %8172 = vmatprep.subr.bf16.mxu0 %v9844_v19  ;;  %8212 = vmatpush2.bf16.msra.mxu1 %v10115_v22  ;;  %v9717_v22 = vcombine.low %v5125_v20, %v5133_v56 }
 0x4be   : > { %8213 = vmatprep.subr.bf16.mxu1 %v10100_v25  ;;  %v5317_v25 = vld [vmem:[%s10306_s6 + $0x788] sm:$0xff] }
 0x4c0   : > { %8173 = vmatpush2.bf16.msra.mxu0 %v9843_v46 }
 0x4c1   : > { %8174 = vmatprep.subr.bf16.mxu0 %v9828_v48  ;;  %8214 = vmatpush2.bf16.msra.mxu1 %v10099_v21  ;;  %v9749_v48 = vcombine.low %v5157_v36, %v5165_v37  ;;  %v9670_v21 = vcombine.high %v5077_v15, %v5085_v12  ;;  %v5293_v36 = vld [vmem:[%s10306_s6 + $0x6c8] sm:$0xff]  ;;  %v9893_v37 = vcombine.low %v5301_v33, %v5309_v58  ;;  %v5126_v15 = vld [vmem:[%s10306_s6 + $0x190] sm:$0xff] }
 0x4c2   : > { %8215 = vmatprep.subr.bf16.mxu1 %v10084_v6  ;;  %v5285_v6 = vld [vmem:[%s10306_s6 + $0x688] sm:$0xff]  ;;  %v5134_v12 = vld [vmem:[%s10306_s6 + $0x1d0] sm:$0xff] }
 0x4c4   : > { %8175 = vmatpush2.bf16.msra.mxu0 %v9827_v0 }
 0x4c5   : > { %8176 = vmatprep.subr.bf16.mxu0 %v9812_v26  ;;  %8216 = vmatpush2.bf16.msra.mxu1 %v10083_v3  ;;  %v10051_v26 = vcombine.low %v5460_v32, %v5468_v63  ;;  %v9894_v3 = vcombine.high %v5301_v33, %v5309_v58  ;;  %v5205_v32 = vld [vmem:[%s10306_s6 + $0x408] sm:$0xff]  ;;  %v5094_v33 = vld [vmem:[%s10306_s6 + $0x90] sm:$0xff] }
 0x4c6   : > { %8217 = vmatprep.subr.bf16.mxu1 %v10068_v62  ;;  %v5213_v63 = vld [vmem:[%s10306_s6 + $0x448] sm:$0xff]  ;;  %v5102_v58 = vld [vmem:[%s10306_s6 + $0xd0] sm:$0xff] }
 0x4c7   : > { %v9797_v20 = vcombine.low %v5205_v32, %v5213_v63 }
 0x4c8   : > { %8177 = vmatpush2.bf16.msra.mxu0 %v9811_v8  ;;  %v10038_v8 = vcombine.high %v11464_v47, %v11467_v5 }
 0x4c9   : > { %8178 = vmatprep.subr.bf16.mxu0 %v9796_v49  ;;  %8218 = vmatpush2.bf16.msra.mxu1 %v10067_v40  ;;  %v10037_v49 = vcombine.low %v11464_v47, %v11467_v5  ;;  %v5221_v40 = vld [vmem:[%s10306_s6 + $0x488] sm:$0xff] }
 0x4ca   : > { %8219 = vmatprep.subr.bf16.mxu1 %v10052_v34  ;;  %v5190_v34 = vld [vmem:[%s10306_s6 + $0x390] sm:$0xff] }
 0x4cc   : > { %8179 = vmatpush2.bf16.msra.mxu0 %v9795_v39  ;;  %v9701_v39 = vcombine.low %v5109_v9, %v5117_v27  ;;  %v5158_v9 = vld [vmem:[%s10306_s6 + $0x290] sm:$0xff] }
 0x4cd   : > { %8230 = vmatprep.subr.bf16.mxu0 %v9782_v52  ;;  %8220 = vmatpush2.bf16.msra.mxu1 %v10051_v26  ;;  %v9685_v52 = vcombine.low %v5093_v11, %v5101_v14  ;;  %v5174_v26 = vld [vmem:[%s10306_s6 + $0x310] sm:$0xff] }
 0x4ce   : > { %8271 = vmatprep.subr.bf16.mxu1 %v10038_v8  ;;  %v5166_v27 = vld [vmem:[%s10306_s6 + $0x2d0] sm:$0xff] }
 0x4cf   : > { %v4934_v41 = vpop.f32.mrf.mxu0  ;;  %8181 = vmatmul.mubr.bf16.vlgmr.msra.gmra.mxu0 %v11443_v44  ;;  %v4975_v61 = vpop.f32.mrf.mxu1  ;;  %v5142_v11 = vld [vmem:[%s10306_s6 + $0x210] sm:$0xff] }
 0x4d0   : > { %v4935_v45 = vadd.f32 %v4934_v41, %v11343_v24  ;;  %8231 = vmatpush1.bf16.msra.mxu0 %v9781_v17  ;;  %8262 = vmatprep.mubr.bf16.mxu0 %v11379_v59  ;;  %v9910_v17 = vcombine.high %v5317_v25, %v5325_v54  ;;  %v9878_v41 = vcombine.high %v5285_v6, %v5293_v36  ;;  %v5150_v14 = vld [vmem:[%s10306_s6 + $0x250] sm:$0xff] }
 0x4d1   : > { %v4936_v42 = vpop.f32.mrf.mxu0  ;;  %8232 = vmatprep.subr.bf16.mxu0 %v9766_v55  ;;  %v4977_v24 = vpop.f32.mrf.mxu1  ;;  %v9909_v55 = vcombine.low %v5317_v25, %v5325_v54  ;;  %v5110_v25 = vld [vmem:[%s10306_s6 + $0x110] sm:$0xff] }
 0x4d2   : > { %v11452_v19 = vadd.f32 %v4975_v61, %v4935_v45  ;;  %v4937_v28 = vadd.f32 %v4936_v42, %v11350_v51  ;;  %v9734_v51 = vcombine.high %v5141_v35, %v5149_v38  ;;  %v5269_v45 = vld [vmem:[%s10306_s6 + $0x608] sm:$0xff]  ;;  %v5118_v54 = vld [vmem:[%s10306_s6 + $0x150] sm:$0xff] }
 0x4d3   : > { %v4938_v46 = vpop.f32.mrf.mxu0  ;;  %v4979_v60 = vpop.f32.mrf.mxu1  ;;  %v5277_v61 = vld [vmem:[%s10306_s6 + $0x648] sm:$0xff] }
 0x4d4   : > { %v11457_v31 = vadd.f32 %v4977_v24, %v4937_v28  ;;  %8233 = vmatpush1.bf16.msra.mxu0 %v9765_v50  ;;  %v9877_v50 = vcombine.low %v5285_v6, %v5293_v36  ;;  %v9862_v30 = vcombine.high %v5269_v45, %v5277_v61  ;;  %v5261_v42 = vld [vmem:[%s10306_s6 + $0x5c8] sm:$0xff]  ;;  %v5078_v6 = vld [vmem:[%s10306_s6 + $0x10] sm:$0xff] }
 0x4d5   : > { %v4939_v53 = vpop.f32.mrf.mxu0  ;;  %8234 = vmatprep.subr.bf16.mxu0 %v9750_v43  ;;  %v4980_v0 = vpop.f32.mrf.mxu1  ;;  %v9861_v43 = vcombine.low %v5269_v45, %v5277_v61  ;;  %v9846_v62 = vcombine.high %v5253_v57, %v5261_v42  ;;  %v5237_v28 = vld [vmem:[%s10306_s6 + $0x508] sm:$0xff]  ;;  %v9845_v35 = vcombine.low %v5253_v57, %v5261_v42  ;;  %v5086_v36 = vld [vmem:[%s10306_s6 + $0x50] sm:$0xff] }
 0x4d6   : > { %v5245_v24 = vld [vmem:[%s10306_s6 + $0x548] sm:$0xff]  ;;  %v5198_v0 = vld [vmem:[%s10306_s6 + $0x3d0] sm:$0xff] }
 0x4d7   : > { %v9830_v38 = vcombine.high %v5237_v28, %v5245_v24  ;;  %v5229_v46 = vld [vmem:[%s10306_s6 + $0x4c8] sm:$0xff]  ;;  %v9829_v60 = vcombine.low %v5237_v28, %v5245_v24  ;;  %v9784_v56 = vcombine.high %v5190_v34, %v5198_v0  ;;  %v5318_v45 = vld [vmem:[%s10306_s6 + $0x790] sm:$0xff] }
 0x4d8   : > { %8235 = vmatpush1.bf16.msra.mxu0 %v9749_v48  ;;  %v9814_v48 = vcombine.high %v5221_v40, %v5229_v46  ;;  %v9813_v53 = vcombine.low %v5221_v40, %v5229_v46  ;;  %v5326_v61 = vld [vmem:[%s10306_s6 + $0x7d0] sm:$0xff] }
 0x4d9   : > { %8236 = vmatprep.subr.bf16.mxu0 %v9734_v51  ;;  %v9798_v51 = vcombine.high %v5205_v32, %v5213_v63  ;;  %v5302_v57 = vld [vmem:[%s10306_s6 + $0x710] sm:$0xff] }
 0x4da   : > { %v5310_v42 = vld [vmem:[%s10306_s6 + $0x750] sm:$0xff] }
 0x4db   : > { %v5286_v28 = vld [vmem:[%s10306_s6 + $0x690] sm:$0xff] }
 0x4dc   : > { %8237 = vmatpush1.bf16.msra.mxu0 %v9733_v4  ;;  %v5182_v4 = vld [vmem:[%s10306_s6 + $0x350] sm:$0xff] }
 0x4dd   : > { %8238 = vmatprep.subr.bf16.mxu0 %v9718_v10  ;;  %v9783_v10 = vcombine.low %v5190_v34, %v5198_v0  ;;  %v9768_v8 = vcombine.high %v5174_v26, %v5182_v4  ;;  %v5294_v24 = vld [vmem:[%s10306_s6 + $0x6d0] sm:$0xff] }
 0x4de   : > { %v5270_v40 = vld [vmem:[%s10306_s6 + $0x610] sm:$0xff] }
 0x4df   : > { %v5278_v46 = vld [vmem:[%s10306_s6 + $0x650] sm:$0xff] }
 0x4e0   : > { %8239 = vmatpush1.bf16.msra.mxu0 %v9717_v22  ;;  %v9767_v22 = vcombine.low %v5174_v26, %v5182_v4  ;;  %v5254_v32 = vld [vmem:[%s10306_s6 + $0x590] sm:$0xff] }
 0x4e1   : > { %8240 = vmatprep.subr.bf16.mxu0 %v9702_v29  ;;  %v9752_v29 = vcombine.high %v5158_v9, %v5166_v27  ;;  %v5262_v63 = vld [vmem:[%s10306_s6 + $0x5d0] sm:$0xff] }
 0x4e2   : > { %v5238_v34 = vld [vmem:[%s10306_s6 + $0x510] sm:$0xff] }
 0x4e3   : > { %v5246_v0 = vld [vmem:[%s10306_s6 + $0x550] sm:$0xff] }
 0x4e4   : > { %8241 = vmatpush1.bf16.msra.mxu0 %v9701_v39  ;;  %v9751_v39 = vcombine.low %v5158_v9, %v5166_v27  ;;  %v5222_v26 = vld [vmem:[%s10306_s6 + $0x490] sm:$0xff] }
 0x4e5   : > { %8242 = vmatprep.subr.bf16.mxu0 %v9686_v18  ;;  %v9736_v18 = vcombine.high %v5142_v11, %v5150_v14  ;;  %v5230_v4 = vld [vmem:[%s10306_s6 + $0x4d0] sm:$0xff] }
 0x4e6   : > { %v5206_v9 = vld [vmem:[%s10306_s6 + $0x410] sm:$0xff] }
 0x4e7   : > { %v5214_v27 = vld [vmem:[%s10306_s6 + $0x450] sm:$0xff] }
 0x4e8   : > { %8243 = vmatpush1.bf16.msra.mxu0 %v9685_v52  ;;  %v9735_v52 = vcombine.low %v5142_v11, %v5150_v14  ;;  %v5191_v11 = vld [vmem:[%s10306_s6 + $0x398] sm:$0xff] }
 0x4e9   : > { %8244 = vmatprep.subr.bf16.mxu0 %v9670_v21  ;;  %v9720_v21 = vcombine.high %v5126_v15, %v5134_v12  ;;  %v5199_v14 = vld [vmem:[%s10306_s6 + $0x3d8] sm:$0xff] }
 0x4ec   : > { %8245 = vmatpush1.bf16.msra.mxu0 %v9669_v23  ;;  %v9719_v23 = vcombine.low %v5126_v15, %v5134_v12  ;;  %v5175_v15 = vld [vmem:[%s10306_s6 + $0x318] sm:$0xff] }
 0x4ed   : > { %8246 = vmatprep.subr.bf16.mxu0 %v9910_v17  ;;  %v9704_v17 = vcombine.high %v5110_v25, %v5118_v54  ;;  %v5183_v12 = vld [vmem:[%s10306_s6 + $0x358] sm:$0xff] }
 0x4f0   : > { %8247 = vmatpush2.bf16.msra.mxu0 %v9909_v55  ;;  %v9703_v55 = vcombine.low %v5110_v25, %v5118_v54  ;;  %v5159_v25 = vld [vmem:[%s10306_s6 + $0x298] sm:$0xff] }
 0x4f1   : > { %8248 = vmatprep.subr.bf16.mxu0 %v9894_v3  ;;  %v9688_v3 = vcombine.high %v5094_v33, %v5102_v58  ;;  %v5167_v54 = vld [vmem:[%s10306_s6 + $0x2d8] sm:$0xff] }
 0x4f4   : > { %8249 = vmatpush2.bf16.msra.mxu0 %v9893_v37  ;;  %v9687_v37 = vcombine.low %v5094_v33, %v5102_v58  ;;  %v9769_v58 = vcombine.low %v5175_v15, %v5183_v12 }
 0x4f5   : > { %8250 = vmatprep.subr.bf16.mxu0 %v9878_v41  ;;  %v9672_v41 = vcombine.high %v5078_v6, %v5086_v36 }
 0x4f8   : > { %8251 = vmatpush2.bf16.msra.mxu0 %v9877_v50  ;;  %v9671_v50 = vcombine.low %v5078_v6, %v5086_v36 }
 0x4f9   : > { %8252 = vmatprep.subr.bf16.mxu0 %v9862_v30  ;;  %v9912_v30 = vcombine.high %v5318_v45, %v5326_v61 }
 0x4fc   : > { %8253 = vmatpush2.bf16.msra.mxu0 %v9861_v43  ;;  %v9911_v43 = vcombine.low %v5318_v45, %v5326_v61  ;;  %v5151_v45 = vld [vmem:[%s10306_s6 + $0x258] sm:$0xff] }
 0x4fd   : > { %8254 = vmatprep.subr.bf16.mxu0 %v9846_v62  ;;  %v9896_v62 = vcombine.high %v5302_v57, %v5310_v42 }
 0x500   : > { %8255 = vmatpush2.bf16.msra.mxu0 %v9845_v35  ;;  %v9895_v35 = vcombine.low %v5302_v57, %v5310_v42 }
 0x501   : > { %8256 = vmatprep.subr.bf16.mxu0 %v9830_v38  ;;  %v9880_v38 = vcombine.high %v5286_v28, %v5294_v24 }
 0x504   : > { %8257 = vmatpush2.bf16.msra.mxu0 %v9829_v60  ;;  %v9879_v60 = vcombine.low %v5286_v28, %v5294_v24  ;;  %v5437_v24 = vld [vmem:[%s10306_s6 + $0xb48] sm:$0xff] }
 0x505   : > { %8258 = vmatprep.subr.bf16.mxu0 %v9814_v48  ;;  %v9864_v48 = vcombine.high %v5270_v40, %v5278_v46 }
 0x508   : > { %8259 = vmatpush2.bf16.msra.mxu0 %v9813_v53  ;;  %v9863_v53 = vcombine.low %v5270_v40, %v5278_v46 }
 0x509   : > { %8260 = vmatprep.subr.bf16.mxu0 %v9798_v51  ;;  %v9848_v51 = vcombine.high %v5254_v32, %v5262_v63 }
 0x50c   : > { %8261 = vmatpush2.bf16.msra.mxu0 %v9797_v20  ;;  %v9847_v20 = vcombine.low %v5254_v32, %v5262_v63  ;;  %v5413_v63 = vld [vmem:[%s10306_s6 + $0xa88] sm:$0xff] }
 0x50d   : > { %8312 = vmatprep.subr.bf16.mxu0 %v9784_v56  ;;  %v9832_v56 = vcombine.high %v5238_v34, %v5246_v0 }
 0x50f   : > { %8263 = vmatmul.mubr.bf16.vlgmr.msra.gmra.mxu0 %v11443_v44 }
 0x510   : > { %8313 = vmatpush1.bf16.msra.mxu0 %v9783_v10  ;;  %8344 = vmatprep.mubr.bf16.mxu0 %v11379_v59  ;;  %v9831_v10 = vcombine.low %v5238_v34, %v5246_v0  ;;  %v5119_v34 = vld [vmem:[%s10306_s6 + $0x158] sm:$0xff] }
 0x511   : > { %8314 = vmatprep.subr.bf16.mxu0 %v9768_v8  ;;  %v9816_v8 = vcombine.high %v5222_v26, %v5230_v4 }
 0x514   : > { %8315 = vmatpush1.bf16.msra.mxu0 %v9767_v22  ;;  %v9815_v22 = vcombine.low %v5222_v26, %v5230_v4  ;;  %v5397_v4 = vld [vmem:[%s10306_s6 + $0xa08] sm:$0xff] }
 0x515   : > { %8316 = vmatprep.subr.bf16.mxu0 %v9752_v29  ;;  %v9800_v29 = vcombine.high %v5206_v9, %v5214_v27 }
 0x518   : > { %8317 = vmatpush1.bf16.msra.mxu0 %v9751_v39  ;;  %v9799_v39 = vcombine.low %v5206_v9, %v5214_v27  ;;  %v5103_v9 = vld [vmem:[%s10306_s6 + $0xd8] sm:$0xff] }
 0x519   : > { %8318 = vmatprep.subr.bf16.mxu0 %v9736_v18  ;;  %v9786_v18 = vcombine.high %v5191_v11, %v5199_v14 }
 0x51c   : > { %8319 = vmatpush1.bf16.msra.mxu0 %v9735_v52  ;;  %v9785_v52 = vcombine.low %v5191_v11, %v5199_v14  ;;  %v5079_v11 = vld [vmem:[%s10306_s6 + $0x18] sm:$0xff] }
 0x51d   : > { %8320 = vmatprep.subr.bf16.mxu0 %v9720_v21  ;;  %v9770_v21 = vcombine.high %v5175_v15, %v5183_v12  ;;  %v5087_v14 = vld [vmem:[%s10306_s6 + $0x58] sm:$0xff] }
 0x51e   : > { %v9674_v12 = vcombine.high %v5079_v11, %v5087_v14 }
 0x520   : > { %8321 = vmatpush1.bf16.msra.mxu0 %v9719_v23 }
 0x521   : > { %8322 = vmatprep.subr.bf16.mxu0 %v9704_v17 }
 0x524   : > { %8323 = vmatpush1.bf16.msra.mxu0 %v9703_v55 }
 0x525   : > { %8324 = vmatprep.subr.bf16.mxu0 %v9688_v3  ;;  %v9754_v3 = vcombine.high %v5159_v25, %v5167_v54 }
 0x528   : > { %8325 = vmatpush1.bf16.msra.mxu0 %v9687_v37 }
 0x529   : > { %8326 = vmatprep.subr.bf16.mxu0 %v9672_v41  ;;  %v5143_v41 = vld [vmem:[%s10306_s6 + $0x218] sm:$0xff] }
 0x52c   : > { %8327 = vmatpush1.bf16.msra.mxu0 %v9671_v50 }
 0x52d   : > { %8328 = vmatprep.subr.bf16.mxu0 %v9912_v30  ;;  %v9753_v30 = vcombine.low %v5159_v25, %v5167_v54  ;;  %v5319_v25 = vld [vmem:[%s10306_s6 + $0x798] sm:$0xff] }
 0x52e   : > { %v5327_v54 = vld [vmem:[%s10306_s6 + $0x7d8] sm:$0xff] }
 0x530   : > { %8329 = vmatpush2.bf16.msra.mxu0 %v9911_v43  ;;  %v9738_v43 = vcombine.high %v5143_v41, %v5151_v45 }
 0x531   : > { %8330 = vmatprep.subr.bf16.mxu0 %v9896_v62 }
 0x534   : > { %8331 = vmatpush2.bf16.msra.mxu0 %v9895_v35  ;;  %v5127_v35 = vld [vmem:[%s10306_s6 + $0x198] sm:$0xff] }
 0x535   : > { %8332 = vmatprep.subr.bf16.mxu0 %v9880_v38  ;;  %v5135_v38 = vld [vmem:[%s10306_s6 + $0x1d8] sm:$0xff] }
 0x536   : > { %v9722_v32 = vcombine.high %v5127_v35, %v5135_v38 }
 0x538   : > { %8333 = vmatpush2.bf16.msra.mxu0 %v9879_v60  ;;  %v9737_v60 = vcombine.low %v5143_v41, %v5151_v45  ;;  %v9913_v41 = vcombine.low %v5319_v25, %v5327_v54 }
 0x539   : > { %8334 = vmatprep.subr.bf16.mxu0 %v9864_v48 }
 0x53c   : > { %8335 = vmatpush2.bf16.msra.mxu0 %v9863_v53  ;;  %v5421_v53 = vld [vmem:[%s10306_s6 + $0xac8] sm:$0xff] }
 0x53d   : > { %8336 = vmatprep.subr.bf16.mxu0 %v9848_v51  ;;  %v5111_v51 = vld [vmem:[%s10306_s6 + $0x118] sm:$0xff]  ;;  %v10005_v47 = vcombine.low %v5413_v63, %v5421_v53 }
 0x53e   : > { %v9706_v26 = vcombine.high %v5111_v51, %v5119_v34  ;;  %v9705_v5 = vcombine.low %v5111_v51, %v5119_v34  ;;  %v5565_v51 = vld [vmem:[%s10306_s6 + $0xf48] sm:$0xff]  ;;  %v5255_v34 = vld [vmem:[%s10306_s6 + $0x598] sm:$0xff] }
 0x540   : > { %8337 = vmatpush2.bf16.msra.mxu0 %v9847_v20  ;;  %v9721_v20 = vcombine.low %v5127_v35, %v5135_v38  ;;  %v5271_v35 = vld [vmem:[%s10306_s6 + $0x618] sm:$0xff] }
 0x541   : > { %8338 = vmatprep.subr.bf16.mxu0 %v9832_v56  ;;  %v10006_v56 = vcombine.high %v5413_v63, %v5421_v53  ;;  %v5279_v38 = vld [vmem:[%s10306_s6 + $0x658] sm:$0xff]  ;;  %v5557_v53 = vld [vmem:[%s10306_s6 + $0xf08] sm:$0xff] }
 0x542   : > { %v9866_v63 = vcombine.high %v5271_v35, %v5279_v38 }
 0x544   : > { %8339 = vmatpush2.bf16.msra.mxu0 %v9831_v10  ;;  %v5405_v10 = vld [vmem:[%s10306_s6 + $0xa48] sm:$0xff] }
 0x545   : > { %8340 = vmatprep.subr.bf16.mxu0 %v9816_v8  ;;  %v5095_v8 = vld [vmem:[%s10306_s6 + $0x98] sm:$0xff] }
 0x546   : > { %v9690_v27 = vcombine.high %v5095_v8, %v5103_v9 }
 0x548   : > { %8341 = vmatpush2.bf16.msra.mxu0 %v9815_v22  ;;  %v5381_v22 = vld [vmem:[%s10306_s6 + $0x988] sm:$0xff] }
 0x549   : > { %8342 = vmatprep.subr.bf16.mxu0 %v9800_v29  ;;  %v5389_v29 = vld [vmem:[%s10306_s6 + $0x9c8] sm:$0xff] }
 0x54a   : > { %v9974_v15 = vcombine.high %v5381_v22, %v5389_v29 }
 0x54c   : > { %8343 = vmatpush2.bf16.msra.mxu0 %v9799_v39  ;;  %v9989_v39 = vcombine.low %v5397_v4, %v5405_v10 }
 0x54d   : > { %8394 = vmatprep.subr.bf16.mxu0 %v9786_v18  ;;  %v9689_v18 = vcombine.low %v5095_v8, %v5103_v9  ;;  %v5549_v8 = vld [vmem:[%s10306_s6 + $0xec8] sm:$0xff]  ;;  %v5239_v9 = vld [vmem:[%s10306_s6 + $0x518] sm:$0xff] }
 0x54f   : > { %v5016_v23 = vpop.f32.mrf.mxu0  ;;  %8345 = vmatmul.mubr.bf16.vlgmr.msra.gmra.mxu0 %v11443_v44  ;;  %v5057_v33 = vpop.f32.mrf.mxu1 }
 0x550   : > { %v5017_v17 = vadd.f32 %v5016_v23, %v11452_v19  ;;  %8395 = vmatpush1.bf16.msra.mxu0 %v9785_v52  ;;  %8426 = vmatprep.mubr.bf16.mxu0 %v11379_v59  ;;  %v5365_v52 = vld [vmem:[%s10306_s6 + $0x908] sm:$0xff]  ;;  %v9973_v23 = vcombine.low %v5381_v22, %v5389_v29 }
 0x551   : > { %v5018_v55 = vpop.f32.mrf.mxu0  ;;  %8396 = vmatprep.subr.bf16.mxu0 %v9770_v21  ;;  %v5059_v37 = vpop.f32.mrf.mxu1  ;;  %v5373_v21 = vld [vmem:[%s10306_s6 + $0x948] sm:$0xff] }
 0x552   : > { %v5058_v6 = vadd.f32 %v5057_v33, %v5017_v17  ;;  %v5019_v36 = vadd.f32 %v5018_v55, %v11457_v31  ;;  %v5429_v31 = vld [vmem:[%s10306_s6 + $0xb08] sm:$0xff]  ;;  %v9673_v17 = vcombine.low %v5079_v11, %v5087_v14  ;;  %v9958_v33 = vcombine.high %v5365_v52, %v5373_v21  ;;  %v5223_v14 = vld [vmem:[%s10306_s6 + $0x498] sm:$0xff] }
 0x553   : > { %v5020_v61 = vpop.f32.mrf.mxu0  ;;  %v5061_v50 = vpop.f32.mrf.mxu1  ;;  %v10022_v48 = vcombine.high %v5429_v31, %v5437_v24  ;;  %v10021_v0 = vcombine.low %v5429_v31, %v5437_v24  ;;  %v5349_v55 = vld [vmem:[%s10306_s6 + $0x888] sm:$0xff] }
 0x554   : > { %v5060_v19 = vadd.f32 %v5059_v37, %v5019_v36  ;;  %8397 = vmatpush1.bf16.msra.mxu0 %v9769_v58  ;;  %v5066_v57 = vmax.f32 %v5058_v6, 0.0  ;;  %v9914_v58 = vcombine.high %v5319_v25, %v5327_v54  ;;  %v5303_v6 = vld [vmem:[%s10306_s6 + $0x718] sm:$0xff]  ;;  %v9957_v37 = vcombine.low %v5365_v52, %v5373_v21  ;;  %v5341_v50 = vld [vmem:[%s10306_s6 + $0x848] sm:$0xff] }
 0x555   : > { %v5021_v42 = vpop.f32.mrf.mxu0  ;;  %8398 = vmatprep.subr.bf16.mxu0 %v9754_v3  ;;  %v5062_v28 = vpop.f32.mrf.mxu1  ;;  %v5357_v3 = vld [vmem:[%s10306_s6 + $0x8c8] sm:$0xff]  ;;  %v5311_v36 = vld [vmem:[%s10306_s6 + $0x758] sm:$0xff] }
 0x556   : > { %v5067_v62 = vmax.f32 %v5060_v19, 0.0  ;;  %v11547_v46 = vpack.c.bf16 %v5066_v57, %v5066_v57  ;;  %v9942_v45 = vcombine.high %v5349_v55, %v5357_v3  ;;  %v9898_v61 = vcombine.high %v5303_v6, %v5311_v36  ;;  %v5333_v19 = vld [vmem:[%s10306_s6 + $0x808] sm:$0xff]  ;;  %v5295_v57 = vld [vmem:[%s10306_s6 + $0x6d8] sm:$0xff] }
 0x557   : > { %v9941_v42 = vcombine.low %v5349_v55, %v5357_v3  ;;  %v5573_v31 = vld [vmem:[%s10306_s6 + $0xf88] sm:$0xff]  ;;  %v5207_v54 = vld [vmem:[%s10306_s6 + $0x418] sm:$0xff] }
 0x558   : > { %v11545_v40 = vpack.c.bf16 %v5067_v62, %v5067_v62  ;;  %8399 = vmatpush1.bf16.msra.mxu0 %v9753_v30  ;;  %v5287_v30 = vld [vmem:[%s10306_s6 + $0x698] sm:$0xff]  ;;  %v9926_v62 = vcombine.high %v5333_v19, %v5341_v50  ;;  %v5581_v24 = vld [vmem:[%s10306_s6 + $0xfc8] sm:$0xff] }
 0x559   : > { %8400 = vmatprep.subr.bf16.mxu0 %v9738_v43  ;;  %v9897_v43 = vcombine.low %v5303_v6, %v5311_v36  ;;  %v9882_v28 = vcombine.high %v5287_v30, %v5295_v57  ;;  %v5525_v29 = vld [vmem:[%s10306_s6 + $0xe08] sm:$0xff]  ;;  %v5192_v36 = vld [vmem:[%s10306_s6 + $0x3a0] sm:$0xff] }
 0x55a   : > { %8221 = vmatprep.mubr.bf16.mxu1 %v11545_v40  ;;  %v5533_v11 = vld [vmem:[%s10306_s6 + $0xe48] sm:$0xff] }
 0x55b   : > { %8222 = vmatmul.mubr.bf16.vlgmr.msra.gmra.mxu1 %v11547_v46  ;;  %v5509_v21 = vld [vmem:[%s10306_s6 + $0xd88] sm:$0xff] }
 0x55c   : > { %8272 = vmatpush1.bf16.msra.mxu1 %v10037_v49  ;;  %8303 = vmatprep.mubr.bf16.mxu1 %v11545_v40  ;;  %v9990_v49 = vcombine.high %v5397_v4, %v5405_v10  ;;  %v5541_v10 = vld [vmem:[%s10306_s6 + $0xe88] sm:$0xff] }
 0x55d   : > { %8401 = vmatpush1.bf16.msra.mxu0 %v9737_v60  ;;  %8273 = vmatprep.subr.bf16.mxu1 %v10022_v48  ;;  %v9925_v60 = vcombine.low %v5333_v19, %v5341_v50  ;;  %v9881_v48 = vcombine.low %v5287_v30, %v5295_v57  ;;  %v5517_v25 = vld [vmem:[%s10306_s6 + $0xdc8] sm:$0xff]  ;;  %v5176_v57 = vld [vmem:[%s10306_s6 + $0x320] sm:$0xff] }
 0x55e   : > { %8402 = vmatprep.subr.bf16.mxu0 %v9722_v32  ;;  %v10166_v32 = vcombine.high %v5573_v31, %v5581_v24  ;;  %v5493_v3 = vld [vmem:[%s10306_s6 + $0xd08] sm:$0xff] }
 0x55f   : > { %v5501_v6 = vld [vmem:[%s10306_s6 + $0xd48] sm:$0xff] }
 0x560   : > { %8274 = vmatpush1.bf16.msra.mxu1 %v10021_v0  ;;  %v5263_v0 = vld [vmem:[%s10306_s6 + $0x5d8] sm:$0xff]  ;;  %v5477_v50 = vld [vmem:[%s10306_s6 + $0xc88] sm:$0xff] }
 0x561   : > { %8403 = vmatpush1.bf16.msra.mxu0 %v9721_v20  ;;  %8275 = vmatprep.subr.bf16.mxu1 %v10006_v56  ;;  %v10165_v20 = vcombine.low %v5573_v31, %v5581_v24  ;;  %v9865_v56 = vcombine.low %v5271_v35, %v5279_v38  ;;  %v9850_v4 = vcombine.high %v5255_v34, %v5263_v0  ;;  %v5485_v30 = vld [vmem:[%s10306_s6 + $0xcc8] sm:$0xff] }
 0x562   : > { %8404 = vmatprep.subr.bf16.mxu0 %v9706_v26  ;;  %v10150_v26 = vcombine.high %v5557_v53, %v5565_v51  ;;  %v5461_v24 = vld [vmem:[%s10306_s6 + $0xc08] sm:$0xff] }
 0x563   : > { %v5469_v35 = vld [vmem:[%s10306_s6 + $0xc48] sm:$0xff] }
 0x564   : > { %8276 = vmatpush1.bf16.msra.mxu1 %v10005_v47  ;;  %v5247_v47 = vld [vmem:[%s10306_s6 + $0x558] sm:$0xff] }
 0x565   : > { %8405 = vmatpush1.bf16.msra.mxu0 %v9705_v5  ;;  %8277 = vmatprep.subr.bf16.mxu1 %v9990_v49  ;;  %v10149_v5 = vcombine.low %v5557_v53, %v5565_v51  ;;  %v9849_v49 = vcombine.low %v5255_v34, %v5263_v0  ;;  %v9834_v22 = vcombine.high %v5239_v9, %v5247_v47  ;;  %v5446_v0 = vld [vmem:[%s10306_s6 + $0xb90] sm:$0xff] }
 0x566   : > { %8406 = vmatprep.subr.bf16.mxu0 %v9690_v27  ;;  %v10134_v27 = vcombine.high %v5541_v10, %v5549_v8  ;;  %v10054_v51 = vcombine.high %v5461_v24, %v5469_v35 }
 0x568   : > { %8278 = vmatpush1.bf16.msra.mxu1 %v9989_v39  ;;  %v5231_v39 = vld [vmem:[%s10306_s6 + $0x4d8] sm:$0xff] }
 0x569   : > { %8407 = vmatpush1.bf16.msra.mxu0 %v9689_v18  ;;  %8279 = vmatprep.subr.bf16.mxu1 %v9974_v15  ;;  %v10133_v18 = vcombine.low %v5541_v10, %v5549_v8  ;;  %v9833_v15 = vcombine.low %v5239_v9, %v5247_v47  ;;  %v9818_v52 = vcombine.high %v5223_v14, %v5231_v39 }
 0x56a   : > { %8408 = vmatprep.subr.bf16.mxu0 %v9674_v12  ;;  %v10118_v12 = vcombine.high %v5525_v29, %v5533_v11  ;;  %v10053_v10 = vcombine.low %v5461_v24, %v5469_v35  ;;  %v5328_v24 = vld [vmem:[%s10306_s6 + $0x7e0] sm:$0xff] }
 0x56c   : > { %8280 = vmatpush1.bf16.msra.mxu1 %v9973_v23  ;;  %v5215_v23 = vld [vmem:[%s10306_s6 + $0x458] sm:$0xff] }
 0x56d   : > { %8409 = vmatpush1.bf16.msra.mxu0 %v9673_v17  ;;  %8281 = vmatprep.subr.bf16.mxu1 %v9958_v33  ;;  %v10117_v17 = vcombine.low %v5525_v29, %v5533_v11  ;;  %v9817_v33 = vcombine.low %v5223_v14, %v5231_v39  ;;  %v9802_v55 = vcombine.high %v5207_v54, %v5215_v23  ;;  %v5136_v29 = vld [vmem:[%s10306_s6 + $0x1e0] sm:$0xff] }
 0x56e   : > { %8410 = vmatprep.subr.bf16.mxu0 %v9914_v58  ;;  %v10102_v58 = vcombine.high %v5509_v21, %v5517_v25 }
 0x570   : > { %8282 = vmatpush1.bf16.msra.mxu1 %v9957_v37  ;;  %v5200_v37 = vld [vmem:[%s10306_s6 + $0x3e0] sm:$0xff] }
 0x571   : > { %8411 = vmatpush2.bf16.msra.mxu0 %v9913_v41  ;;  %8283 = vmatprep.subr.bf16.mxu1 %v9942_v45  ;;  %v10101_v41 = vcombine.low %v5509_v21, %v5517_v25  ;;  %v9801_v45 = vcombine.low %v5207_v54, %v5215_v23  ;;  %v9788_v19 = vcombine.high %v5192_v36, %v5200_v37  ;;  %v5120_v21 = vld [vmem:[%s10306_s6 + $0x160] sm:$0xff] }
 0x572   : > { %8412 = vmatprep.subr.bf16.mxu0 %v9898_v61  ;;  %v10086_v61 = vcombine.high %v5493_v3, %v5501_v6 }
 0x574   : > { %8284 = vmatpush1.bf16.msra.mxu1 %v9941_v42  ;;  %v5184_v42 = vld [vmem:[%s10306_s6 + $0x360] sm:$0xff] }
 0x575   : > { %8413 = vmatpush2.bf16.msra.mxu0 %v9897_v43  ;;  %8285 = vmatprep.subr.bf16.mxu1 %v9926_v62  ;;  %v10085_v43 = vcombine.low %v5493_v3, %v5501_v6  ;;  %v9787_v62 = vcombine.low %v5192_v36, %v5200_v37  ;;  %v9772_v31 = vcombine.high %v5176_v57, %v5184_v42  ;;  %v5104_v3 = vld [vmem:[%s10306_s6 + $0xe0] sm:$0xff] }
 0x576   : > { %8414 = vmatprep.subr.bf16.mxu0 %v9882_v28  ;;  %v10070_v28 = vcombine.high %v5477_v50, %v5485_v30  ;;  %v9771_v53 = vcombine.low %v5176_v57, %v5184_v42 }
 0x578   : > { %8286 = vmatpush1.bf16.msra.mxu1 %v9925_v60  ;;  %v5160_v60 = vld [vmem:[%s10306_s6 + $0x2a0] sm:$0xff] }
 0x579   : > { %8415 = vmatpush2.bf16.msra.mxu0 %v9881_v48  ;;  %8287 = vmatprep.subr.bf16.mxu1 %v10166_v32  ;;  %v5168_v48 = vld [vmem:[%s10306_s6 + $0x2e0] sm:$0xff]  ;;  %v10069_v32 = vcombine.low %v5477_v50, %v5485_v30 }
 0x57a   : > { %8416 = vmatprep.subr.bf16.mxu0 %v9866_v63  ;;  %v9756_v34 = vcombine.high %v5160_v60, %v5168_v48  ;;  %v9755_v9 = vcombine.low %v5160_v60, %v5168_v48  ;;  %v5088_v50 = vld [vmem:[%s10306_s6 + $0x60] sm:$0xff] }
 0x57c   : > { %8288 = vmatpush2.bf16.msra.mxu1 %v10165_v20  ;;  %v5454_v20 = vld [vmem:[%s10306_s6 + $0xbd0] sm:$0xff] }
 0x57d   : > { %8417 = vmatpush2.bf16.msra.mxu0 %v9865_v56  ;;  %8289 = vmatprep.subr.bf16.mxu1 %v10150_v26  ;;  %v5144_v26 = vld [vmem:[%s10306_s6 + $0x220] sm:$0xff]  ;;  %v10040_v47 = vcombine.high %v5446_v0, %v5454_v20  ;;  %v10039_v11 = vcombine.low %v5446_v0, %v5454_v20 }
 0x57e   : > { %8418 = vmatprep.subr.bf16.mxu0 %v9850_v4  ;;  %v5152_v4 = vld [vmem:[%s10306_s6 + $0x260] sm:$0xff] }
 0x57f   : > { %v9739_v14 = vcombine.low %v5144_v26, %v5152_v4  ;;  %v5312_v0 = vld [vmem:[%s10306_s6 + $0x760] sm:$0xff] }
 0x580   : > { %8290 = vmatpush2.bf16.msra.mxu1 %v10149_v5  ;;  %v9740_v5 = vcombine.high %v5144_v26, %v5152_v4 }
 0x581   : > { %8419 = vmatpush2.bf16.msra.mxu0 %v9849_v49  ;;  %8291 = vmatprep.subr.bf16.mxu1 %v10134_v27  ;;  %v5430_v49 = vld [vmem:[%s10306_s6 + $0xb10] sm:$0xff] }
 0x582   : > { %8420 = vmatprep.subr.bf16.mxu0 %v9834_v22  ;;  %v5438_v27 = vld [vmem:[%s10306_s6 + $0xb50] sm:$0xff]  ;;  %v5128_v22 = vld [vmem:[%s10306_s6 + $0x1a0] sm:$0xff] }
 0x583   : > { %v10024_v39 = vcombine.high %v5430_v49, %v5438_v27  ;;  %v10023_v25 = vcombine.low %v5430_v49, %v5438_v27  ;;  %v9723_v54 = vcombine.low %v5128_v22, %v5136_v29 }
 0x584   : > { %8292 = vmatpush2.bf16.msra.mxu1 %v10133_v18  ;;  %v9724_v18 = vcombine.high %v5128_v22, %v5136_v29  ;;  %v5574_v29 = vld [vmem:[%s10306_s6 + $0xf90] sm:$0xff] }
 0x585   : > { %8421 = vmatpush2.bf16.msra.mxu0 %v9833_v15  ;;  %8293 = vmatprep.subr.bf16.mxu1 %v10118_v12  ;;  %v5414_v15 = vld [vmem:[%s10306_s6 + $0xa90] sm:$0xff] }
 0x586   : > { %8422 = vmatprep.subr.bf16.mxu0 %v9818_v52  ;;  %v5422_v12 = vld [vmem:[%s10306_s6 + $0xad0] sm:$0xff]  ;;  %v5112_v52 = vld [vmem:[%s10306_s6 + $0x120] sm:$0xff] }
 0x587   : > { %v10008_v23 = vcombine.high %v5414_v15, %v5422_v12  ;;  %v10007_v6 = vcombine.low %v5414_v15, %v5422_v12  ;;  %v9707_v36 = vcombine.low %v5112_v52, %v5120_v21 }
 0x588   : > { %8294 = vmatpush2.bf16.msra.mxu1 %v10117_v17  ;;  %v9708_v17 = vcombine.high %v5112_v52, %v5120_v21  ;;  %v5558_v21 = vld [vmem:[%s10306_s6 + $0xf10] sm:$0xff] }
 0x589   : > { %8423 = vmatpush2.bf16.msra.mxu0 %v9817_v33  ;;  %8295 = vmatprep.subr.bf16.mxu1 %v10102_v58  ;;  %v5398_v33 = vld [vmem:[%s10306_s6 + $0xa10] sm:$0xff] }
 0x58a   : > { %8424 = vmatprep.subr.bf16.mxu0 %v9802_v55  ;;  %v5406_v58 = vld [vmem:[%s10306_s6 + $0xa50] sm:$0xff]  ;;  %v5096_v55 = vld [vmem:[%s10306_s6 + $0xa0] sm:$0xff] }
 0x58b   : > { %v9992_v37 = vcombine.high %v5398_v33, %v5406_v58  ;;  %v9991_v30 = vcombine.low %v5398_v33, %v5406_v58  ;;  %v9691_v57 = vcombine.low %v5096_v55, %v5104_v3 }
 0x58c   : > { %8296 = vmatpush2.bf16.msra.mxu1 %v10101_v41  ;;  %v9692_v41 = vcombine.high %v5096_v55, %v5104_v3  ;;  %v5542_v3 = vld [vmem:[%s10306_s6 + $0xe90] sm:$0xff] }
 0x58d   : > { %8425 = vmatpush2.bf16.msra.mxu0 %v9801_v45  ;;  %8297 = vmatprep.subr.bf16.mxu1 %v10086_v61  ;;  %v5382_v45 = vld [vmem:[%s10306_s6 + $0x990] sm:$0xff] }
 0x58e   : > { %8476 = vmatprep.subr.bf16.mxu0 %v9788_v19  ;;  %v5390_v61 = vld [vmem:[%s10306_s6 + $0x9d0] sm:$0xff]  ;;  %v5080_v19 = vld [vmem:[%s10306_s6 + $0x20] sm:$0xff] }
 0x58f   : > { %v11609_v38 = vpop.f32.mrf.mxu0  ;;  %v9976_v42 = vcombine.high %v5382_v45, %v5390_v61  ;;  %v9975_v35 = vcombine.low %v5382_v45, %v5390_v61  ;;  %v9675_v60 = vcombine.low %v5080_v19, %v5088_v50 }
 0x590   : > { %8298 = vmatpush2.bf16.msra.mxu1 %v10085_v43  ;;  %8427 = vmatmul.mubr.bf16.vlgmr.msra.gmra.mxu0 %v11443_v44  ;;  %v9676_v43 = vcombine.high %v5080_v19, %v5088_v50  ;;  %v5526_v50 = vld [vmem:[%s10306_s6 + $0xe10] sm:$0xff] }
 0x591   : > { %8477 = vmatpush1.bf16.msra.mxu0 %v9787_v62  ;;  %8508 = vmatprep.mubr.bf16.mxu0 %v11379_v59  ;;  %v11615_v63 = vpop.f32.mrf.mxu0  ;;  %v5366_v62 = vld [vmem:[%s10306_s6 + $0x910] sm:$0xff] }
 0x592   : > { %8299 = vmatprep.subr.bf16.mxu1 %v10070_v28  ;;  %8478 = vmatprep.subr.bf16.mxu0 %v9772_v31  ;;  %v5374_v28 = vld [vmem:[%s10306_s6 + $0x950] sm:$0xff]  ;;  %v5320_v31 = vld [vmem:[%s10306_s6 + $0x7a0] sm:$0xff] }
 0x593   : > { %v8186_v56 = vpop.f32.mrf.mxu0  ;;  %v9960_v48 = vcombine.high %v5366_v62, %v5374_v28  ;;  %v9959_v20 = vcombine.low %v5366_v62, %v5374_v28 }
 0x594   : > { %8300 = vmatpush2.bf16.msra.mxu1 %v10069_v32  ;;  %v9916_v32 = vcombine.high %v5320_v31, %v5328_v24  ;;  %v9915_v56 = vcombine.low %v5320_v31, %v5328_v24  ;;  %v5510_v24 = vld [vmem:[%s10306_s6 + $0xd90] sm:$0xff] }
 0x595   : > { %8479 = vmatpush1.bf16.msra.mxu0 %v9771_v53  ;;  %v8187_v8 = vpop.f32.mrf.mxu0  ;;  %8301 = vmatprep.subr.bf16.mxu1 %v10054_v51  ;;  %v5350_v53 = vld [vmem:[%s10306_s6 + $0x890] sm:$0xff] }
 0x596   : > { %8480 = vmatprep.subr.bf16.mxu0 %v9756_v34  ;;  %v5358_v51 = vld [vmem:[%s10306_s6 + $0x8d0] sm:$0xff]  ;;  %v5304_v34 = vld [vmem:[%s10306_s6 + $0x720] sm:$0xff] }
 0x597   : > { %v9944_v26 = vcombine.high %v5350_v53, %v5358_v51  ;;  %v9900_v4 = vcombine.high %v5304_v34, %v5312_v0  ;;  %v5342_v8 = vld [vmem:[%s10306_s6 + $0x850] sm:$0xff]  ;;  %v9899_v49 = vcombine.low %v5304_v34, %v5312_v0 }
 0x598   : > { %8302 = vmatpush2.bf16.msra.mxu1 %v10053_v10  ;;  %v5334_v10 = vld [vmem:[%s10306_s6 + $0x810] sm:$0xff] }
 0x599   : > { %8481 = vmatpush1.bf16.msra.mxu0 %v9755_v9  ;;  %8353 = vmatprep.subr.bf16.mxu1 %v10040_v47  ;;  %v5288_v9 = vld [vmem:[%s10306_s6 + $0x6a0] sm:$0xff]  ;;  %v9928_v27 = vcombine.high %v5334_v10, %v5342_v8  ;;  %v5494_v0 = vld [vmem:[%s10306_s6 + $0xd10] sm:$0xff] }
 0x59a   : > { %8482 = vmatprep.subr.bf16.mxu0 %v9740_v5  ;;  %v5296_v47 = vld [vmem:[%s10306_s6 + $0x6e0] sm:$0xff]  ;;  %v9943_v5 = vcombine.low %v5350_v53, %v5358_v51 }
 0x59b   : > { %8304 = vmatmul.mubr.bf16.vlgmr.msra.gmra.mxu1 %v11547_v46  ;;  %v9884_v22 = vcombine.high %v5288_v9, %v5296_v47  ;;  %v9883_v15 = vcombine.low %v5288_v9, %v5296_v47  ;;  %v5478_v47 = vld [vmem:[%s10306_s6 + $0xc90] sm:$0xff] }
 0x59c   : > { %8354 = vmatpush1.bf16.msra.mxu1 %v10039_v11  ;;  %8385 = vmatprep.mubr.bf16.mxu1 %v11545_v40  ;;  %v5582_v11 = vld [vmem:[%s10306_s6 + $0xfd0] sm:$0xff] }
 0x59d   : > { %8483 = vmatpush1.bf16.msra.mxu0 %v9739_v14  ;;  %8355 = vmatprep.subr.bf16.mxu1 %v10024_v39  ;;  %v5272_v14 = vld [vmem:[%s10306_s6 + $0x620] sm:$0xff]  ;;  %v10168_v12 = vcombine.high %v5574_v29, %v5582_v11 }
 0x59e   : > { %8484 = vmatprep.subr.bf16.mxu0 %v9724_v18  ;;  %v5280_v39 = vld [vmem:[%s10306_s6 + $0x660] sm:$0xff]  ;;  %v9927_v18 = vcombine.low %v5334_v10, %v5342_v8 }
 0x59f   : > { %v9868_v52 = vcombine.high %v5272_v14, %v5280_v39  ;;  %v9867_v33 = vcombine.low %v5272_v14, %v5280_v39  ;;  %v5462_v39 = vld [vmem:[%s10306_s6 + $0xc10] sm:$0xff] }
 0x5a0   : > { %8356 = vmatpush1.bf16.msra.mxu1 %v10023_v25  ;;  %v5566_v25 = vld [vmem:[%s10306_s6 + $0xf50] sm:$0xff] }
 0x5a1   : > { %8485 = vmatpush1.bf16.msra.mxu0 %v9723_v54  ;;  %8357 = vmatprep.subr.bf16.mxu1 %v10008_v23  ;;  %v5256_v54 = vld [vmem:[%s10306_s6 + $0x5a0] sm:$0xff]  ;;  %v10152_v58 = vcombine.high %v5558_v21, %v5566_v25 }
 0x5a2   : > { %8486 = vmatprep.subr.bf16.mxu0 %v9708_v17  ;;  %v5264_v23 = vld [vmem:[%s10306_s6 + $0x5e0] sm:$0xff]  ;;  %v10167_v17 = vcombine.low %v5574_v29, %v5582_v11 }
 0x5a3   : > { %v9852_v55 = vcombine.high %v5256_v54, %v5264_v23  ;;  %v9851_v45 = vcombine.low %v5256_v54, %v5264_v23 }
 0x5a4   : > { %8358 = vmatpush1.bf16.msra.mxu1 %v10007_v6  ;;  %v5550_v6 = vld [vmem:[%s10306_s6 + $0xed0] sm:$0xff] }
 0x5a5   : > { %8487 = vmatpush1.bf16.msra.mxu0 %v9707_v36  ;;  %8359 = vmatprep.subr.bf16.mxu1 %v9992_v37  ;;  %v5240_v36 = vld [vmem:[%s10306_s6 + $0x520] sm:$0xff]  ;;  %v10136_v61 = vcombine.high %v5542_v3, %v5550_v6 }
 0x5a6   : > { %8488 = vmatprep.subr.bf16.mxu0 %v9692_v41  ;;  %v5248_v37 = vld [vmem:[%s10306_s6 + $0x560] sm:$0xff]  ;;  %v10151_v41 = vcombine.low %v5558_v21, %v5566_v25 }
 0x5a7   : > { %v9836_v19 = vcombine.high %v5240_v36, %v5248_v37  ;;  %v9835_v62 = vcombine.low %v5240_v36, %v5248_v37 }
 0x5a8   : > { %8360 = vmatpush1.bf16.msra.mxu1 %v9991_v30  ;;  %v5534_v30 = vld [vmem:[%s10306_s6 + $0xe50] sm:$0xff] }
 0x5a9   : > { %8489 = vmatpush1.bf16.msra.mxu0 %v9691_v57  ;;  %8361 = vmatprep.subr.bf16.mxu1 %v9976_v42  ;;  %v5224_v57 = vld [vmem:[%s10306_s6 + $0x4a0] sm:$0xff]  ;;  %v10120_v28 = vcombine.high %v5526_v50, %v5534_v30 }
 0x5aa   : > { %8490 = vmatprep.subr.bf16.mxu0 %v9676_v43  ;;  %v5232_v42 = vld [vmem:[%s10306_s6 + $0x4e0] sm:$0xff]  ;;  %v10135_v43 = vcombine.low %v5542_v3, %v5550_v6  ;;  %v5145_v3 = vld [vmem:[%s10306_s6 + $0x228] sm:$0xff] }
 0x5ab   : > { %v9820_v31 = vcombine.high %v5224_v57, %v5232_v42  ;;  %v9819_v53 = vcombine.low %v5224_v57, %v5232_v42  ;;  %v5153_v6 = vld [vmem:[%s10306_s6 + $0x268] sm:$0xff] }
 0x5ac   : > { %8362 = vmatpush1.bf16.msra.mxu1 %v9975_v35  ;;  %v5518_v35 = vld [vmem:[%s10306_s6 + $0xdd0] sm:$0xff]  ;;  %v5137_v57 = vld [vmem:[%s10306_s6 + $0x1e8] sm:$0xff] }
 0x5ad   : > { %8491 = vmatpush1.bf16.msra.mxu0 %v9675_v60  ;;  %8363 = vmatprep.subr.bf16.mxu1 %v9960_v48  ;;  %v5208_v60 = vld [vmem:[%s10306_s6 + $0x420] sm:$0xff]  ;;  %v10104_v51 = vcombine.high %v5510_v24, %v5518_v35 }
 0x5ae   : > { %8492 = vmatprep.subr.bf16.mxu0 %v9916_v32  ;;  %v5216_v48 = vld [vmem:[%s10306_s6 + $0x460] sm:$0xff]  ;;  %v10119_v32 = vcombine.low %v5526_v50, %v5534_v30  ;;  %v5439_v50 = vld [vmem:[%s10306_s6 + $0xb58] sm:$0xff]  ;;  %v5129_v30 = vld [vmem:[%s10306_s6 + $0x1a8] sm:$0xff] }
 0x5af   : > { %v9804_v34 = vcombine.high %v5208_v60, %v5216_v48  ;;  %v9803_v10 = vcombine.low %v5208_v60, %v5216_v48  ;;  %v5121_v60 = vld [vmem:[%s10306_s6 + $0x168] sm:$0xff] }
 0x5b0   : > { %8364 = vmatpush1.bf16.msra.mxu1 %v9959_v20  ;;  %v5502_v20 = vld [vmem:[%s10306_s6 + $0xd50] sm:$0xff] }
 0x5b1   : > { %8493 = vmatpush2.bf16.msra.mxu0 %v9915_v56  ;;  %8365 = vmatprep.subr.bf16.mxu1 %v9944_v26  ;;  %v5193_v56 = vld [vmem:[%s10306_s6 + $0x3a8] sm:$0xff]  ;;  %v10088_v8 = vcombine.high %v5494_v0, %v5502_v20 }
 0x5b2   : > { %8494 = vmatprep.subr.bf16.mxu0 %v9900_v4  ;;  %v5201_v26 = vld [vmem:[%s10306_s6 + $0x3e8] sm:$0xff]  ;;  %v10103_v4 = vcombine.low %v5510_v24, %v5518_v35  ;;  %v5423_v24 = vld [vmem:[%s10306_s6 + $0xad8] sm:$0xff] }
 0x5b3   : > { %v9790_v9 = vcombine.high %v5193_v56, %v5201_v26  ;;  %v9789_v29 = vcombine.low %v5193_v56, %v5201_v26  ;;  %v5113_v35 = vld [vmem:[%s10306_s6 + $0x128] sm:$0xff] }
 0x5b4   : > { %8366 = vmatpush1.bf16.msra.mxu1 %v9943_v5  ;;  %v5486_v5 = vld [vmem:[%s10306_s6 + $0xcd0] sm:$0xff]  ;;  %v5105_v56 = vld [vmem:[%s10306_s6 + $0xe8] sm:$0xff] }
 0x5b5   : > { %8495 = vmatpush2.bf16.msra.mxu0 %v9899_v49  ;;  %8367 = vmatprep.subr.bf16.mxu1 %v9928_v27  ;;  %v5177_v49 = vld [vmem:[%s10306_s6 + $0x328] sm:$0xff]  ;;  %v10072_v11 = vcombine.high %v5478_v47, %v5486_v5  ;;  %v10071_v21 = vcombine.low %v5478_v47, %v5486_v5  ;;  %v5391_v47 = vld [vmem:[%s10306_s6 + $0x9d8] sm:$0xff] }
 0x5b6   : > { %8496 = vmatprep.subr.bf16.mxu0 %v9884_v22  ;;  %v5185_v27 = vld [vmem:[%s10306_s6 + $0x368] sm:$0xff]  ;;  %v10087_v22 = vcombine.low %v5494_v0, %v5502_v20  ;;  %v5407_v0 = vld [vmem:[%s10306_s6 + $0xa58] sm:$0xff] }
 0x5b7   : > { %v9774_v14 = vcombine.high %v5177_v49, %v5185_v27  ;;  %v9773_v54 = vcombine.low %v5177_v49, %v5185_v27  ;;  %v5097_v20 = vld [vmem:[%s10306_s6 + $0xa8] sm:$0xff] }
 0x5b8   : > { %8368 = vmatpush1.bf16.msra.mxu1 %v9927_v18  ;;  %v5470_v18 = vld [vmem:[%s10306_s6 + $0xc50] sm:$0xff]  ;;  %v5081_v5 = vld [vmem:[%s10306_s6 + $0x28] sm:$0xff] }
 0x5b9   : > { %8497 = vmatpush2.bf16.msra.mxu0 %v9883_v15  ;;  %8369 = vmatprep.subr.bf16.mxu1 %v10168_v12  ;;  %v5161_v12 = vld [vmem:[%s10306_s6 + $0x2a8] sm:$0xff]  ;;  %v10056_v23 = vcombine.high %v5462_v39, %v5470_v18  ;;  %v10055_v36 = vcombine.low %v5462_v39, %v5470_v18  ;;  %v5375_v39 = vld [vmem:[%s10306_s6 + $0x958] sm:$0xff] }
 0x5ba   : > { %8498 = vmatprep.subr.bf16.mxu0 %v9868_v52  ;;  %v5169_v52 = vld [vmem:[%s10306_s6 + $0x2e8] sm:$0xff] }
 0x5bb   : > { %v5089_v49 = vld [vmem:[%s10306_s6 + $0x68] sm:$0xff] }
 0x5bc   : > { %8370 = vmatpush2.bf16.msra.mxu1 %v10167_v17  ;;  %v9758_v17 = vcombine.high %v5161_v12, %v5169_v52  ;;  %v5321_v18 = vld [vmem:[%s10306_s6 + $0x7a8] sm:$0xff] }
 0x5bd   : > { %8499 = vmatpush2.bf16.msra.mxu0 %v9867_v33  ;;  %8371 = vmatprep.subr.bf16.mxu1 %v10152_v58  ;;  %v5447_v33 = vld [vmem:[%s10306_s6 + $0xb98] sm:$0xff] }
 0x5be   : > { %8500 = vmatprep.subr.bf16.mxu0 %v9852_v55  ;;  %v5455_v58 = vld [vmem:[%s10306_s6 + $0xbd8] sm:$0xff] }
 0x5bf   : > { %v10041_v42 = vcombine.low %v5447_v33, %v5455_v58 }
 0x5c0   : > { %8372 = vmatpush2.bf16.msra.mxu1 %v10151_v41  ;;  %v9757_v41 = vcombine.low %v5161_v12, %v5169_v52  ;;  %v5329_v12 = vld [vmem:[%s10306_s6 + $0x7e8] sm:$0xff] }
 0x5c1   : > { %8501 = vmatpush2.bf16.msra.mxu0 %v9851_v45  ;;  %8373 = vmatprep.subr.bf16.mxu1 %v10136_v61  ;;  %v10042_v45 = vcombine.high %v5447_v33, %v5455_v58  ;;  %v9742_v61 = vcombine.high %v5145_v3, %v5153_v6  ;;  %v5359_v33 = vld [vmem:[%s10306_s6 + $0x8d8] sm:$0xff]  ;;  %v5305_v58 = vld [vmem:[%s10306_s6 + $0x728] sm:$0xff] }
 0x5c2   : > { %8502 = vmatprep.subr.bf16.mxu0 %v9836_v19  ;;  %v5431_v19 = vld [vmem:[%s10306_s6 + $0xb18] sm:$0xff] }
 0x5c3   : > { %v10025_v48 = vcombine.low %v5431_v19, %v5439_v50 }
 0x5c4   : > { %8374 = vmatpush2.bf16.msra.mxu1 %v10135_v43  ;;  %v9741_v43 = vcombine.low %v5145_v3, %v5153_v6  ;;  %v9917_v6 = vcombine.low %v5321_v18, %v5329_v12 }
 0x5c5   : > { %8503 = vmatpush2.bf16.msra.mxu0 %v9835_v62  ;;  %8375 = vmatprep.subr.bf16.mxu1 %v10120_v28  ;;  %v10026_v62 = vcombine.high %v5431_v19, %v5439_v50  ;;  %v9726_v28 = vcombine.high %v5129_v30, %v5137_v57  ;;  %v5297_v19 = vld [vmem:[%s10306_s6 + $0x6e8] sm:$0xff] }
 0x5c6   : > { %8504 = vmatprep.subr.bf16.mxu0 %v9820_v31  ;;  %v5415_v31 = vld [vmem:[%s10306_s6 + $0xa98] sm:$0xff] }
 0x5c7   : > { %v10009_v26 = vcombine.low %v5415_v31, %v5423_v24 }
 0x5c8   : > { %8376 = vmatpush2.bf16.msra.mxu1 %v10119_v32  ;;  %v9725_v32 = vcombine.low %v5129_v30, %v5137_v57 }
 0x5c9   : > { %8505 = vmatpush2.bf16.msra.mxu0 %v9819_v53  ;;  %8377 = vmatprep.subr.bf16.mxu1 %v10104_v51  ;;  %v10010_v53 = vcombine.high %v5415_v31, %v5423_v24  ;;  %v9710_v51 = vcombine.high %v5113_v35, %v5121_v60  ;;  %v5281_v31 = vld [vmem:[%s10306_s6 + $0x668] sm:$0xff] }
 0x5ca   : > { %8506 = vmatprep.subr.bf16.mxu0 %v9804_v34  ;;  %v5399_v34 = vld [vmem:[%s10306_s6 + $0xa18] sm:$0xff] }
 0x5cb   : > { %v9993_v27 = vcombine.low %v5399_v34, %v5407_v0 }
 0x5cc   : > { %8378 = vmatpush2.bf16.msra.mxu1 %v10103_v4  ;;  %v9709_v4 = vcombine.low %v5113_v35, %v5121_v60 }
 0x5cd   : > { %8507 = vmatpush2.bf16.msra.mxu0 %v9803_v10  ;;  %8379 = vmatprep.subr.bf16.mxu1 %v10088_v8  ;;  %v9994_v10 = vcombine.high %v5399_v34, %v5407_v0  ;;  %v9694_v8 = vcombine.high %v5097_v20, %v5105_v56  ;;  %v5265_v34 = vld [vmem:[%s10306_s6 + $0x5e8] sm:$0xff] }
 0x5ce   : > { %8558 = vmatprep.subr.bf16.mxu0 %v9790_v9  ;;  %v5383_v9 = vld [vmem:[%s10306_s6 + $0x998] sm:$0xff] }
 0x5cf   : > { %v11681_v15 = vpop.f32.mrf.mxu0  ;;  %v9977_v52 = vcombine.low %v5383_v9, %v5391_v47 }
 0x5d0   : > { %8380 = vmatpush2.bf16.msra.mxu1 %v10087_v22  ;;  %8509 = vmatmul.mubr.bf16.vlgmr.msra.gmra.mxu0 %v11443_v44  ;;  %v9693_v22 = vcombine.low %v5097_v20, %v5105_v56 }
 0x5d1   : > { %8559 = vmatpush1.bf16.msra.mxu0 %v9789_v29  ;;  %8590 = vmatprep.mubr.bf16.mxu0 %v11379_v59  ;;  %v11687_v25 = vpop.f32.mrf.mxu0  ;;  %v9978_v29 = vcombine.high %v5383_v9, %v5391_v47  ;;  %v5249_v9 = vld [vmem:[%s10306_s6 + $0x568] sm:$0xff] }
 0x5d2   : > { %8381 = vmatprep.subr.bf16.mxu1 %v10072_v11  ;;  %8560 = vmatprep.subr.bf16.mxu0 %v9774_v14  ;;  %v9678_v11 = vcombine.high %v5081_v5, %v5089_v49  ;;  %v5367_v14 = vld [vmem:[%s10306_s6 + $0x918] sm:$0xff] }
 0x5d3   : > { %v8268_v55 = vpop.f32.mrf.mxu0  ;;  %v9961_v3 = vcombine.low %v5367_v14, %v5375_v39 }
 0x5d4   : > { %8382 = vmatpush2.bf16.msra.mxu1 %v10071_v21  ;;  %v9677_v21 = vcombine.low %v5081_v5, %v5089_v49  ;;  %v5313_v55 = vld [vmem:[%s10306_s6 + $0x768] sm:$0xff] }
 0x5d5   : > { %8561 = vmatpush1.bf16.msra.mxu0 %v9773_v54  ;;  %v8269_v37 = vpop.f32.mrf.mxu0  ;;  %8383 = vmatprep.subr.bf16.mxu1 %v10056_v23  ;;  %v9962_v54 = vcombine.high %v5367_v14, %v5375_v39  ;;  %v9918_v23 = vcombine.high %v5321_v18, %v5329_v12  ;;  %v9901_v30 = vcombine.low %v5305_v58, %v5313_v55  ;;  %v5233_v14 = vld [vmem:[%s10306_s6 + $0x4e8] sm:$0xff] }
 0x5d6   : > { %8562 = vmatprep.subr.bf16.mxu0 %v9758_v17  ;;  %v5351_v17 = vld [vmem:[%s10306_s6 + $0x898] sm:$0xff]  ;;  %v9902_v37 = vcombine.high %v5305_v58, %v5313_v55 }
 0x5d7   : > { %v9945_v50 = vcombine.low %v5351_v17, %v5359_v33 }
 0x5d8   : > { %8384 = vmatpush2.bf16.msra.mxu1 %v10055_v36  ;;  %v9946_v36 = vcombine.high %v5351_v17, %v5359_v33  ;;  %v5217_v17 = vld [vmem:[%s10306_s6 + $0x468] sm:$0xff] }
 0x5d9   : > { %8563 = vmatpush1.bf16.msra.mxu0 %v9757_v41  ;;  %8435 = vmatprep.subr.bf16.mxu1 %v10042_v45  ;;  %v5335_v41 = vld [vmem:[%s10306_s6 + $0x818] sm:$0xff] }
 0x5da   : > { %8564 = vmatprep.subr.bf16.mxu0 %v9742_v61  ;;  %v5343_v45 = vld [vmem:[%s10306_s6 + $0x858] sm:$0xff]  ;;  %v5289_v61 = vld [vmem:[%s10306_s6 + $0x6a8] sm:$0xff] }
 0x5db   : > { %8386 = vmatmul.mubr.bf16.vlgmr.msra.gmra.mxu1 %v11547_v46  ;;  %v9930_v57 = vcombine.high %v5335_v41, %v5343_v45  ;;  %v9929_v24 = vcombine.low %v5335_v41, %v5343_v45  ;;  %v9885_v35 = vcombine.low %v5289_v61, %v5297_v19  ;;  %v5202_v41 = vld [vmem:[%s10306_s6 + $0x3f0] sm:$0xff] }
 0x5dc   : > { %8436 = vmatpush1.bf16.msra.mxu1 %v10041_v42  ;;  %8467 = vmatprep.mubr.bf16.mxu1 %v11545_v40  ;;  %v9886_v42 = vcombine.high %v5289_v61, %v5297_v19 }
 0x5dd   : > { %8565 = vmatpush1.bf16.msra.mxu0 %v9741_v43  ;;  %8437 = vmatprep.subr.bf16.mxu1 %v10026_v62  ;;  %v5575_v43 = vld [vmem:[%s10306_s6 + $0xf98] sm:$0xff] }
 0x5de   : > { %8566 = vmatprep.subr.bf16.mxu0 %v9726_v28  ;;  %v5583_v62 = vld [vmem:[%s10306_s6 + $0xfd8] sm:$0xff]  ;;  %v5273_v28 = vld [vmem:[%s10306_s6 + $0x628] sm:$0xff] }
 0x5df   : > { %v10170_v60 = vcombine.high %v5575_v43, %v5583_v62  ;;  %v10169_v0 = vcombine.low %v5575_v43, %v5583_v62  ;;  %v9869_v20 = vcombine.low %v5273_v28, %v5281_v31  ;;  %v5186_v43 = vld [vmem:[%s10306_s6 + $0x370] sm:$0xff] }
 0x5e0   : > { %8438 = vmatpush1.bf16.msra.mxu1 %v10025_v48  ;;  %v9870_v48 = vcombine.high %v5273_v28, %v5281_v31 }
 0x5e1   : > { %8567 = vmatpush1.bf16.msra.mxu0 %v9725_v32  ;;  %8439 = vmatprep.subr.bf16.mxu1 %v10010_v53  ;;  %v5559_v32 = vld [vmem:[%s10306_s6 + $0xf18] sm:$0xff] }
 0x5e2   : > { %8568 = vmatprep.subr.bf16.mxu0 %v9710_v51  ;;  %v5567_v53 = vld [vmem:[%s10306_s6 + $0xf58] sm:$0xff]  ;;  %v5257_v51 = vld [vmem:[%s10306_s6 + $0x5a8] sm:$0xff] }
 0x5e3   : > { %v10154_v56 = vcombine.high %v5559_v32, %v5567_v53  ;;  %v10153_v47 = vcombine.low %v5559_v32, %v5567_v53  ;;  %v9853_v5 = vcombine.low %v5257_v51, %v5265_v34  ;;  %v5162_v32 = vld [vmem:[%s10306_s6 + $0x2b0] sm:$0xff] }
 0x5e4   : > { %8440 = vmatpush1.bf16.msra.mxu1 %v10009_v26  ;;  %v9854_v26 = vcombine.high %v5257_v51, %v5265_v34  ;;  %v5170_v53 = vld [vmem:[%s10306_s6 + $0x2f0] sm:$0xff] }
 0x5e5   : > { %8569 = vmatpush1.bf16.msra.mxu0 %v9709_v4  ;;  %8441 = vmatprep.subr.bf16.mxu1 %v9994_v10  ;;  %v5543_v4 = vld [vmem:[%s10306_s6 + $0xe98] sm:$0xff] }
 0x5e6   : > { %8570 = vmatprep.subr.bf16.mxu0 %v9694_v8  ;;  %v5551_v10 = vld [vmem:[%s10306_s6 + $0xed8] sm:$0xff]  ;;  %v5241_v8 = vld [vmem:[%s10306_s6 + $0x528] sm:$0xff] }
 0x5e7   : > { %v10138_v49 = vcombine.high %v5543_v4, %v5551_v10  ;;  %v10137_v39 = vcombine.low %v5543_v4, %v5551_v10  ;;  %v9837_v18 = vcombine.low %v5241_v8, %v5249_v9  ;;  %v5456_v4 = vld [vmem:[%s10306_s6 + $0xbe0] sm:$0xff] }
 0x5e8   : > { %8442 = vmatpush1.bf16.msra.mxu1 %v9993_v27  ;;  %v9838_v27 = vcombine.high %v5241_v8, %v5249_v9  ;;  %v5146_v8 = vld [vmem:[%s10306_s6 + $0x230] sm:$0xff] }
 0x5e9   : > { %8571 = vmatpush1.bf16.msra.mxu0 %v9693_v22  ;;  %8443 = vmatprep.subr.bf16.mxu1 %v9978_v29  ;;  %v5527_v22 = vld [vmem:[%s10306_s6 + $0xe18] sm:$0xff]  ;;  %v5154_v9 = vld [vmem:[%s10306_s6 + $0x270] sm:$0xff] }
 0x5ea   : > { %8572 = vmatprep.subr.bf16.mxu0 %v9678_v11  ;;  %v5535_v29 = vld [vmem:[%s10306_s6 + $0xe58] sm:$0xff]  ;;  %v5225_v11 = vld [vmem:[%s10306_s6 + $0x4a8] sm:$0xff] }
 0x5eb   : > { %v10122_v12 = vcombine.high %v5527_v22, %v5535_v29  ;;  %v10121_v33 = vcombine.low %v5527_v22, %v5535_v29  ;;  %v9821_v58 = vcombine.low %v5225_v11, %v5233_v14  ;;  %v9744_v22 = vcombine.high %v5146_v8, %v5154_v9  ;;  %v5432_v29 = vld [vmem:[%s10306_s6 + $0xb20] sm:$0xff] }
 0x5ec   : > { %8444 = vmatpush1.bf16.msra.mxu1 %v9977_v52  ;;  %v9822_v52 = vcombine.high %v5225_v11, %v5233_v14  ;;  %v5440_v11 = vld [vmem:[%s10306_s6 + $0xb60] sm:$0xff]  ;;  %v5130_v14 = vld [vmem:[%s10306_s6 + $0x1b0] sm:$0xff] }
 0x5ed   : > { %8573 = vmatpush1.bf16.msra.mxu0 %v9677_v21  ;;  %8445 = vmatprep.subr.bf16.mxu1 %v9962_v54  ;;  %v5511_v21 = vld [vmem:[%s10306_s6 + $0xd98] sm:$0xff] }
 0x5ee   : > { %8574 = vmatprep.subr.bf16.mxu0 %v9918_v23  ;;  %v5519_v54 = vld [vmem:[%s10306_s6 + $0xdd8] sm:$0xff]  ;;  %v5209_v23 = vld [vmem:[%s10306_s6 + $0x428] sm:$0xff] }
 0x5ef   : > { %v10106_v55 = vcombine.high %v5511_v21, %v5519_v54  ;;  %v10105_v45 = vcombine.low %v5511_v21, %v5519_v54  ;;  %v9805_v61 = vcombine.low %v5209_v23, %v5217_v17  ;;  %v5416_v54 = vld [vmem:[%s10306_s6 + $0xaa0] sm:$0xff] }
 0x5f0   : > { %8446 = vmatpush1.bf16.msra.mxu1 %v9961_v3  ;;  %v9806_v3 = vcombine.high %v5209_v23, %v5217_v17  ;;  %v5424_v23 = vld [vmem:[%s10306_s6 + $0xae0] sm:$0xff] }
 0x5f1   : > { %8575 = vmatpush2.bf16.msra.mxu0 %v9917_v6  ;;  %8447 = vmatprep.subr.bf16.mxu1 %v9946_v36  ;;  %v5495_v6 = vld [vmem:[%s10306_s6 + $0xd18] sm:$0xff] }
 0x5f2   : > { %8576 = vmatprep.subr.bf16.mxu0 %v9902_v37  ;;  %v5503_v36 = vld [vmem:[%s10306_s6 + $0xd58] sm:$0xff]  ;;  %v5194_v37 = vld [vmem:[%s10306_s6 + $0x3b0] sm:$0xff] }
 0x5f3   : > { %v10090_v19 = vcombine.high %v5495_v6, %v5503_v36  ;;  %v10089_v62 = vcombine.low %v5495_v6, %v5503_v36  ;;  %v9791_v28 = vcombine.low %v5194_v37, %v5202_v41  ;;  %v10012_v36 = vcombine.high %v5416_v54, %v5424_v23 }
 0x5f4   : > { %8448 = vmatpush1.bf16.msra.mxu1 %v9945_v50  ;;  %v9792_v50 = vcombine.high %v5194_v37, %v5202_v41 }
 0x5f5   : > { %8577 = vmatpush2.bf16.msra.mxu0 %v9901_v30  ;;  %8449 = vmatprep.subr.bf16.mxu1 %v9930_v57  ;;  %v5479_v30 = vld [vmem:[%s10306_s6 + $0xc98] sm:$0xff] }
 0x5f6   : > { %8578 = vmatprep.subr.bf16.mxu0 %v9886_v42  ;;  %v5487_v57 = vld [vmem:[%s10306_s6 + $0xcd8] sm:$0xff]  ;;  %v5178_v42 = vld [vmem:[%s10306_s6 + $0x330] sm:$0xff] }
 0x5f7   : > { %v10074_v31 = vcombine.high %v5479_v30, %v5487_v57  ;;  %v10073_v51 = vcombine.low %v5479_v30, %v5487_v57  ;;  %v5098_v30 = vld [vmem:[%s10306_s6 + $0xb0] sm:$0xff] }
 0x5f8   : > { %8450 = vmatpush1.bf16.msra.mxu1 %v9929_v24  ;;  %v9776_v24 = vcombine.high %v5178_v42, %v5186_v43  ;;  %v5106_v57 = vld [vmem:[%s10306_s6 + $0xf0] sm:$0xff] }
 0x5f9   : > { %8579 = vmatpush2.bf16.msra.mxu0 %v9885_v35  ;;  %8451 = vmatprep.subr.bf16.mxu1 %v10170_v60  ;;  %v5463_v35 = vld [vmem:[%s10306_s6 + $0xc18] sm:$0xff] }
 0x5fa   : > { %8580 = vmatprep.subr.bf16.mxu0 %v9870_v48  ;;  %v5471_v60 = vld [vmem:[%s10306_s6 + $0xc58] sm:$0xff] }
 0x5fc   : > { %8452 = vmatpush2.bf16.msra.mxu1 %v10169_v0  ;;  %v9775_v0 = vcombine.low %v5178_v42, %v5186_v43 }
 0x5fd   : > { %8581 = vmatpush2.bf16.msra.mxu0 %v9869_v20  ;;  %8453 = vmatprep.subr.bf16.mxu1 %v10154_v56  ;;  %v10058_v20 = vcombine.high %v5463_v35, %v5471_v60  ;;  %v9760_v56 = vcombine.high %v5162_v32, %v5170_v53 }
 0x5fe   : > { %8582 = vmatprep.subr.bf16.mxu0 %v9854_v26  ;;  %v5448_v26 = vld [vmem:[%s10306_s6 + $0xba0] sm:$0xff] }
 0x600   : > { %8454 = vmatpush2.bf16.msra.mxu1 %v10153_v47  ;;  %v10057_v47 = vcombine.low %v5463_v35, %v5471_v60  ;;  %v5082_v35 = vld [vmem:[%s10306_s6 + $0x30] sm:$0xff] }
 0x601   : > { %8583 = vmatpush2.bf16.msra.mxu0 %v9853_v5  ;;  %8455 = vmatprep.subr.bf16.mxu1 %v10138_v49  ;;  %v9759_v49 = vcombine.low %v5162_v32, %v5170_v53  ;;  %v5090_v60 = vld [vmem:[%s10306_s6 + $0x70] sm:$0xff]  ;;  %v9695_v53 = vcombine.low %v5098_v30, %v5106_v57 }
 0x602   : > { %8584 = vmatprep.subr.bf16.mxu0 %v9838_v27  ;;  %v10044_v27 = vcombine.high %v5448_v26, %v5456_v4 }
 0x604   : > { %8456 = vmatpush2.bf16.msra.mxu1 %v10137_v39  ;;  %v5138_v39 = vld [vmem:[%s10306_s6 + $0x1f0] sm:$0xff] }
 0x605   : > { %8585 = vmatpush2.bf16.msra.mxu0 %v9837_v18  ;;  %8457 = vmatprep.subr.bf16.mxu1 %v10122_v12  ;;  %v10043_v18 = vcombine.low %v5448_v26, %v5456_v4  ;;  %v9743_v12 = vcombine.low %v5146_v8, %v5154_v9  ;;  %v9728_v21 = vcombine.high %v5130_v14, %v5138_v39  ;;  %v5322_v26 = vld [vmem:[%s10306_s6 + $0x7b0] sm:$0xff] }
 0x606   : > { %8586 = vmatprep.subr.bf16.mxu0 %v9822_v52  ;;  %v10028_v52 = vcombine.high %v5432_v29, %v5440_v11  ;;  %v9727_v6 = vcombine.low %v5130_v14, %v5138_v39  ;;  %v5330_v4 = vld [vmem:[%s10306_s6 + $0x7f0] sm:$0xff]  ;;  %v9679_v8 = vcombine.low %v5082_v35, %v5090_v60 }
 0x608   : > { %8458 = vmatpush2.bf16.msra.mxu1 %v10121_v33  ;;  %v5114_v33 = vld [vmem:[%s10306_s6 + $0x130] sm:$0xff] }
 0x609   : > { %8587 = vmatpush2.bf16.msra.mxu0 %v9821_v58  ;;  %8459 = vmatprep.subr.bf16.mxu1 %v10106_v55  ;;  %v5122_v58 = vld [vmem:[%s10306_s6 + $0x170] sm:$0xff]  ;;  %v10027_v55 = vcombine.low %v5432_v29, %v5440_v11  ;;  %v9919_v11 = vcombine.low %v5322_v26, %v5330_v4 }
 0x60a   : > { %8588 = vmatprep.subr.bf16.mxu0 %v9806_v3 }
 0x60c   : > { %8460 = vmatpush2.bf16.msra.mxu1 %v10105_v45  ;;  %v9712_v45 = vcombine.high %v5114_v33, %v5122_v58 }
 0x60d   : > { %8589 = vmatpush2.bf16.msra.mxu0 %v9805_v61  ;;  %8461 = vmatprep.subr.bf16.mxu1 %v10090_v19  ;;  %v5400_v61 = vld [vmem:[%s10306_s6 + $0xa20] sm:$0xff] }
 0x60e   : > { %8640 = vmatprep.subr.bf16.mxu0 %v9792_v50  ;;  %v5408_v19 = vld [vmem:[%s10306_s6 + $0xa60] sm:$0xff] }
 0x60f   : > { %v11753_v48 = vpop.f32.mrf.mxu0  ;;  %v9995_v32 = vcombine.low %v5400_v61, %v5408_v19 }
 0x610   : > { %8462 = vmatpush2.bf16.msra.mxu1 %v10089_v62  ;;  %8591 = vmatmul.mubr.bf16.vlgmr.msra.gmra.mxu0 %v11443_v44  ;;  %v9996_v62 = vcombine.high %v5400_v61, %v5408_v19 }
 0x611   : > { %8641 = vmatpush1.bf16.msra.mxu0 %v9791_v28  ;;  %8672 = vmatprep.mubr.bf16.mxu0 %v11379_v59  ;;  %v11759_v34 = vpop.f32.mrf.mxu0  ;;  %v9696_v28 = vcombine.high %v5098_v30, %v5106_v57  ;;  %v5568_v30 = vld [vmem:[%s10306_s6 + $0xf60] sm:$0xff]  ;;  %v5258_v57 = vld [vmem:[%s10306_s6 + $0x5b0] sm:$0xff] }
 0x612   : > { %8463 = vmatprep.subr.bf16.mxu1 %v10074_v31  ;;  %8642 = vmatprep.subr.bf16.mxu0 %v9776_v24  ;;  %v5384_v31 = vld [vmem:[%s10306_s6 + $0x9a0] sm:$0xff] }
 0x613   : > { %v8350_v10 = vpop.f32.mrf.mxu0  ;;  %v5392_v24 = vld [vmem:[%s10306_s6 + $0x9e0] sm:$0xff] }
 0x614   : > { %8464 = vmatpush2.bf16.msra.mxu1 %v10073_v51  ;;  %v9980_v51 = vcombine.high %v5384_v31, %v5392_v24  ;;  %v9979_v10 = vcombine.low %v5384_v31, %v5392_v24  ;;  %v5544_v31 = vld [vmem:[%s10306_s6 + $0xea0] sm:$0xff] }
 0x615   : > { %8643 = vmatpush1.bf16.msra.mxu0 %v9775_v0  ;;  %v8351_v5 = vpop.f32.mrf.mxu0  ;;  %8465 = vmatprep.subr.bf16.mxu1 %v10058_v20  ;;  %v9680_v0 = vcombine.high %v5082_v35, %v5090_v60  ;;  %v5368_v20 = vld [vmem:[%s10306_s6 + $0x920] sm:$0xff]  ;;  %v5242_v35 = vld [vmem:[%s10306_s6 + $0x530] sm:$0xff] }
 0x616   : > { %8644 = vmatprep.subr.bf16.mxu0 %v9760_v56  ;;  %v5376_v56 = vld [vmem:[%s10306_s6 + $0x960] sm:$0xff]  ;;  %v5250_v60 = vld [vmem:[%s10306_s6 + $0x570] sm:$0xff] }
 0x617   : > { %v9964_v9 = vcombine.high %v5368_v20, %v5376_v56  ;;  %v5352_v5 = vld [vmem:[%s10306_s6 + $0x8a0] sm:$0xff]  ;;  %v9963_v29 = vcombine.low %v5368_v20, %v5376_v56 }
 0x618   : > { %8466 = vmatpush2.bf16.msra.mxu1 %v10057_v47  ;;  %v9920_v47 = vcombine.high %v5322_v26, %v5330_v4  ;;  %v5552_v24 = vld [vmem:[%s10306_s6 + $0xee0] sm:$0xff]  ;;  %v5226_v26 = vld [vmem:[%s10306_s6 + $0x4b0] sm:$0xff] }
 0x619   : > { %8645 = vmatpush1.bf16.msra.mxu0 %v9759_v49  ;;  %8517 = vmatprep.subr.bf16.mxu1 %v10044_v27  ;;  %v5360_v49 = vld [vmem:[%s10306_s6 + $0x8e0] sm:$0xff]  ;;  %v5306_v27 = vld [vmem:[%s10306_s6 + $0x730] sm:$0xff] }
 0x61a   : > { %8646 = vmatprep.subr.bf16.mxu0 %v9744_v22  ;;  %v5314_v22 = vld [vmem:[%s10306_s6 + $0x770] sm:$0xff]  ;;  %v9948_v14 = vcombine.high %v5352_v5, %v5360_v49  ;;  %v5528_v20 = vld [vmem:[%s10306_s6 + $0xe20] sm:$0xff] }
 0x61b   : > { %8468 = vmatmul.mubr.bf16.vlgmr.msra.gmra.mxu1 %v11547_v46  ;;  %v8223_v17 = vpop.f32.mrf.mxu1  ;;  %v9904_v39 = vcombine.high %v5306_v27, %v5314_v22  ;;  %v5536_v56 = vld [vmem:[%s10306_s6 + $0xe60] sm:$0xff]  ;;  %v5234_v4 = vld [vmem:[%s10306_s6 + $0x4f0] sm:$0xff] }
 0x61c   : > { %8518 = vmatpush1.bf16.msra.mxu1 %v10043_v18  ;;  %8549 = vmatprep.mubr.bf16.mxu1 %v11545_v40  ;;  %v11776_v37 = vadd.f32 %v8223_v17, %v11609_v38  ;;  %v10011_v38 = vcombine.low %v5416_v54, %v5424_v23  ;;  %v5336_v18 = vld [vmem:[%s10306_s6 + $0x820] sm:$0xff]  ;;  %v9947_v54 = vcombine.low %v5352_v5, %v5360_v49 }
 0x61d   : > { %8647 = vmatpush1.bf16.msra.mxu0 %v9743_v12  ;;  %v8225_v3 = vpop.f32.mrf.mxu1  ;;  %8519 = vmatprep.subr.bf16.mxu1 %v10028_v52  ;;  %v5344_v12 = vld [vmem:[%s10306_s6 + $0x860] sm:$0xff]  ;;  %v5290_v52 = vld [vmem:[%s10306_s6 + $0x6b0] sm:$0xff]  ;;  %v9903_v23 = vcombine.low %v5306_v27, %v5314_v22 }
 0x61e   : > { %v11779_v41 = vadd.f32 %v8225_v3, %v11615_v63  ;;  %8648 = vmatprep.subr.bf16.mxu0 %v9728_v21  ;;  %v9711_v63 = vcombine.low %v5114_v33, %v5122_v58  ;;  %v5298_v21 = vld [vmem:[%s10306_s6 + $0x6f0] sm:$0xff]  ;;  %v9932_v17 = vcombine.high %v5336_v18, %v5344_v12  ;;  %v5576_v58 = vld [vmem:[%s10306_s6 + $0xfa0] sm:$0xff] }
 0x61f   : > { %v8227_v50 = vpop.f32.mrf.mxu1  ;;  %v9888_v33 = vcombine.high %v5290_v52, %v5298_v21  ;;  %v5274_v3 = vld [vmem:[%s10306_s6 + $0x630] sm:$0xff]  ;;  %v5512_v5 = vld [vmem:[%s10306_s6 + $0xda0] sm:$0xff] }
 0x620   : > { %v8820_v42 = vcombine.low %v11776_v37, %v11779_v41  ;;  %8520 = vmatpush1.bf16.msra.mxu1 %v10027_v55  ;;  %v5584_v55 = vld [vmem:[%s10306_s6 + $0xfe0] sm:$0xff]  ;;  %v5210_v27 = vld [vmem:[%s10306_s6 + $0x430] sm:$0xff] }
 0x621   : > { %8649 = vmatpush1.bf16.msra.mxu0 %v9727_v6  ;;  %v8228_v43 = vpop.f32.mrf.mxu1  ;;  %8521 = vmatprep.subr.bf16.mxu1 %v10012_v36  ;;  %v5282_v6 = vld [vmem:[%s10306_s6 + $0x670] sm:$0xff]  ;;  %v9931_v36 = vcombine.low %v5336_v18, %v5344_v12  ;;  %v10172_v61 = vcombine.high %v5576_v58, %v5584_v55  ;;  %v5560_v50 = vld [vmem:[%s10306_s6 + $0xf20] sm:$0xff] }
 0x622   : > { %8650 = vmatprep.subr.bf16.mxu0 %v9712_v45  ;;  %v9887_v45 = vcombine.low %v5290_v52, %v5298_v21  ;;  %v9872_v19 = vcombine.high %v5274_v3, %v5282_v6  ;;  %v10171_v43 = vcombine.low %v5576_v58, %v5584_v55  ;;  %v5520_v49 = vld [vmem:[%s10306_s6 + $0xde0] sm:$0xff]  ;;  %v5218_v22 = vld [vmem:[%s10306_s6 + $0x470] sm:$0xff]  ;;  %v5195_v52 = vld [vmem:[%s10306_s6 + $0x3b8] sm:$0xff] }
 0x623   : > { %v5496_v18 = vld [vmem:[%s10306_s6 + $0xd20] sm:$0xff]  ;;  %v5203_v21 = vld [vmem:[%s10306_s6 + $0x3f8] sm:$0xff] }
 0x624   : > { %8522 = vmatpush1.bf16.msra.mxu1 %v10011_v38  ;;  %v5266_v38 = vld [vmem:[%s10306_s6 + $0x5f0] sm:$0xff]  ;;  %v5504_v12 = vld [vmem:[%s10306_s6 + $0xd60] sm:$0xff] }
 0x625   : > { %8651 = vmatpush1.bf16.msra.mxu0 %v9711_v63  ;;  %8523 = vmatprep.subr.bf16.mxu1 %v9996_v62  ;;  %v9871_v63 = vcombine.low %v5274_v3, %v5282_v6  ;;  %v10156_v62 = vcombine.high %v5560_v50, %v5568_v30  ;;  %v5480_v58 = vld [vmem:[%s10306_s6 + $0xca0] sm:$0xff]  ;;  %v5179_v3 = vld [vmem:[%s10306_s6 + $0x338] sm:$0xff] }
 0x626   : > { %8652 = vmatprep.subr.bf16.mxu0 %v9696_v28  ;;  %v9856_v28 = vcombine.high %v5258_v57, %v5266_v38  ;;  %v5488_v55 = vld [vmem:[%s10306_s6 + $0xce0] sm:$0xff]  ;;  %v5187_v6 = vld [vmem:[%s10306_s6 + $0x378] sm:$0xff] }
 0x628   : > { %8524 = vmatpush1.bf16.msra.mxu1 %v9995_v32  ;;  %v10155_v32 = vcombine.low %v5560_v50, %v5568_v30  ;;  %v5464_v50 = vld [vmem:[%s10306_s6 + $0xc20] sm:$0xff] }
 0x629   : > { %8653 = vmatpush1.bf16.msra.mxu0 %v9695_v53  ;;  %8525 = vmatprep.subr.bf16.mxu1 %v9980_v51  ;;  %v9855_v53 = vcombine.low %v5258_v57, %v5266_v38  ;;  %v10140_v51 = vcombine.high %v5544_v31, %v5552_v24  ;;  %v5472_v30 = vld [vmem:[%s10306_s6 + $0xc60] sm:$0xff]  ;;  %v5163_v57 = vld [vmem:[%s10306_s6 + $0x2b8] sm:$0xff] }
 0x62a   : > { %8654 = vmatprep.subr.bf16.mxu0 %v9680_v0  ;;  %v9840_v0 = vcombine.high %v5242_v35, %v5250_v60  ;;  %v5171_v38 = vld [vmem:[%s10306_s6 + $0x2f8] sm:$0xff] }
 0x62c   : > { %8526 = vmatpush1.bf16.msra.mxu1 %v9979_v10  ;;  %v10139_v10 = vcombine.low %v5544_v31, %v5552_v24  ;;  %v9762_v24 = vcombine.high %v5163_v57, %v5171_v38 }
 0x62d   : > { %8655 = vmatpush1.bf16.msra.mxu0 %v9679_v8  ;;  %8527 = vmatprep.subr.bf16.mxu1 %v9964_v9  ;;  %v9839_v8 = vcombine.low %v5242_v35, %v5250_v60  ;;  %v10124_v9 = vcombine.high %v5528_v20, %v5536_v56  ;;  %v5449_v35 = vld [vmem:[%s10306_s6 + $0xba8] sm:$0xff] }
 0x62e   : > { %8656 = vmatprep.subr.bf16.mxu0 %v9920_v47  ;;  %v9824_v47 = vcombine.high %v5226_v26, %v5234_v4  ;;  %v5457_v60 = vld [vmem:[%s10306_s6 + $0xbe8] sm:$0xff] }
 0x630   : > { %8528 = vmatpush1.bf16.msra.mxu1 %v9963_v29  ;;  %v10123_v29 = vcombine.low %v5528_v20, %v5536_v56  ;;  %v10046_v20 = vcombine.high %v5449_v35, %v5457_v60  ;;  %v10249_v56 = vmov 1983009808  }
 0x631   : > { %8657 = vmatpush2.bf16.msra.mxu0 %v9919_v11  ;;  %8529 = vmatprep.subr.bf16.mxu1 %v9948_v14  ;;  %v9823_v11 = vcombine.low %v5226_v26, %v5234_v4  ;;  %v10108_v14 = vcombine.high %v5512_v5, %v5520_v49  ;;  %v8823_v26 = vunpack.c.l.s4 %v10249_v56  ;;  %v5323_v56 = vld [vmem:[%s10306_s6 + $0x7b8] sm:$0xff] }
 0x632   : > { %8658 = vmatprep.subr.bf16.mxu0 %v9904_v39  ;;  %v9808_v39 = vcombine.high %v5210_v27, %v5218_v22 }
 0x634   : > { %8530 = vmatpush1.bf16.msra.mxu1 %v9947_v54  ;;  %v10107_v54 = vcombine.low %v5512_v5, %v5520_v49  ;;  %v5139_v5 = vld [vmem:[%s10306_s6 + $0x1f8] sm:$0xff]  ;;  %v10045_v49 = vcombine.low %v5449_v35, %v5457_v60  ;;  %v5068_v35 = vld [vmem:[#allocation3] sm:$0xff] }
 0x635   : > { %8659 = vmatpush2.bf16.msra.mxu0 %v9903_v23  ;;  %8531 = vmatprep.subr.bf16.mxu1 %v9932_v17  ;;  %v9807_v23 = vcombine.low %v5210_v27, %v5218_v22  ;;  %v10092_v17 = vcombine.high %v5496_v18, %v5504_v12  ;;  %v5083_v60 = vld [vmem:[%s10306_s6 + $0x38] sm:$0xff] }
 0x636   : > { %8660 = vmatprep.subr.bf16.mxu0 %v9888_v33  ;;  %v9794_v33 = vcombine.high %v5195_v52, %v5203_v21 }
 0x638   : > { %8532 = vmatpush1.bf16.msra.mxu1 %v9931_v36  ;;  %v10091_v36 = vcombine.low %v5496_v18, %v5504_v12  ;;  %v5115_v12 = vld [vmem:[%s10306_s6 + $0x138] sm:$0xff] }
 0x639   : > { %8661 = vmatpush2.bf16.msra.mxu0 %v9887_v45  ;;  %8533 = vmatprep.subr.bf16.mxu1 %v10172_v61  ;;  %v9793_v45 = vcombine.low %v5195_v52, %v5203_v21  ;;  %v10076_v61 = vcombine.high %v5480_v58, %v5488_v55  ;;  %v5123_v52 = vld [vmem:[%s10306_s6 + $0x178] sm:$0xff] }
 0x63a   : > { %8662 = vmatprep.subr.bf16.mxu0 %v9872_v19  ;;  %v9778_v19 = vcombine.high %v5179_v3, %v5187_v6 }
 0x63c   : > { %8534 = vmatpush2.bf16.msra.mxu1 %v10171_v43 }
 0x63d   : > { %8663 = vmatpush2.bf16.msra.mxu0 %v9871_v63  ;;  %8535 = vmatprep.subr.bf16.mxu1 %v10156_v62  ;;  %v10075_v63 = vcombine.low %v5480_v58, %v5488_v55  ;;  %v9777_v62 = vcombine.low %v5179_v3, %v5187_v6  ;;  %v9714_v3 = vcombine.high %v5115_v12, %v5123_v52  ;;  %v5401_v6 = vld [vmem:[%s10306_s6 + $0xa28] sm:$0xff] }
 0x63e   : > { %8664 = vmatprep.subr.bf16.mxu0 %v9856_v28  ;;  %v10060_v28 = vcombine.high %v5464_v50, %v5472_v30 }
 0x640   : > { %8536 = vmatpush2.bf16.msra.mxu1 %v10155_v32  ;;  %v5147_v32 = vld [vmem:[%s10306_s6 + $0x238] sm:$0xff] }
 0x641   : > { %8665 = vmatpush2.bf16.msra.mxu0 %v9855_v53  ;;  %8537 = vmatprep.subr.bf16.mxu1 %v10140_v51  ;;  %v5155_v53 = vld [vmem:[%s10306_s6 + $0x278] sm:$0xff] }
 0x642   : > { %8666 = vmatprep.subr.bf16.mxu0 %v9840_v0  ;;  %v10059_v0 = vcombine.low %v5464_v50, %v5472_v30  ;;  %v9745_v27 = vcombine.low %v5147_v32, %v5155_v53 }
 0x644   : > { %8538 = vmatpush2.bf16.msra.mxu1 %v10139_v10  ;;  %v9746_v10 = vcombine.high %v5147_v32, %v5155_v53  ;;  %v5091_v32 = vld [vmem:[%s10306_s6 + $0x78] sm:$0xff] }
 0x645   : > { %8667 = vmatpush2.bf16.msra.mxu0 %v9839_v8  ;;  %8539 = vmatprep.subr.bf16.mxu1 %v10124_v9  ;;  %v5433_v8 = vld [vmem:[%s10306_s6 + $0xb28] sm:$0xff] }
 0x646   : > { %8668 = vmatprep.subr.bf16.mxu0 %v9824_v47  ;;  %v5441_v9 = vld [vmem:[%s10306_s6 + $0xb68] sm:$0xff]  ;;  %v5131_v47 = vld [vmem:[%s10306_s6 + $0x1b8] sm:$0xff] }
 0x647   : > { %v10030_v22 = vcombine.high %v5433_v8, %v5441_v9  ;;  %v10029_v21 = vcombine.low %v5433_v8, %v5441_v9 }
 0x648   : > { %8540 = vmatpush2.bf16.msra.mxu1 %v10123_v29  ;;  %v8824_v29 = vunpack.c.0.s8 %v8823_v26  ;;  %v5331_v26 = vld [vmem:[%s10306_s6 + $0x7f8] sm:$0xff] }
 0x649   : > { %8669 = vmatpush2.bf16.msra.mxu0 %v9823_v11  ;;  %8541 = vmatprep.subr.bf16.mxu1 %v10108_v14  ;;  %v9730_v11 = vcombine.high %v5131_v47, %v5139_v5  ;;  %v5417_v14 = vld [vmem:[%s10306_s6 + $0xaa8] sm:$0xff]  ;;  %v9922_v9 = vcombine.high %v5323_v56, %v5331_v26 }
 0x64a   : > { %8670 = vmatprep.subr.bf16.mxu0 %v9808_v39  ;;  %v5425_v39 = vld [vmem:[%s10306_s6 + $0xae8] sm:$0xff] }
 0x64b   : > { %v10013_v30 = vcombine.low %v5417_v14, %v5425_v39 }
 0x64c   : > { %8542 = vmatpush2.bf16.msra.mxu1 %v10107_v54 }
 0x64d   : > { %8671 = vmatpush2.bf16.msra.mxu0 %v9807_v23  ;;  %8543 = vmatprep.subr.bf16.mxu1 %v10092_v17  ;;  %v9729_v23 = vcombine.low %v5131_v47, %v5139_v5  ;;  %v10014_v17 = vcombine.high %v5417_v14, %v5425_v39  ;;  %v5353_v47 = vld [vmem:[%s10306_s6 + $0x8a8] sm:$0xff] }
 0x64e   : > { %8722 = vmatprep.subr.bf16.mxu0 %v9794_v33  ;;  %v11856_v33 = vsub.s32 %v8824_v29, %v10699_v16  ;;  %v5361_v5 = vld [vmem:[%s10306_s6 + $0x8e8] sm:$0xff]  ;;  %v9921_v29 = vcombine.low %v5323_v56, %v5331_v26 }
 0x64f   : > { %v5337_v39 = vld [vmem:[%s10306_s6 + $0x828] sm:$0xff] }
 0x650   : > { %v11835_v43 = vpop.f32.mrf.mxu0  ;;  %8544 = vmatpush2.bf16.msra.mxu1 %v10091_v36  ;;  %8673 = vmatmul.mubr.bf16.vlgmr.msra.gmra.mxu0 %v11443_v44  ;;  %v5409_v36 = vld [vmem:[%s10306_s6 + $0xa68] sm:$0xff] }
 0x651   : > { %8723 = vmatpush1.bf16.msra.mxu0 %v9793_v45  ;;  %8754 = vmatprep.mubr.bf16.mxu0 %v11379_v59  ;;  %v9761_v59 = vcombine.low %v5163_v57, %v5171_v38  ;;  %v9998_v38 = vcombine.high %v5401_v6, %v5409_v36 }
 0x652   : > { %v11839_v31 = vpop.f32.mrf.mxu0  ;;  %8545 = vmatprep.subr.bf16.mxu1 %v10076_v61  ;;  %8724 = vmatprep.subr.bf16.mxu0 %v9778_v19  ;;  %v5099_v61 = vld [vmem:[%s10306_s6 + $0xb8] sm:$0xff] }
 0x653   : > { %v5107_v19 = vld [vmem:[%s10306_s6 + $0xf8] sm:$0xff] }
 0x654   : > { %v8432_v51 = vpop.f32.mrf.mxu0  ;;  %8546 = vmatpush2.bf16.msra.mxu1 %v10075_v63  ;;  %v9697_v37 = vcombine.low %v5099_v61, %v5107_v19 }
 0x655   : > { %8725 = vmatpush1.bf16.msra.mxu0 %v9777_v62  ;;  %8547 = vmatprep.subr.bf16.mxu1 %v10060_v28  ;;  %v9698_v62 = vcombine.high %v5099_v61, %v5107_v19  ;;  %v5385_v28 = vld [vmem:[%s10306_s6 + $0x9a8] sm:$0xff]  ;;  %v9997_v51 = vcombine.low %v5401_v6, %v5409_v36  ;;  %v5283_v6 = vld [vmem:[%s10306_s6 + $0x678] sm:$0xff] }
 0x656   : > { %v8433_v4 = vpop.f32.mrf.mxu0  ;;  %8726 = vmatprep.subr.bf16.mxu0 %v9762_v24  ;;  %v5393_v24 = vld [vmem:[%s10306_s6 + $0x9e8] sm:$0xff] }
 0x657   : > { %v9982_v41 = vcombine.high %v5385_v28, %v5393_v24  ;;  %v9981_v4 = vcombine.low %v5385_v28, %v5393_v24  ;;  %v5545_v28 = vld [vmem:[%s10306_s6 + $0xea8] sm:$0xff] }
 0x658   : > { %8548 = vmatpush2.bf16.msra.mxu1 %v10059_v0  ;;  %v9682_v0 = vcombine.high %v5083_v60, %v5091_v32  ;;  %v5553_v24 = vld [vmem:[%s10306_s6 + $0xee8] sm:$0xff] }
 0x659   : > { %8727 = vmatpush1.bf16.msra.mxu0 %v9761_v59  ;;  %8599 = vmatprep.subr.bf16.mxu1 %v10046_v20  ;;  %v5369_v59 = vld [vmem:[%s10306_s6 + $0x928] sm:$0xff] }
 0x65a   : > { %8728 = vmatprep.subr.bf16.mxu0 %v9746_v10  ;;  %v5377_v20 = vld [vmem:[%s10306_s6 + $0x968] sm:$0xff]  ;;  %v9681_v10 = vcombine.low %v5083_v60, %v5091_v32  ;;  %v5251_v60 = vld [vmem:[%s10306_s6 + $0x578] sm:$0xff] }
 0x65b   : > { %v8305_v18 = vpop.f32.mrf.mxu1  ;;  %8550 = vmatmul.mubr.bf16.vlgmr.msra.gmra.mxu1 %v11547_v46  ;;  %v9966_v8 = vcombine.high %v5369_v59, %v5377_v20 }
 0x65c   : > { %8600 = vmatpush1.bf16.msra.mxu1 %v10045_v49  ;;  %8631 = vmatprep.mubr.bf16.mxu1 %v11545_v40  ;;  %v8306_v58 = vadd.f32 %v8305_v18, %v11681_v15  ;;  %v9713_v15 = vcombine.low %v5115_v12, %v5123_v52  ;;  %v5307_v49 = vld [vmem:[%s10306_s6 + $0x738] sm:$0xff]  ;;  %v5345_v18 = vld [vmem:[%s10306_s6 + $0x868] sm:$0xff] }
 0x65d   : > { %v8307_v54 = vpop.f32.mrf.mxu1  ;;  %8729 = vmatpush1.bf16.msra.mxu0 %v9745_v27  ;;  %8601 = vmatprep.subr.bf16.mxu1 %v10030_v22  ;;  %v5315_v27 = vld [vmem:[%s10306_s6 + $0x778] sm:$0xff]  ;;  %v9965_v22 = vcombine.low %v5369_v59, %v5377_v20  ;;  %v9933_v36 = vcombine.low %v5337_v39, %v5345_v18  ;;  %v10141_v20 = vcombine.low %v5545_v28, %v5553_v24 }
 0x65e   : > { %v8308_v55 = vadd.f32 %v8307_v54, %v11687_v25  ;;  %8730 = vmatprep.subr.bf16.mxu0 %v9730_v11  ;;  %v8828_v25 = vrot.slane %v8820_v42, %v11856_v33  ;;  %v9950_v11 = vcombine.high %v5353_v47, %v5361_v5  ;;  %v9906_v14 = vcombine.high %v5307_v49, %v5315_v27  ;;  %v5291_v12 = vld [vmem:[%s10306_s6 + $0x6b8] sm:$0xff] }
 0x65f   : > { %v8309_v45 = vpop.f32.mrf.mxu1  ;;  %v5299_v52 = vld [vmem:[%s10306_s6 + $0x6f8] sm:$0xff]  ;;  %v9905_v54 = vcombine.low %v5307_v49, %v5315_v27 }
 0x660   : > { %v8821_v50 = vcombine.low %v8306_v58, %v8308_v55  ;;  %8602 = vmatpush1.bf16.msra.mxu1 %v10029_v21  ;;  %v9949_v21 = vcombine.low %v5353_v47, %v5361_v5  ;;  %v5577_v58 = vld [vmem:[%s10306_s6 + $0xfa8] sm:$0xff]  ;;  %v9889_v45 = vcombine.low %v5291_v12, %v5299_v52  ;;  %v5235_v59 = vld [vmem:[%s10306_s6 + $0x4f8] sm:$0xff] }
 0x661   : > { %v8310_v57 = vpop.f32.mrf.mxu1  ;;  %8731 = vmatpush1.bf16.msra.mxu0 %v9729_v23  ;;  %8603 = vmatprep.subr.bf16.mxu1 %v10014_v17  ;;  %v9934_v23 = vcombine.high %v5337_v39, %v5345_v18  ;;  %v9890_v17 = vcombine.high %v5291_v12, %v5299_v52  ;;  %v5585_v55 = vld [vmem:[%s10306_s6 + $0xfe8] sm:$0xff]  ;;  %v5219_v47 = vld [vmem:[%s10306_s6 + $0x478] sm:$0xff] }
 0x662   : > { %v8835_v63 = vrot.slane %v8821_v50, %v11856_v33  ;;  %8732 = vmatprep.subr.bf16.mxu0 %v9714_v3  ;;  %v5275_v3 = vld [vmem:[%s10306_s6 + $0x638] sm:$0xff]  ;;  %v10174_v61 = vcombine.high %v5577_v58, %v5585_v55  ;;  %v5561_v50 = vld [vmem:[%s10306_s6 + $0xf28] sm:$0xff] }
 0x663   : > { %v9874_v19 = vcombine.high %v5275_v3, %v5283_v6  ;;  %v5259_v57 = vld [vmem:[%s10306_s6 + $0x5b8] sm:$0xff]  ;;  %v5481_v12 = vld [vmem:[%s10306_s6 + $0xca8] sm:$0xff] }
 0x664   : > { %v8836_v53 = vcombine.low %v8828_v25, %v8835_v63  ;;  %8604 = vmatpush1.bf16.msra.mxu1 %v10013_v30  ;;  %v5569_v30 = vld [vmem:[%s10306_s6 + $0xf68] sm:$0xff]  ;;  %v9873_v25 = vcombine.low %v5275_v3, %v5283_v6 }
 0x665   : > { %8733 = vmatpush1.bf16.msra.mxu0 %v9713_v15  ;;  %8605 = vmatprep.subr.bf16.mxu1 %v9998_v38  ;;  %v5267_v15 = vld [vmem:[%s10306_s6 + $0x5f8] sm:$0xff]  ;;  %v10173_v38 = vcombine.low %v5577_v58, %v5585_v55  ;;  %v10158_v63 = vcombine.high %v5561_v50, %v5569_v30  ;;  %v10157_v32 = vcombine.low %v5561_v50, %v5569_v30  ;;  %v5489_v52 = vld [vmem:[%s10306_s6 + $0xce8] sm:$0xff] }
 0x666   : > { %v8892_v42 = vadd.f32 %v8836_v53, %v5068_v35  ;;  %8734 = vmatprep.subr.bf16.mxu0 %v9698_v62  ;;  %v9858_v62 = vcombine.high %v5259_v57, %v5267_v15  ;;  %v5243_v35 = vld [vmem:[%s10306_s6 + $0x538] sm:$0xff]  ;;  %v9857_v53 = vcombine.low %v5259_v57, %v5267_v15  ;;  %v10077_v55 = vcombine.low %v5481_v12, %v5489_v52  ;;  %v5434_v57 = vld [vmem:[%s10306_s6 + $0xb30] sm:$0xff] }
 0x667   : > { %v9841_v56 = vcombine.low %v5243_v35, %v5251_v60  ;;  %v5442_v15 = vld [vmem:[%s10306_s6 + $0xb70] sm:$0xff] }
 0x668   : > { %8896 = vst [vmem:[#allocation3] sm:$0xff] %v8892_v42  ;;  %8606 = vmatpush1.bf16.msra.mxu1 %v9997_v51  ;;  %v10142_v51 = vcombine.high %v5545_v28, %v5553_v24  ;;  %v5537_v42 = vld [vmem:[%s10306_s6 + $0xe68] sm:$0xff]  ;;  %v10031_v28 = vcombine.low %v5434_v57, %v5442_v15 }
 0x669   : > { %8735 = vmatpush1.bf16.msra.mxu0 %v9697_v37  ;;  %8607 = vmatprep.subr.bf16.mxu1 %v9982_v41  ;;  %v9842_v37 = vcombine.high %v5243_v35, %v5251_v60  ;;  %v5529_v41 = vld [vmem:[%s10306_s6 + $0xe28] sm:$0xff] }
 0x66a   : > { %8736 = vmatprep.subr.bf16.mxu0 %v9682_v0  ;;  %v5227_v0 = vld [vmem:[%s10306_s6 + $0x4b8] sm:$0xff]  ;;  %v10126_v26 = vcombine.high %v5529_v41, %v5537_v42  ;;  %v10125_v5 = vcombine.low %v5529_v41, %v5537_v42 }
 0x66b   : > { %v9825_v49 = vcombine.low %v5227_v0, %v5235_v59 }
 0x66c   : > { %8608 = vmatpush1.bf16.msra.mxu1 %v9981_v4  ;;  %v9826_v4 = vcombine.high %v5227_v0, %v5235_v59 }
 0x66d   : > { %8737 = vmatpush1.bf16.msra.mxu0 %v9681_v10  ;;  %8609 = vmatprep.subr.bf16.mxu1 %v9966_v8  ;;  %v5513_v10 = vld [vmem:[%s10306_s6 + $0xda8] sm:$0xff] }
 0x66e   : > { %8738 = vmatprep.subr.bf16.mxu0 %v9922_v9  ;;  %v5521_v8 = vld [vmem:[%s10306_s6 + $0xde8] sm:$0xff]  ;;  %v5211_v9 = vld [vmem:[%s10306_s6 + $0x438] sm:$0xff] }
 0x66f   : > { %v10110_v27 = vcombine.high %v5513_v10, %v5521_v8  ;;  %v9809_v39 = vcombine.low %v5211_v9, %v5219_v47 }
 0x670   : > { %8610 = vmatpush1.bf16.msra.mxu1 %v9965_v22  ;;  %v9810_v22 = vcombine.high %v5211_v9, %v5219_v47  ;;  %v5354_v9 = vld [vmem:[%s10306_s6 + $0x8b0] sm:$0xff] }
 0x671   : > { %8739 = vmatpush2.bf16.msra.mxu0 %v9921_v29  ;;  %8611 = vmatprep.subr.bf16.mxu1 %v9950_v11  ;;  %v5497_v29 = vld [vmem:[%s10306_s6 + $0xd28] sm:$0xff]  ;;  %v5362_v47 = vld [vmem:[%s10306_s6 + $0x8f0] sm:$0xff] }
 0x672   : > { %8740 = vmatprep.subr.bf16.mxu0 %v9906_v14  ;;  %v5505_v11 = vld [vmem:[%s10306_s6 + $0xd68] sm:$0xff]  ;;  %v10109_v14 = vcombine.low %v5513_v10, %v5521_v8 }
 0x673   : > { %v10094_v18 = vcombine.high %v5497_v29, %v5505_v11 }
 0x674   : > { %8612 = vmatpush1.bf16.msra.mxu1 %v9949_v21  ;;  %v10093_v21 = vcombine.low %v5497_v29, %v5505_v11  ;;  %v9951_v29 = vcombine.low %v5354_v9, %v5362_v47 }
 0x675   : > { %8741 = vmatpush2.bf16.msra.mxu0 %v9905_v54  ;;  %8613 = vmatprep.subr.bf16.mxu1 %v9934_v23  ;;  %v10078_v54 = vcombine.high %v5481_v12, %v5489_v52  ;;  %v5465_v23 = vld [vmem:[%s10306_s6 + $0xc28] sm:$0xff]  ;;  %v5562_v52 = vld [vmem:[%s10306_s6 + $0xf30] sm:$0xff] }
 0x676   : > { %8742 = vmatprep.subr.bf16.mxu0 %v9890_v17  ;;  %v5473_v17 = vld [vmem:[%s10306_s6 + $0xc68] sm:$0xff] }
 0x677   : > { %v10062_v3 = vcombine.high %v5465_v23, %v5473_v17 }
 0x678   : > { %8614 = vmatpush1.bf16.msra.mxu1 %v9933_v36  ;;  %v5450_v36 = vld [vmem:[%s10306_s6 + $0xbb0] sm:$0xff] }
 0x679   : > { %8743 = vmatpush2.bf16.msra.mxu0 %v9889_v45  ;;  %8615 = vmatprep.subr.bf16.mxu1 %v10174_v61  ;;  %v5458_v45 = vld [vmem:[%s10306_s6 + $0xbf0] sm:$0xff] }
 0x67a   : > { %8744 = vmatprep.subr.bf16.mxu0 %v9874_v19  ;;  %v10061_v19 = vcombine.low %v5465_v23, %v5473_v17  ;;  %v10048_v50 = vcombine.high %v5450_v36, %v5458_v45  ;;  %v5546_v17 = vld [vmem:[%s10306_s6 + $0xeb0] sm:$0xff] }
 0x67c   : > { %8616 = vmatpush2.bf16.msra.mxu1 %v10173_v38  ;;  %v10032_v38 = vcombine.high %v5434_v57, %v5442_v15  ;;  %v5522_v57 = vld [vmem:[%s10306_s6 + $0xdf0] sm:$0xff] }
 0x67d   : > { %8745 = vmatpush2.bf16.msra.mxu0 %v9873_v25  ;;  %8617 = vmatprep.subr.bf16.mxu1 %v10158_v63  ;;  %v5418_v25 = vld [vmem:[%s10306_s6 + $0xab0] sm:$0xff] }
 0x67e   : > { %8746 = vmatprep.subr.bf16.mxu0 %v9858_v62  ;;  %v5426_v63 = vld [vmem:[%s10306_s6 + $0xaf0] sm:$0xff] }
 0x67f   : > { %v10016_v35 = vcombine.high %v5418_v25, %v5426_v63  ;;  %v10015_v42 = vcombine.low %v5418_v25, %v5426_v63  ;;  %v5506_v25 = vld [vmem:[%s10306_s6 + $0xd70] sm:$0xff] }
 0x680   : > { %8618 = vmatpush2.bf16.msra.mxu1 %v10157_v32 }
 0x681   : > { %8747 = vmatpush2.bf16.msra.mxu0 %v9857_v53  ;;  %8619 = vmatprep.subr.bf16.mxu1 %v10142_v51  ;;  %v5402_v53 = vld [vmem:[%s10306_s6 + $0xa30] sm:$0xff] }
 0x682   : > { %8748 = vmatprep.subr.bf16.mxu0 %v9842_v37  ;;  %v5410_v51 = vld [vmem:[%s10306_s6 + $0xa70] sm:$0xff] }
 0x683   : > { %v10000_v59 = vcombine.high %v5402_v53, %v5410_v51 }
 0x684   : > { %8620 = vmatpush2.bf16.msra.mxu1 %v10141_v20  ;;  %v5394_v20 = vld [vmem:[%s10306_s6 + $0x9f0] sm:$0xff] }
 0x685   : > { %8749 = vmatpush2.bf16.msra.mxu0 %v9841_v56  ;;  %8621 = vmatprep.subr.bf16.mxu1 %v10126_v26  ;;  %v5370_v26 = vld [vmem:[%s10306_s6 + $0x930] sm:$0xff] }
 0x686   : > { %8750 = vmatprep.subr.bf16.mxu0 %v9826_v4  ;;  %v5378_v4 = vld [vmem:[%s10306_s6 + $0x970] sm:$0xff] }
 0x687   : > { %v9968_v8 = vcombine.high %v5370_v26, %v5378_v4 }
 0x688   : > { %8622 = vmatpush2.bf16.msra.mxu1 %v10125_v5  ;;  %v9967_v5 = vcombine.low %v5370_v26, %v5378_v4 }
 0x689   : > { %8751 = vmatpush2.bf16.msra.mxu0 %v9825_v49  ;;  %8623 = vmatprep.subr.bf16.mxu1 %v10110_v27  ;;  %v9952_v49 = vcombine.high %v5354_v9, %v5362_v47  ;;  %v5338_v27 = vld [vmem:[%s10306_s6 + $0x830] sm:$0xff]  ;;  %v5443_v9 = vld [vmem:[%s10306_s6 + $0xb78] sm:$0xff] }
 0x68a   : > { %8752 = vmatprep.subr.bf16.mxu0 %v9810_v22  ;;  %v5346_v22 = vld [vmem:[%s10306_s6 + $0x870] sm:$0xff] }
 0x68b   : > { %v9936_v11 = vcombine.high %v5338_v27, %v5346_v22 }
 0x68c   : > { %8624 = vmatpush2.bf16.msra.mxu1 %v10109_v14  ;;  %v5578_v14 = vld [vmem:[%s10306_s6 + $0xfb0] sm:$0xff] }
 0x68d   : > { %8753 = vmatpush2.bf16.msra.mxu0 %v9809_v39  ;;  %8625 = vmatprep.subr.bf16.mxu1 %v10094_v18  ;;  %v5586_v39 = vld [vmem:[%s10306_s6 + $0xff0] sm:$0xff]  ;;  %v9935_v18 = vcombine.low %v5338_v27, %v5346_v22  ;;  %v5427_v27 = vld [vmem:[%s10306_s6 + $0xaf8] sm:$0xff] }
 0x68e   : > { %v10176_v12 = vcombine.high %v5578_v14, %v5586_v39 }
 0x690   : > { %v11911_v58 = vpop.f32.mrf.mxu0  ;;  %8626 = vmatpush2.bf16.msra.mxu1 %v10093_v21  ;;  %8755 = vmatmul.mubr.bf16.vlgmr.msra.gmra.mxu0 %v11443_v44  ;;  %v10047_v44 = vcombine.low %v5450_v36, %v5458_v45  ;;  %v5570_v21 = vld [vmem:[%s10306_s6 + $0xf70] sm:$0xff] }
 0x691   : > { %8627 = vmatprep.subr.bf16.mxu1 %v10078_v54  ;;  %v10175_v54 = vcombine.low %v5578_v14, %v5586_v39  ;;  %v10160_v23 = vcombine.high %v5562_v52, %v5570_v21  ;;  %v5530_v45 = vld [vmem:[%s10306_s6 + $0xe30] sm:$0xff] }
 0x692   : > { %v11914_v6 = vpop.f32.mrf.mxu0 }
 0x694   : > { %v8514_v61 = vpop.f32.mrf.mxu0  ;;  %8628 = vmatpush2.bf16.msra.mxu1 %v10077_v55  ;;  %v5554_v55 = vld [vmem:[%s10306_s6 + $0xef0] sm:$0xff] }
 0x695   : > { %8629 = vmatprep.subr.bf16.mxu1 %v10062_v3  ;;  %v10159_v3 = vcombine.low %v5562_v52, %v5570_v21  ;;  %v10144_v36 = vcombine.high %v5546_v17, %v5554_v55  ;;  %v5538_v61 = vld [vmem:[%s10306_s6 + $0xe70] sm:$0xff]  ;;  %v5411_v52 = vld [vmem:[%s10306_s6 + $0xa78] sm:$0xff] }
 0x696   : > { %v8515_v30 = vpop.f32.mrf.mxu0  ;;  %v10127_v15 = vcombine.low %v5530_v45, %v5538_v61 }
 0x697   : > { %v5514_v30 = vld [vmem:[%s10306_s6 + $0xdb0] sm:$0xff] }
 0x698   : > { %8630 = vmatpush2.bf16.msra.mxu1 %v10061_v19  ;;  %v10143_v19 = vcombine.low %v5546_v17, %v5554_v55  ;;  %v10111_v63 = vcombine.low %v5514_v30, %v5522_v57 }
 0x699   : > { %8681 = vmatprep.subr.bf16.mxu1 %v10048_v50  ;;  %v10128_v50 = vcombine.high %v5530_v45, %v5538_v61 }
 0x69b   : > { %v8387_v62 = vpop.f32.mrf.mxu1  ;;  %8632 = vmatmul.mubr.bf16.vlgmr.msra.gmra.mxu1 %v11547_v46 }
 0x69c   : > { %8682 = vmatpush1.bf16.msra.mxu1 %v10047_v44  ;;  %8713 = vmatprep.mubr.bf16.mxu1 %v11545_v40  ;;  %v11925_v60 = vadd.f32 %v8387_v62, %v11753_v48  ;;  %v5386_v48 = vld [vmem:[%s10306_s6 + $0x9b0] sm:$0xff]  ;;  %v10112_v44 = vcombine.high %v5514_v30, %v5522_v57  ;;  %v5371_v30 = vld [vmem:[%s10306_s6 + $0x938] sm:$0xff] }
 0x69d   : > { %v8389_v24 = vpop.f32.mrf.mxu1  ;;  %8683 = vmatprep.subr.bf16.mxu1 %v10032_v38  ;;  %v9984_v56 = vcombine.high %v5386_v48, %v5394_v20  ;;  %v9983_v10 = vcombine.low %v5386_v48, %v5394_v20  ;;  %v5498_v38 = vld [vmem:[%s10306_s6 + $0xd30] sm:$0xff]  ;;  %v5451_v20 = vld [vmem:[%s10306_s6 + $0xbb8] sm:$0xff] }
 0x69e   : > { %v11928_v32 = vadd.f32 %v8389_v24, %v11759_v34  ;;  %v9999_v34 = vcombine.low %v5402_v53, %v5410_v51  ;;  %v10096_v62 = vcombine.high %v5498_v38, %v5506_v25  ;;  %v5490_v24 = vld [vmem:[%s10306_s6 + $0xcf0] sm:$0xff]  ;;  %v5379_v57 = vld [vmem:[%s10306_s6 + $0x978] sm:$0xff] }
 0x69f   : > { %v8391_v37 = vpop.f32.mrf.mxu1  ;;  %v5466_v51 = vld [vmem:[%s10306_s6 + $0xc30] sm:$0xff] }
 0x6a0   : > { %v8837_v41 = vcombine.low %v11925_v60, %v11928_v32  ;;  %8684 = vmatpush1.bf16.msra.mxu1 %v10031_v28  ;;  %v5482_v28 = vld [vmem:[%s10306_s6 + $0xcb0] sm:$0xff]  ;;  %v9970_v32 = vcombine.high %v5371_v30, %v5379_v57 }
 0x6a1   : > { %v8392_v0 = vpop.f32.mrf.mxu1  ;;  %8685 = vmatprep.subr.bf16.mxu1 %v10016_v35  ;;  %v10095_v35 = vcombine.low %v5498_v38, %v5506_v25  ;;  %v10080_v53 = vcombine.high %v5482_v28, %v5490_v24  ;;  %v5474_v37 = vld [vmem:[%s10306_s6 + $0xc70] sm:$0xff]  ;;  %v5339_v25 = vld [vmem:[%s10306_s6 + $0x838] sm:$0xff] }
 0x6a2   : > { %v10079_v0 = vcombine.low %v5482_v28, %v5490_v24  ;;  %v10063_v26 = vcombine.low %v5466_v51, %v5474_v37  ;;  %v8845_v55 = vrot.slane %v8837_v41, %v11856_v33  ;;  %v5355_v41 = vld [vmem:[%s10306_s6 + $0x8b8] sm:$0xff] }
 0x6a3   : > { %v5579_v24 = vld [vmem:[%s10306_s6 + $0xfb8] sm:$0xff] }
 0x6a4   : > { %8686 = vmatpush1.bf16.msra.mxu1 %v10015_v42 }
 0x6a5   : > { %8687 = vmatprep.subr.bf16.mxu1 %v10000_v59  ;;  %v10064_v59 = vcombine.high %v5466_v51, %v5474_v37  ;;  %v5563_v37 = vld [vmem:[%s10306_s6 + $0xf38] sm:$0xff] }
 0x6a8   : > { %8688 = vmatpush1.bf16.msra.mxu1 %v9999_v34  ;;  %v5459_v34 = vld [vmem:[%s10306_s6 + $0xbf8] sm:$0xff] }
 0x6a9   : > { %8689 = vmatprep.subr.bf16.mxu1 %v9984_v56  ;;  %v10050_v4 = vcombine.high %v5451_v20, %v5459_v34  ;;  %v10049_v47 = vcombine.low %v5451_v20, %v5459_v34  ;;  %v5547_v34 = vld [vmem:[%s10306_s6 + $0xeb8] sm:$0xff] }
 0x6ac   : > { %8690 = vmatpush1.bf16.msra.mxu1 %v9983_v10 }
 0x6ad   : > { %8691 = vmatprep.subr.bf16.mxu1 %v9968_v8  ;;  %v5435_v8 = vld [vmem:[%s10306_s6 + $0xb38] sm:$0xff] }
 0x6b0   : > { %8692 = vmatpush1.bf16.msra.mxu1 %v9967_v5  ;;  %v10034_v5 = vcombine.high %v5435_v8, %v5443_v9 }
 0x6b1   : > { %8693 = vmatprep.subr.bf16.mxu1 %v9952_v49  ;;  %v5419_v49 = vld [vmem:[%s10306_s6 + $0xab8] sm:$0xff] }
 0x6b2   : > { %v10018_v14 = vcombine.high %v5419_v49, %v5427_v27 }
 0x6b4   : > { %8694 = vmatpush1.bf16.msra.mxu1 %v9951_v29  ;;  %v10033_v29 = vcombine.low %v5435_v8, %v5443_v9  ;;  %v5539_v8 = vld [vmem:[%s10306_s6 + $0xe78] sm:$0xff] }
 0x6b5   : > { %8695 = vmatprep.subr.bf16.mxu1 %v9936_v11 }
 0x6b8   : > { %8696 = vmatpush1.bf16.msra.mxu1 %v9935_v18 }
 0x6b9   : > { %8697 = vmatprep.subr.bf16.mxu1 %v10176_v12  ;;  %v5403_v12 = vld [vmem:[%s10306_s6 + $0xa38] sm:$0xff] }
 0x6ba   : > { %v10001_v61 = vcombine.low %v5403_v12, %v5411_v52 }
 0x6bc   : > { %8698 = vmatpush2.bf16.msra.mxu1 %v10175_v54 }
 0x6bd   : > { %8699 = vmatprep.subr.bf16.mxu1 %v10160_v23  ;;  %v10017_v23 = vcombine.low %v5419_v49, %v5427_v27  ;;  %v5523_v49 = vld [vmem:[%s10306_s6 + $0xdf8] sm:$0xff] }
 0x6c0   : > { %8700 = vmatpush2.bf16.msra.mxu1 %v10159_v3  ;;  %v5387_v3 = vld [vmem:[%s10306_s6 + $0x9b8] sm:$0xff] }
 0x6c1   : > { %8701 = vmatprep.subr.bf16.mxu1 %v10144_v36  ;;  %v5069_v36 = vld [vmem:[#allocation3 + $0x8] sm:$0xff] }
 0x6c4   : > { %8702 = vmatpush2.bf16.msra.mxu1 %v10143_v19 }
 0x6c5   : > { %8703 = vmatprep.subr.bf16.mxu1 %v10128_v50 }
 0x6c8   : > { %8704 = vmatpush2.bf16.msra.mxu1 %v10127_v15  ;;  %v5363_v15 = vld [vmem:[%s10306_s6 + $0x8f8] sm:$0xff] }
 0x6c9   : > { %8705 = vmatprep.subr.bf16.mxu1 %v10112_v44  ;;  %v9969_v44 = vcombine.low %v5371_v30, %v5379_v57  ;;  %v9954_v38 = vcombine.high %v5355_v41, %v5363_v15 }
 0x6cc   : > { %8706 = vmatpush2.bf16.msra.mxu1 %v10111_v63  ;;  %v5347_v63 = vld [vmem:[%s10306_s6 + $0x878] sm:$0xff] }
 0x6cd   : > { %8707 = vmatprep.subr.bf16.mxu1 %v10096_v62  ;;  %v9953_v62 = vcombine.low %v5355_v41, %v5363_v15  ;;  %v9938_v28 = vcombine.high %v5339_v25, %v5347_v63 }
 0x6d0   : > { %v11958_v42 = vpop.f32.mrf.mxu0  ;;  %8708 = vmatpush2.bf16.msra.mxu1 %v10095_v35  ;;  %v5587_v35 = vld [vmem:[%s10306_s6 + $0xff8] sm:$0xff] }
 0x6d1   : > { %8709 = vmatprep.subr.bf16.mxu1 %v10080_v53  ;;  %v9937_v53 = vcombine.low %v5339_v25, %v5347_v63  ;;  %v10178_v51 = vcombine.high %v5579_v24, %v5587_v35 }
 0x6d2   : > { %v11960_v48 = vpop.f32.mrf.mxu0 }
 0x6d4   : > { %v8596_v56 = vpop.f32.mrf.mxu0  ;;  %8710 = vmatpush2.bf16.msra.mxu1 %v10079_v0  ;;  %v5571_v0 = vld [vmem:[%s10306_s6 + $0xf78] sm:$0xff] }
 0x6d5   : > { %8711 = vmatprep.subr.bf16.mxu1 %v10064_v59  ;;  %v10177_v59 = vcombine.low %v5579_v24, %v5587_v35  ;;  %v10162_v20 = vcombine.high %v5563_v37, %v5571_v0  ;;  %v5555_v56 = vld [vmem:[%s10306_s6 + $0xef8] sm:$0xff]  ;;  %v5070_v35 = vld [vmem:[#allocation3 + $0x10] sm:$0xff] }
 0x6d6   : > { %v8597_v10 = vpop.f32.mrf.mxu0  ;;  %v10145_v9 = vcombine.low %v5547_v34, %v5555_v56 }
 0x6d7   : > { %v5531_v10 = vld [vmem:[%s10306_s6 + $0xe38] sm:$0xff] }
 0x6d8   : > { %8712 = vmatpush2.bf16.msra.mxu1 %v10063_v26  ;;  %v10161_v26 = vcombine.low %v5563_v37, %v5571_v0  ;;  %v10129_v27 = vcombine.low %v5531_v10, %v5539_v8 }
 0x6d9   : > { %8763 = vmatprep.subr.bf16.mxu1 %v10050_v4  ;;  %v10146_v4 = vcombine.high %v5547_v34, %v5555_v56 }
 0x6db   : > { %v8469_v22 = vpop.f32.mrf.mxu1  ;;  %8714 = vmatmul.mubr.bf16.vlgmr.msra.gmra.mxu1 %v11547_v46 }
 0x6dc   : > { %8764 = vmatpush1.bf16.msra.mxu1 %v10049_v47  ;;  %8795 = vmatprep.mubr.bf16.mxu1 %v11545_v40  ;;  %v8470_v39 = vadd.f32 %v8469_v22, %v11835_v43  ;;  %v10002_v40 = vcombine.high %v5403_v12, %v5411_v52  ;;  %v10130_v47 = vcombine.high %v5531_v10, %v5539_v8  ;;  %v5491_v12 = vld [vmem:[%s10306_s6 + $0xcf8] sm:$0xff] }
 0x6dd   : > { %v8471_v11 = vpop.f32.mrf.mxu1  ;;  %8765 = vmatprep.subr.bf16.mxu1 %v10034_v5  ;;  %v5515_v5 = vld [vmem:[%s10306_s6 + $0xdb8] sm:$0xff] }
 0x6de   : > { %v8472_v18 = vadd.f32 %v8471_v11, %v11839_v31  ;;  %v5395_v31 = vld [vmem:[%s10306_s6 + $0x9f8] sm:$0xff]  ;;  %v10114_v22 = vcombine.high %v5515_v5, %v5523_v49 }
 0x6df   : > { %v8473_v21 = vpop.f32.mrf.mxu1  ;;  %v9986_v19 = vcombine.high %v5387_v3, %v5395_v31  ;;  %v9985_v60 = vcombine.low %v5387_v3, %v5395_v31  ;;  %v5507_v11 = vld [vmem:[%s10306_s6 + $0xd78] sm:$0xff] }
 0x6e0   : > { %v8838_v54 = vcombine.low %v8470_v39, %v8472_v18  ;;  %8766 = vmatpush1.bf16.msra.mxu1 %v10033_v29  ;;  %v5499_v29 = vld [vmem:[%s10306_s6 + $0xd38] sm:$0xff] }
 0x6e1   : > { %v8474_v17 = vpop.f32.mrf.mxu1  ;;  %8767 = vmatprep.subr.bf16.mxu1 %v10018_v14  ;;  %v10113_v14 = vcombine.low %v5515_v5, %v5523_v49  ;;  %v10098_v39 = vcombine.high %v5499_v29, %v5507_v11  ;;  %v5483_v18 = vld [vmem:[%s10306_s6 + $0xcb8] sm:$0xff]  ;;  %v10097_v52 = vcombine.low %v5499_v29, %v5507_v11 }
 0x6e2   : > { %v8852_v43 = vrot.slane %v8838_v54, %v11856_v33  ;;  %v10082_v21 = vcombine.high %v5483_v18, %v5491_v12  ;;  %v5467_v54 = vld [vmem:[%s10306_s6 + $0xc38] sm:$0xff] }
 0x6e4   : > { %v8853_v45 = vcombine.low %v8845_v55, %v8852_v43  ;;  %8768 = vmatpush1.bf16.msra.mxu1 %v10017_v23  ;;  %v5475_v23 = vld [vmem:[%s10306_s6 + $0xc78] sm:$0xff] }
 0x6e5   : > { %8769 = vmatprep.subr.bf16.mxu1 %v10002_v40  ;;  %v10081_v40 = vcombine.low %v5483_v18, %v5491_v12  ;;  %v10066_v55 = vcombine.high %v5467_v54, %v5475_v23  ;;  %v10065_v31 = vcombine.low %v5467_v54, %v5475_v23 }
 0x6e6   : > { %v8893_v50 = vadd.f32 %v8853_v45, %v5069_v36 }
 0x6e8   : > { %8897 = vst [vmem:[#allocation3 + $0x8] sm:$0xff] %v8893_v50  ;;  %8770 = vmatpush1.bf16.msra.mxu1 %v10001_v61 }
 0x6e9   : > { %8771 = vmatprep.subr.bf16.mxu1 %v9986_v19 }
 0x6ec   : > { %8772 = vmatpush1.bf16.msra.mxu1 %v9985_v60 }
 0x6ed   : > { %8773 = vmatprep.subr.bf16.mxu1 %v9970_v32 }
 0x6f0   : > { %8774 = vmatpush1.bf16.msra.mxu1 %v9969_v44 }
 0x6f1   : > { %8775 = vmatprep.subr.bf16.mxu1 %v9954_v38 }
 0x6f4   : > { %8776 = vmatpush1.bf16.msra.mxu1 %v9953_v62 }
 0x6f5   : > { %8777 = vmatprep.subr.bf16.mxu1 %v9938_v28 }
 0x6f8   : > { %8778 = vmatpush1.bf16.msra.mxu1 %v9937_v53 }
 0x6f9   : > { %8779 = vmatprep.subr.bf16.mxu1 %v10178_v51 }
 0x6fc   : > { %8780 = vmatpush2.bf16.msra.mxu1 %v10177_v59 }
 0x6fd   : > { %8781 = vmatprep.subr.bf16.mxu1 %v10162_v20 }
 0x700   : > { %8782 = vmatpush2.bf16.msra.mxu1 %v10161_v26 }
 0x701   : > { %8783 = vmatprep.subr.bf16.mxu1 %v10146_v4 }
 0x704   : > { %8784 = vmatpush2.bf16.msra.mxu1 %v10145_v9 }
 0x705   : > { %8785 = vmatprep.subr.bf16.mxu1 %v10130_v47 }
 0x708   : > { %8786 = vmatpush2.bf16.msra.mxu1 %v10129_v27  ;;  %v5071_v27 = vld [vmem:[#allocation3 + $0x18] sm:$0xff] }
 0x709   : > { %8787 = vmatprep.subr.bf16.mxu1 %v10114_v22 }
 0x70c   : > { %8788 = vmatpush2.bf16.msra.mxu1 %v10113_v14 }
 0x70d   : > { %8789 = vmatprep.subr.bf16.mxu1 %v10098_v39 }
 0x710   : > { %v8674_v17 = vpop.f32.mrf.mxu0  ;;  %8790 = vmatpush2.bf16.msra.mxu1 %v10097_v52 }
 0x711   : > { %8791 = vmatprep.subr.bf16.mxu1 %v10082_v21 }
 0x712   : > { %v8676_v43 = vpop.f32.mrf.mxu0 }
 0x714   : > { %v8678_v3 = vpop.f32.mrf.mxu0  ;;  %8792 = vmatpush2.bf16.msra.mxu1 %v10081_v40 }
 0x715   : > { %8793 = vmatprep.subr.bf16.mxu1 %v10066_v55 }
 0x716   : > { %v8679_v36 = vpop.f32.mrf.mxu0 }
 0x718   : > { %8794 = vmatpush2.bf16.msra.mxu1 %v10065_v31 }
 0x71b   : > { %v8551_v45 = vpop.f32.mrf.mxu1  ;;  %8796 = vmatmul.mubr.bf16.vlgmr.msra.gmra.mxu1 %v11547_v46 }
 0x71c   : > { %v8552_v19 = vadd.f32 %v8551_v45, %v11911_v58 }
 0x71d   : > { %v8553_v61 = vpop.f32.mrf.mxu1 }
 0x71e   : > { %v8554_v50 = vadd.f32 %v8553_v61, %v11914_v6 }
 0x71f   : > { %v8555_v30 = vpop.f32.mrf.mxu1 }
 0x720   : > { %v8854_v57 = vcombine.low %v8552_v19, %v8554_v50 }
 0x721   : > { %v8556_v60 = vpop.f32.mrf.mxu1 }
 0x722   : > { %v8862_v58 = vrot.slane %v8854_v57, %v11856_v33 }
 0x750   : > { %v8756_v32 = vpop.f32.mrf.mxu0 }
 0x752   : > { %v8758_v41 = vpop.f32.mrf.mxu0 }
 0x754   : > { %v8760_v15 = vpop.f32.mrf.mxu0 }
 0x756   : > { %v8761_v44 = vpop.f32.mrf.mxu0 }
 0x75b   : > { %v8633_v38 = vpop.f32.mrf.mxu1 }
 0x75c   : > { %v8634_v63 = vadd.f32 %v8633_v38, %v11958_v42 }
 0x75d   : > { %v8635_v25 = vpop.f32.mrf.mxu1 }
 0x75e   : > { %v8636_v62 = vadd.f32 %v8635_v25, %v11960_v48 }
 0x75f   : > { %v8637_v28 = vpop.f32.mrf.mxu1 }
 0x760   : > { %v8855_v46 = vcombine.low %v8634_v63, %v8636_v62 }
 0x761   : > { %v8638_v24 = vpop.f32.mrf.mxu1 }
 0x762   : > { %v8869_v6 = vrot.slane %v8855_v46, %v11856_v33 }
 0x764   : > { %v8870_v53 = vcombine.low %v8862_v58, %v8869_v6 }
 0x766   : > { %v8894_v51 = vadd.f32 %v8870_v53, %v5070_v35 }
 0x768   : > { %8898 = vst [vmem:[#allocation3 + $0x10] sm:$0xff] %v8894_v51 }
 0x79b   : > { %v8715_v37 = vpop.f32.mrf.mxu1 }
 0x79c   : > { %v8716_v59 = vadd.f32 %v8715_v37, %v8674_v17 }
 0x79d   : > { %v8717_v0 = vpop.f32.mrf.mxu1 }
 0x79e   : > { %v8718_v20 = vadd.f32 %v8717_v0, %v8676_v43 }
 0x79f   : > { %v8719_v34 = vpop.f32.mrf.mxu1 }
 0x7a0   : > { %v8871_v56 = vcombine.low %v8716_v59, %v8718_v20 }
 0x7a1   : > { %v8720_v42 = vpop.f32.mrf.mxu1 }
 0x7a2   : > { %v8879_v5 = vrot.slane %v8871_v56, %v11856_v33 }
 0x7db   : > { %v8797_v26 = vpop.f32.mrf.mxu1 }
 0x7dc   : > { %v8798_v4 = vadd.f32 %v8797_v26, %v8756_v32 }
 0x7dd   : > { %v8799_v48 = vpop.f32.mrf.mxu1 }
 0x7de   : > { %v8800_v10 = vadd.f32 %v8799_v48, %v8758_v41 }
 0x7df   : > { %v8801_v8 = vpop.f32.mrf.mxu1 }
 0x7e0   : > { %v8872_v9 = vcombine.low %v8798_v4, %v8800_v10 }
 0x7e1   : > { %v8802_v47 = vpop.f32.mrf.mxu1 }
 0x7e2   : > { %v8886_v49 = vrot.slane %v8872_v9, %v11856_v33 }
 0x7e4   : > { %v8887_v22 = vcombine.low %v8879_v5, %v8886_v49  ;;  %8903 = sbr.rel (%p10179_p6) target bundleno = 2043 (0x7fb), region = 48 }
 0x7e6   : > { %v8895_v29 = vadd.f32 %v8887_v22, %v5071_v27 }
 0x7e8   : > { %8899 = vst [vmem:[#allocation3 + $0x18] sm:$0xff] %v8895_v29 }
 0x7e9   : > { %v8908_v11 = vld [vmem:[%s12058_s4] sm:$0xff]  ;;  %v8930_v14 = vsub.s32 4, %v10699_v16  ;;  %v8934_v39 = vsub.s32 5, %v10699_v16  ;;  %v8938_v18 = vsub.s32 6, %v10699_v16  ;;  %v8909_v23 = vld [vmem:[%s12058_s4 + $0x8] sm:$0xff]  ;;  %v8942_v43 = vsub.s32 7, %v10699_v16 }
 0x7ea   : > { %v8915_v12 = vrot.slane %v8908_v11, %v10925_v1  ;;  %v8919_v52 = vrot.slane %v8908_v11, %v10929_v2  ;;  %v8923_v21 = vrot.slane %v8908_v11, %v11258_v7  ;;  %v8927_v54 = vrot.slane %v8908_v11, %v11261_v13  ;;  %v8904_v15 = vld [vmem:[#allocation3] sm:$0xff]  ;;  %v8905_v24 = vld [vmem:[#allocation3 + $0x8] sm:$0xff]  ;;  %v8906_v58 = vld [vmem:[#allocation3 + $0x10] sm:$0xff] }
 0x7eb   : > { %v8931_v17 = vrot.slane %v8908_v11, %v8930_v14  ;;  %v8935_v40 = vrot.slane %v8908_v11, %v8934_v39  ;;  %v8939_v55 = vrot.slane %v8908_v11, %v8938_v18  ;;  %v8947_v36 = vrot.slane %v8909_v23, %v10925_v1 }
 0x7ec   : > { %v8976_v3 = vcombine.low %v8915_v12, %v8919_v52  ;;  %v8977_v31 = vcombine.low %v8923_v21, %v8927_v54  ;;  %v8951_v45 = vrot.slane %v8909_v23, %v10929_v2  ;;  %v8943_v61 = vrot.slane %v8908_v11, %v8942_v43 }
 0x7ed   : > { %v8993_v19 = vcombine.low %v8931_v17, %v8935_v40  ;;  %v8955_v50 = vrot.slane %v8909_v23, %v11258_v7  ;;  %v8959_v30 = vrot.slane %v8909_v23, %v11261_v13  ;;  %v8963_v41 = vrot.slane %v8909_v23, %v8930_v14 }
 0x7ee   : > { %v8984_v57 = vrot.slane %v8976_v3, %v11856_v33  ;;  %v8991_v60 = vrot.slane %v8977_v31, %v11856_v33  ;;  %v9010_v32 = vcombine.low %v8947_v36, %v8951_v45  ;;  %v8994_v16 = vcombine.low %v8939_v55, %v8943_v61 }
 0x7ef   : > { %v9001_v44 = vrot.slane %v8993_v19, %v11856_v33  ;;  %v9011_v38 = vcombine.low %v8955_v50, %v8959_v30  ;;  %v8967_v1 = vrot.slane %v8909_v23, %v8934_v39  ;;  %v8971_v63 = vrot.slane %v8909_v23, %v8938_v18  ;;  %v8907_v20 = vld [vmem:[#allocation3 + $0x18] sm:$0xff] }
 0x7f0   : > { %v8992_v25 = vcombine.low %v8984_v57, %v8991_v60  ;;  %v9018_v2 = vrot.slane %v9010_v32, %v11856_v33  ;;  %v8975_v62 = vrot.slane %v8909_v23, %v8942_v43  ;;  %v9008_v7 = vrot.slane %v8994_v16, %v11856_v33 }
 0x7f1   : > { %v9025_v13 = vrot.slane %v9011_v38, %v11856_v33  ;;  %v9027_v28 = vcombine.low %v8963_v41, %v8967_v1 }
 0x7f2   : > { %v9048_v46 = vadd.f32 %v8992_v25, %v8904_v15  ;;  %v9028_v6 = vcombine.low %v8971_v63, %v8975_v62  ;;  %v9009_v35 = vcombine.low %v9001_v44, %v9008_v7 }
 0x7f3   : > { %v9026_v53 = vcombine.low %v9018_v2, %v9025_v13  ;;  %v9035_v51 = vrot.slane %v9027_v28, %v11856_v33 }
 0x7f4   : > { %9052 = vst [vmem:[#allocation3] sm:$0xff] %v9048_v46  ;;  %v9042_v37 = vrot.slane %v9028_v6, %v11856_v33  ;;  %v9049_v0 = vadd.f32 %v9009_v35, %v8905_v24 }
 0x7f5   : > { %v9050_v59 = vadd.f32 %v9026_v53, %v8906_v58 }
 0x7f6   : > { %v9043_v34 = vcombine.low %v9035_v51, %v9042_v37  ;;  %9053 = vst [vmem:[#allocation3 + $0x8] sm:$0xff] %v9049_v0 }
 0x7f7   : > { %9054 = vst [vmem:[#allocation3 + $0x10] sm:$0xff] %v9050_v59 }
 0x7f8   : > { %v9051_v56 = vadd.f32 %v9043_v34, %v8907_v20 }
 0x7fa   : > { %9055 = vst [vmem:[#allocation3 + $0x18] sm:$0xff] %v9051_v56 }
 0x7fb PF: > { %p10190_p7 = scmp.eq.s32.totalorder %s10287_s19, 3  ;;  %s10250_s16 = smov [#allocation3]  }
 0x7fc   : > { %s9063_s17 = sshll.u32 %s10250_s16, 4  ;;  %s9064_s17 = int_to_ptr.vmem [resolvable:$true] %s9063_s17 }
 0x7fd   : > { %s10209_s20 = scalar_lea.vmem %s9064_s17, 512  ;;  %p10216_p11 = scmp.lt.s32.totalorder %s9064_s17, %s9064_s17 }
 0x7fe   : > { %p10210_p8 = scmp.ne.s32.totalorder %s9064_s17, %s10209_s20  ;;  %p10217_p12 = scmp.lt.s32.totalorder %s10209_s20, %s10209_s20 }
 0x800   : > { %p10211_p9 = pnand %p10210_p8, %p10190_p7  ;;  %p10218_p13 = por %p10217_p12, %p10216_p11 }
 0x802   : > { %p10212_p10 = pneg %p10211_p9 }
 0x804   : > { %p10219_p0 = pnand %p10218_p13, %p10212_p10 }
 0x806   : > { %10222 = shalt.err (!%p10219_p0)
}
 0x807   : > { %10187 = dma.vmem_to_hbm [thread:$0]  (%p10190_p7), %s9064_s17, 512, %s12059_s5, [#allocation4]  }
 0x808   : > { %10238 = dma.done.wait (%p10190_p7), [#allocation4], 512  }
 0x809   : > { %10240 = vsyncadd (%p10190_p7), [#allocation4], 4294966784 }
 0x80a PF: > { %s16_s18 = sadd.s32 1, %s10243_s18  }
 0x80b   : > { %p13_p1 = scmp.ge.s32.totalorder %s16_s18, 6  }
 0x80d   :  { %15 = sbr.rel (!%p13_p1) target bundleno = 1 (0x1), region = 81 }
 0x812   :  { %9076 = vsyncpa [#allocation4], 1 }
 0x813   :  { %9078 = vsyncpa [#allocation4 + $0x1], 1 }

</bundles_post_ra>
